<compile_context>
chip_gen: v7x
topology: tpu7x:2x2x1
jax: 0.10.0
libtpu: 0.0.40
codegen_flags: <defaults>
</compile_context>

<pallas_src>
import math
import jax
import jax.numpy as jnp
from jax.experimental import pallas as pl
from jax.experimental.pallas import tpu as pltpu

_EPS = 1e-5
_ACT_DTYPE = jnp.bfloat16
_TARGET_M = 256                 # target M (rows) of the per-step MXU matmul
_MAX_SLAB_BYTES = 2 * 1024 * 1024


# ----------------------------- small helpers --------------------------------

def _celu(y):
    # CELU(alpha=1): y if y > 0 else exp(y) - 1   (computed in fp32)
    return jnp.where(y > 0.0, y, jnp.exp(jnp.minimum(y, 0.0)) - 1.0)


def _apply_act(y, act):
    if act == 'celu':
        return _celu(y)
    if act == 'relu':
        return jnp.maximum(y, 0.0)
    return y


def _pick_tr(Ho, Wo, K, cout):
    """Largest divisor of Ho with TR*Wo ~<= _TARGET_M rows and a bounded slab."""
    best = 1
    for tr in range(1, Ho + 1):
        if Ho % tr:
            continue
        m = tr * Wo
        slab = m * K * 2 + m * cout * 4
        if tr > 1 and (m > _TARGET_M or slab > _MAX_SLAB_BYTES):
            continue
        best = tr
    return best


def _space_to_depth(x, pad, pad_value=0.0):
    """NHWC -> pad by `pad` (+1 to even) -> (N, Hp/2, Wp/2, 4C), phases (ph,pw) major."""
    N, H, W, C = x.shape
    Hp, Wp = H + 2 * pad, W + 2 * pad
    eh, ew = Hp % 2, Wp % 2
    xp = jnp.pad(x, ((0, 0), (pad, pad + eh), (pad, pad + ew), (0, 0)),
                 constant_values=pad_value)
    Hp, Wp = Hp + eh, Wp + ew
    xs = xp.reshape(N, Hp // 2, 2, Wp // 2, 2, C)
    xs = xs.transpose(0, 1, 3, 2, 4, 5).reshape(N, Hp // 2, Wp // 2, 4 * C)
    return xs


def _s2d_weight(w):
    """(kh,kw,cin,cout) stride-2 weight -> (ceil(kh/2),ceil(kw/2),4*cin,cout) stride-1."""
    kh, kw, cin, cout = w.shape
    kh2, kw2 = (kh + 1) // 2, (kw + 1) // 2
    w2 = jnp.zeros((kh2, kw2, 2, 2, cin, cout), w.dtype)
    for ph in range(2):
        for pw in range(2):
            sub = w[ph::2, pw::2]
            w2 = w2.at[:sub.shape[0], :sub.shape[1], ph, pw].set(sub)
    return w2.reshape(kh2, kw2, 4 * cin, cout)


# ------------------------ fused direct conv (stride 1) ----------------------

def _make_conv_kernel(kh, kw, cin, cout, H, W, Wo, TR, pad, act, has_residual):
    K = kh * kw * cin

    def kernel(*refs):
        x_ref, w_ref, c_ref = refs[0], refs[1], refs[2]
        idx = 3
        r_ref = None
        if has_residual:
            r_ref = refs[idx]
            idx += 1
        o_ref = refs[idx]
        idx += 1
        xp_ref = refs[idx] if pad > 0 else None

        rb = pl.program_id(1)

        if pad > 0:
            # Pad in VMEM once per sample (row-block 0): zero the scratch, copy interior.
            @pl.when(rb == 0)
            def _():
                xp_ref[...] = jnp.zeros(xp_ref.shape, xp_ref.dtype)
                xp_ref[pad:pad + H, pad:pad + W, :] = x_ref[...]
            src = xp_ref
        else:
            src = x_ref

        h0 = pl.multiple_of(rb * TR, TR)

        # Build the (TR*Wo, kh*kw*Cin) slab from the resident sample and do ONE matmul.
        taps = []
        for i in range(kh):
            for j in range(kw):
                taps.append(src[pl.ds(h0 + i, TR), pl.ds(j, Wo), :])
        a = taps[0] if len(taps) == 1 else jnp.concatenate(taps, axis=-1)
        a = a.reshape(TR * Wo, K)

        y = jnp.dot(a, w_ref[...], preferred_element_type=jnp.float32)
        y = y + c_ref[...]                                 # BN shift (scale folded into w)
        if has_residual:
            y = y + r_ref[...].reshape(TR * Wo, cout).astype(jnp.float32)
        y = _apply_act(y, act)
        o_ref[...] = y.reshape(TR, Wo, cout).astype(o_ref.dtype)

    return kernel


def conv_bn_act_fused(x, w, scale, shift, pad, act=None, residual=None):
    """Stride-1 Conv2d(bias=False) + BN(eval, folded) [+ residual] [+ act], NHWC bf16."""
    kh, kw, cin, cout = w.shape
    N, H, W, _ = x.shape
    Hp, Wp = H + 2 * pad, W + 2 * pad
    Ho, Wo = Hp - kh + 1, Wp - kw + 1
    K = kh * kw * cin
    TR = _pick_tr(Ho, Wo, K, cout)
    RB = Ho // TR

    x = x.astype(_ACT_DTYPE)
    w2 = (w * scale[None, None, None, :]).reshape(K, cout).astype(_ACT_DTYPE)
    shift2 = shift.reshape(1, cout).astype(jnp.float32)

    args = [x, w2, shift2]
    in_specs = [
        pl.BlockSpec((None, H, W, cin), lambda n, r: (n, 0, 0, 0)),   # sample resident per n
        pl.BlockSpec((K, cout), lambda n, r: (0, 0)),                 # full (reshaped) weight
        pl.BlockSpec((1, cout), lambda n, r: (0, 0)),                 # fp32 BN shift
    ]
    if residual is not None:
        args.append(residual.astype(_ACT_DTYPE))
        in_specs.append(pl.BlockSpec((None, TR, Wo, cout), lambda n, r: (n, r, 0, 0)))

    scratch_shapes = []
    if pad > 0:
        scratch_shapes.append(pltpu.VMEM((Hp, Wp, cin), _ACT_DTYPE))

    out = pl.pallas_call(
        _make_conv_kernel(kh, kw, cin, cout, H, W, Wo, TR, pad, act,
                          residual is not None),
        out_shape=jax.ShapeDtypeStruct((N, Ho, Wo, cout), _ACT_DTYPE),
        grid=(N, RB),
        in_specs=in_specs,
        out_specs=pl.BlockSpec((None, TR, Wo, cout), lambda n, r: (n, r, 0, 0)),
        scratch_shapes=scratch_shapes,
        compiler_params=pltpu.CompilerParams(
            dimension_semantics=("parallel",
                                 "arbitrary" if pad > 0 else "parallel")),
    )(*args)
    return out


def conv_bn_act(x, w, scale, shift, stride, pad, act=None, residual=None):
    """Dispatch: stride-1 -> fused direct conv; stride-2 -> space-to-depth + fused."""
    if stride == 1:
        return conv_bn_act_fused(x, w, scale, shift, pad, act=act, residual=residual)
    assert stride == 2 and residual is None
    kh, kw, _, _ = w.shape
    if kh == 1 and kw == 1:
        assert pad == 0
        # 1x1 stride-2 downsample: subsample the even phase, then a pure matmul conv.
        return conv_bn_act_fused(x[:, ::2, ::2, :], w, scale, shift, 0, act=act)
    xs = _space_to_depth(x, pad)
    return conv_bn_act_fused(xs, _s2d_weight(w), scale, shift, 0, act=act)


# --------------------------------- maxpool ----------------------------------

def _make_maxpool_kernel(C, Wo, TR):
    def kernel(x_ref, o_ref):
        rb = pl.program_id(1)
        h0 = pl.multiple_of(rb * TR, TR)
        m = None
        for di in range(2):
            for ph in range(2):
                if 2 * di + ph > 2:
                    continue
                for dj in range(2):
                    for pw in range(2):
                        if 2 * dj + pw > 2:
                            continue
                        g = ph * 2 + pw
                        v = x_ref[pl.ds(h0 + di, TR), pl.ds(dj, Wo),
                                  pl.ds(g * C, C)]
                        m = v if m is None else jnp.maximum(m, v)
        o_ref[...] = m
    return kernel


def maxpool_3x3_s2_p1(x):
    """MaxPool2d(kernel=3, stride=2, padding=1) as a direct Pallas kernel (via s2d)."""
    N, H, W, C = x.shape
    Ho = (H + 2 - 3) // 2 + 1
    Wo = (W + 2 - 3) // 2 + 1
    neg = float(jnp.finfo(jnp.bfloat16).min)
    xs = _space_to_depth(x, pad=1, pad_value=neg)
    _, Hs, Ws, C4 = xs.shape
    TR = _pick_tr(Ho, Wo, 4 * C, C)
    RB = Ho // TR
    return pl.pallas_call(
        _make_maxpool_kernel(C, Wo, TR),
        out_shape=jax.ShapeDtypeStruct((N, Ho, Wo, C), x.dtype),
        grid=(N, RB),
        in_specs=[pl.BlockSpec((None, Hs, Ws, C4), lambda n, r: (n, 0, 0, 0))],
        out_specs=pl.BlockSpec((None, TR, Wo, C), lambda n, r: (n, r, 0, 0)),
        compiler_params=pltpu.CompilerParams(
            dimension_semantics=("parallel", "parallel")),
    )(xs)


# ----------------------------------- head -----------------------------------

def _head_kernel(f_ref, w_ref, b_ref, o_ref):
    pooled = jnp.mean(f_ref[...].astype(jnp.float32), axis=1)      # AdaptiveAvgPool2d((1,1))
    logits = jnp.dot(pooled, w_ref[...], preferred_element_type=jnp.float32)
    logits = logits + b_ref[...]
    o_ref[...] = 1.0 / (1.0 + jnp.exp(-logits))                    # sigmoid


def head(x, fc_w, fc_b):
    N, H, W, C = x.shape
    feat = x.reshape(N, H * W, C)
    nc = fc_w.shape[1]
    return pl.pallas_call(
        _head_kernel,
        out_shape=jax.ShapeDtypeStruct((N, nc), jnp.float32),
        grid=(1,),
        in_specs=[pl.BlockSpec((N, H * W, C), lambda i: (0, 0, 0)),
                  pl.BlockSpec((C, nc), lambda i: (0, 0)),
                  pl.BlockSpec((1, nc), lambda i: (0, 0))],
        out_specs=pl.BlockSpec((N, nc), lambda i: (0, 0)),
    )(feat, fc_w, fc_b.reshape(1, nc))


# ------------------------------- parameters ---------------------------------

def _conv_weight(key, kh, kw, cin, cout):
    fan_in = kh * kw * cin
    std = math.sqrt(2.0 / fan_in)                    # kaiming_normal_ (fan_in)
    return std * jax.random.normal(key, (kh, kw, cin, cout), jnp.float32)


def _bn_params(key, c):
    kg, kb = jax.random.split(key)
    gamma = 1.0 + 0.1 * jax.random.normal(kg, (c,), jnp.float32)
    beta = 0.1 * jax.random.normal(kb, (c,), jnp.float32)
    running_mean = jnp.zeros((c,), jnp.float32)
    running_var = jnp.ones((c,), jnp.float32)
    scale = gamma / jnp.sqrt(running_var + _EPS)
    shift = beta - running_mean * scale
    return scale, shift


def _make_block_params(key, cin, planes, stride):
    ks = jax.random.split(key, 6)
    p = {
        'stride': stride,
        'w1': _conv_weight(ks[0], 3, 3, cin, planes),
        'bn1': _bn_params(ks[1], planes),
        'w2': _conv_weight(ks[2], 3, 3, planes, planes),
        'bn2': _bn_params(ks[3], planes),
        'down': None,
    }
    if stride != 1 or cin != planes:
        p['down'] = (_conv_weight(ks[4], 1, 1, cin, planes), _bn_params(ks[5], planes))
    return p


def init_resnet_params(key, layer_list, num_classes, num_channels=3):
    keys = jax.random.split(key, 5)
    params = {
        'conv1_w': _conv_weight(keys[0], 7, 7, num_channels, 64),
        'bn1': _bn_params(keys[1], 64),
    }
    layers = []
    in_ch = 64
    planes_list = [64, 128, 256, 512]
    strides = [1, 2, 2, 2]
    lkeys = jax.random.split(keys[2], 4)
    for li, (blocks, planes, stride) in enumerate(zip(layer_list, planes_list, strides)):
        bkeys = jax.random.split(lkeys[li], blocks)
        layer = []
        for bi in range(blocks):
            s = stride if bi == 0 else 1
            layer.append(_make_block_params(bkeys[bi], in_ch, planes, s))
            in_ch = planes                           # BasicBlock expansion = 1
        layers.append(layer)
    params['layers'] = layers
    params['fc_w'] = math.sqrt(2.0 / 512) * jax.random.normal(
        keys[3], (512, num_classes), jnp.float32)    # kaiming_normal_ on Linear
    params['fc_b'] = 0.01 * jax.random.normal(keys[4], (num_classes,), jnp.float32)
    return params


# --------------------------------- forward ----------------------------------

def _block_forward(x, p, act):
    stride = p['stride']
    if p['down'] is not None:
        wd, bnd = p['down']
        identity = conv_bn_act(x, wd, *bnd, stride=stride, pad=0, act=None)
    else:
        identity = x
    out = conv_bn_act(x, p['w1'], *p['bn1'], stride=stride, pad=1, act=act)
    out = conv_bn_act(out, p['w2'], *p['bn2'], stride=1, pad=1,
                      act=act, residual=identity)
    return out


def resnet_forward(x_nchw, params, act='celu'):
    x = jnp.transpose(x_nchw, (0, 2, 3, 1)).astype(_ACT_DTYPE)   # NCHW -> NHWC bf16
    x = conv_bn_act(x, params['conv1_w'], *params['bn1'], stride=2, pad=3, act=act)
    x = maxpool_3x3_s2_p1(x)
    for layer in params['layers']:
        for bp in layer:
            x = _block_forward(x, bp, act)
    return head(x, params['fc_w'], params['fc_b'])


# ----------------------------------- main ------------------------------------

if __name__ == "__main__":
    key = jax.random.PRNGKey(0)
    kx, kp = jax.random.split(key)
    # small, shape-consistent input: batch=2, channels=3, spatial=32 (NCHW like PyTorch)
    x = jax.random.normal(kx, (2, 3, 32, 32), jnp.float32)
    params = init_resnet_params(kp, layer_list=[1, 1, 1, 1], num_classes=10)
    out = resnet_forward(x, params, act='celu')
    out = jax.block_until_ready(out)
    assert out.shape == (2, 10), out.shape
    assert bool(jnp.all(jnp.isfinite(out)))
    assert bool(jnp.all((out >= 0.0) & (out <= 1.0)))   # sigmoid output
    print("KERNEL_OK")
</pallas_src>

<mosaic_0001>
module attributes {stable_mosaic.version = 11 : i64} {
  func.func @kernel(%arg0: i32, %arg1: i32, %arg2: memref<1x19x19x12xbf16, #tpu.memory_space<vmem>>, %arg3: memref<192x64xbf16, #tpu.memory_space<vmem>>, %arg4: memref<1x64xf32, #tpu.memory_space<vmem>>, %arg5: memref<1x16x16x64xbf16, #tpu.memory_space<vmem>>) attributes {dimension_semantics = [#tpu.dimension_semantics<parallel>, #tpu.dimension_semantics<parallel>], iteration_bounds = array<i64: 2, 1>, scalar_prefetch = 0 : i64, scratch_operands = 0 : i64, tpu.core_type = #tpu.core_type<tc>, window_params = [{transform_indices = @transform_0, window_bounds = array<i64: 1, 19, 19, 12>}, {pipeline_mode = #tpu.pipeline_mode<synchronous>, transform_indices = @transform_1, window_bounds = array<i64: 192, 64>}, {pipeline_mode = #tpu.pipeline_mode<synchronous>, transform_indices = @transform_2, window_bounds = array<i64: 1, 64>}, {transform_indices = @transform_3, window_bounds = array<i64: 1, 16, 16, 64>}]} {
    %c16_i32 = arith.constant 16 : i32
    %0 = arith.muli %arg1, %c16_i32 : i32
    %1 = tpu.assume_multiple %0, 16 : i32
    %c0_i32 = arith.constant 0 : i32
    %2 = arith.addi %1, %c0_i32 : i32
    %c0 = arith.constant 0 : index
    %3 = arith.index_cast %2 : i32 to index
    %c0_0 = arith.constant 0 : index
    %c0_1 = arith.constant 0 : index
    %4 = vector.load %arg2[%c0, %3, %c0_0, %c0_1] : memref<1x19x19x12xbf16, #tpu.memory_space<vmem>>, vector<1x16x16x12xbf16>
    %5 = vector.shape_cast %4 : vector<1x16x16x12xbf16> to vector<16x16x12xbf16>
    %c0_i32_2 = arith.constant 0 : i32
    %6 = arith.addi %1, %c0_i32_2 : i32
    %c0_3 = arith.constant 0 : index
    %7 = arith.index_cast %6 : i32 to index
    %c1 = arith.constant 1 : index
    %c0_4 = arith.constant 0 : index
    %8 = vector.load %arg2[%c0_3, %7, %c1, %c0_4] : memref<1x19x19x12xbf16, #tpu.memory_space<vmem>>, vector<1x16x16x12xbf16>
    %9 = vector.shape_cast %8 : vector<1x16x16x12xbf16> to vector<16x16x12xbf16>
    %c0_i32_5 = arith.constant 0 : i32
    %10 = arith.addi %1, %c0_i32_5 : i32
    %c0_6 = arith.constant 0 : index
    %11 = arith.index_cast %10 : i32 to index
    %c2 = arith.constant 2 : index
    %c0_7 = arith.constant 0 : index
    %12 = vector.load %arg2[%c0_6, %11, %c2, %c0_7] : memref<1x19x19x12xbf16, #tpu.memory_space<vmem>>, vector<1x16x16x12xbf16>
    %13 = vector.shape_cast %12 : vector<1x16x16x12xbf16> to vector<16x16x12xbf16>
    %c0_i32_8 = arith.constant 0 : i32
    %14 = arith.addi %1, %c0_i32_8 : i32
    %c0_9 = arith.constant 0 : index
    %15 = arith.index_cast %14 : i32 to index
    %c3 = arith.constant 3 : index
    %c0_10 = arith.constant 0 : index
    %16 = vector.load %arg2[%c0_9, %15, %c3, %c0_10] : memref<1x19x19x12xbf16, #tpu.memory_space<vmem>>, vector<1x16x16x12xbf16>
    %17 = vector.shape_cast %16 : vector<1x16x16x12xbf16> to vector<16x16x12xbf16>
    %c1_i32 = arith.constant 1 : i32
    %18 = arith.addi %1, %c1_i32 : i32
    %c0_11 = arith.constant 0 : index
    %19 = arith.index_cast %18 : i32 to index
    %c0_12 = arith.constant 0 : index
    %c0_13 = arith.constant 0 : index
    %20 = vector.load %arg2[%c0_11, %19, %c0_12, %c0_13] : memref<1x19x19x12xbf16, #tpu.memory_space<vmem>>, vector<1x16x16x12xbf16>
    %21 = vector.shape_cast %20 : vector<1x16x16x12xbf16> to vector<16x16x12xbf16>
    %c1_i32_14 = arith.constant 1 : i32
    %22 = arith.addi %1, %c1_i32_14 : i32
    %c0_15 = arith.constant 0 : index
    %23 = arith.index_cast %22 : i32 to index
    %c1_16 = arith.constant 1 : index
    %c0_17 = arith.constant 0 : index
    %24 = vector.load %arg2[%c0_15, %23, %c1_16, %c0_17] : memref<1x19x19x12xbf16, #tpu.memory_space<vmem>>, vector<1x16x16x12xbf16>
    %25 = vector.shape_cast %24 : vector<1x16x16x12xbf16> to vector<16x16x12xbf16>
    %c1_i32_18 = arith.constant 1 : i32
    %26 = arith.addi %1, %c1_i32_18 : i32
    %c0_19 = arith.constant 0 : index
    %27 = arith.index_cast %26 : i32 to index
    %c2_20 = arith.constant 2 : index
    %c0_21 = arith.constant 0 : index
    %28 = vector.load %arg2[%c0_19, %27, %c2_20, %c0_21] : memref<1x19x19x12xbf16, #tpu.memory_space<vmem>>, vector<1x16x16x12xbf16>
    %29 = vector.shape_cast %28 : vector<1x16x16x12xbf16> to vector<16x16x12xbf16>
    %c1_i32_22 = arith.constant 1 : i32
    %30 = arith.addi %1, %c1_i32_22 : i32
    %c0_23 = arith.constant 0 : index
    %31 = arith.index_cast %30 : i32 to index
    %c3_24 = arith.constant 3 : index
    %c0_25 = arith.constant 0 : index
    %32 = vector.load %arg2[%c0_23, %31, %c3_24, %c0_25] : memref<1x19x19x12xbf16, #tpu.memory_space<vmem>>, vector<1x16x16x12xbf16>
    %33 = vector.shape_cast %32 : vector<1x16x16x12xbf16> to vector<16x16x12xbf16>
    %c2_i32 = arith.constant 2 : i32
    %34 = arith.addi %1, %c2_i32 : i32
    %c0_26 = arith.constant 0 : index
    %35 = arith.index_cast %34 : i32 to index
    %c0_27 = arith.constant 0 : index
    %c0_28 = arith.constant 0 : index
    %36 = vector.load %arg2[%c0_26, %35, %c0_27, %c0_28] : memref<1x19x19x12xbf16, #tpu.memory_space<vmem>>, vector<1x16x16x12xbf16>
    %37 = vector.shape_cast %36 : vector<1x16x16x12xbf16> to vector<16x16x12xbf16>
    %c2_i32_29 = arith.constant 2 : i32
    %38 = arith.addi %1, %c2_i32_29 : i32
    %c0_30 = arith.constant 0 : index
    %39 = arith.index_cast %38 : i32 to index
    %c1_31 = arith.constant 1 : index
    %c0_32 = arith.constant 0 : index
    %40 = vector.load %arg2[%c0_30, %39, %c1_31, %c0_32] : memref<1x19x19x12xbf16, #tpu.memory_space<vmem>>, vector<1x16x16x12xbf16>
    %41 = vector.shape_cast %40 : vector<1x16x16x12xbf16> to vector<16x16x12xbf16>
    %c2_i32_33 = arith.constant 2 : i32
    %42 = arith.addi %1, %c2_i32_33 : i32
    %c0_34 = arith.constant 0 : index
    %43 = arith.index_cast %42 : i32 to index
    %c2_35 = arith.constant 2 : index
    %c0_36 = arith.constant 0 : index
    %44 = vector.load %arg2[%c0_34, %43, %c2_35, %c0_36] : memref<1x19x19x12xbf16, #tpu.memory_space<vmem>>, vector<1x16x16x12xbf16>
    %45 = vector.shape_cast %44 : vector<1x16x16x12xbf16> to vector<16x16x12xbf16>
    %c2_i32_37 = arith.constant 2 : i32
    %46 = arith.addi %1, %c2_i32_37 : i32
    %c0_38 = arith.constant 0 : index
    %47 = arith.index_cast %46 : i32 to index
    %c3_39 = arith.constant 3 : index
    %c0_40 = arith.constant 0 : index
    %48 = vector.load %arg2[%c0_38, %47, %c3_39, %c0_40] : memref<1x19x19x12xbf16, #tpu.memory_space<vmem>>, vector<1x16x16x12xbf16>
    %49 = vector.shape_cast %48 : vector<1x16x16x12xbf16> to vector<16x16x12xbf16>
    %c3_i32 = arith.constant 3 : i32
    %50 = arith.addi %1, %c3_i32 : i32
    %c0_41 = arith.constant 0 : index
    %51 = arith.index_cast %50 : i32 to index
    %c0_42 = arith.constant 0 : index
    %c0_43 = arith.constant 0 : index
    %52 = vector.load %arg2[%c0_41, %51, %c0_42, %c0_43] : memref<1x19x19x12xbf16, #tpu.memory_space<vmem>>, vector<1x16x16x12xbf16>
    %53 = vector.shape_cast %52 : vector<1x16x16x12xbf16> to vector<16x16x12xbf16>
    %c3_i32_44 = arith.constant 3 : i32
    %54 = arith.addi %1, %c3_i32_44 : i32
    %c0_45 = arith.constant 0 : index
    %55 = arith.index_cast %54 : i32 to index
    %c1_46 = arith.constant 1 : index
    %c0_47 = arith.constant 0 : index
    %56 = vector.load %arg2[%c0_45, %55, %c1_46, %c0_47] : memref<1x19x19x12xbf16, #tpu.memory_space<vmem>>, vector<1x16x16x12xbf16>
    %57 = vector.shape_cast %56 : vector<1x16x16x12xbf16> to vector<16x16x12xbf16>
    %c3_i32_48 = arith.constant 3 : i32
    %58 = arith.addi %1, %c3_i32_48 : i32
    %c0_49 = arith.constant 0 : index
    %59 = arith.index_cast %58 : i32 to index
    %c2_50 = arith.constant 2 : index
    %c0_51 = arith.constant 0 : index
    %60 = vector.load %arg2[%c0_49, %59, %c2_50, %c0_51] : memref<1x19x19x12xbf16, #tpu.memory_space<vmem>>, vector<1x16x16x12xbf16>
    %61 = vector.shape_cast %60 : vector<1x16x16x12xbf16> to vector<16x16x12xbf16>
    %c3_i32_52 = arith.constant 3 : i32
    %62 = arith.addi %1, %c3_i32_52 : i32
    %c0_53 = arith.constant 0 : index
    %63 = arith.index_cast %62 : i32 to index
    %c3_54 = arith.constant 3 : index
    %c0_55 = arith.constant 0 : index
    %64 = vector.load %arg2[%c0_53, %63, %c3_54, %c0_55] : memref<1x19x19x12xbf16, #tpu.memory_space<vmem>>, vector<1x16x16x12xbf16>
    %65 = vector.shape_cast %64 : vector<1x16x16x12xbf16> to vector<16x16x12xbf16>
    %66 = tpu.concatenate %5, %9, %13, %17, %21, %25, %29, %33, %37, %41, %45, %49, %53, %57, %61, %65 in 2 : vector<16x16x12xbf16>, vector<16x16x12xbf16>, vector<16x16x12xbf16>, vector<16x16x12xbf16>, vector<16x16x12xbf16>, vector<16x16x12xbf16>, vector<16x16x12xbf16>, vector<16x16x12xbf16>, vector<16x16x12xbf16>, vector<16x16x12xbf16>, vector<16x16x12xbf16>, vector<16x16x12xbf16>, vector<16x16x12xbf16>, vector<16x16x12xbf16>, vector<16x16x12xbf16>, vector<16x16x12xbf16> -> vector<16x16x192xbf16>
    %67 = vector.shape_cast %66 : vector<16x16x192xbf16> to vector<256x192xbf16>
    %c0_56 = arith.constant 0 : index
    %c0_57 = arith.constant 0 : index
    %68 = vector.load %arg3[%c0_56, %c0_57] : memref<192x64xbf16, #tpu.memory_space<vmem>>, vector<192x64xbf16>
    %cst = arith.constant dense<0.000000e+00> : vector<256x64xf32>
    %69 = tpu.matmul %67, %68, %cst {dimension_numbers = #tpu.dot_dimension_numbers<[1], [0], [0], [1], [0, 0, 1, 1], [], []>} : vector<256x192xbf16>, vector<192x64xbf16>, vector<256x64xf32> -> vector<256x64xf32>
    %c0_58 = arith.constant 0 : index
    %c0_59 = arith.constant 0 : index
    %70 = vector.load %arg4[%c0_58, %c0_59] : memref<1x64xf32, #tpu.memory_space<vmem>>, vector<1x64xf32>
    %71 = vector.broadcast %70 : vector<1x64xf32> to vector<256x64xf32>
    %72 = arith.addf %69, %71 : vector<256x64xf32>
    %cst_60 = arith.constant 0.000000e+00 : f32
    %73 = vector.broadcast %cst_60 : f32 to vector<256x64xf32>
    %74 = arith.cmpf ogt, %72, %73 : vector<256x64xf32>
    %cst_61 = arith.constant 0.000000e+00 : f32
    %75 = vector.broadcast %cst_61 : f32 to vector<256x64xf32>
    %76 = arith.minimumf %72, %75 : vector<256x64xf32>
    %77 = math.exp %76 : vector<256x64xf32>
    %cst_62 = arith.constant 1.000000e+00 : f32
    %78 = vector.broadcast %cst_62 : f32 to vector<256x64xf32>
    %79 = arith.subf %77, %78 : vector<256x64xf32>
    %80 = arith.select %74, %72, %79 : vector<256x64xi1>, vector<256x64xf32>
    %81 = vector.shape_cast %80 : vector<256x64xf32> to vector<16x16x64xf32>
    %82 = arith.truncf %81 : vector<16x16x64xf32> to vector<16x16x64xbf16>
    %c0_63 = arith.constant 0 : index
    %c0_64 = arith.constant 0 : index
    %c0_65 = arith.constant 0 : index
    %c0_66 = arith.constant 0 : index
    %83 = vector.load %arg5[%c0_63, %c0_64, %c0_65, %c0_66] : memref<1x16x16x64xbf16, #tpu.memory_space<vmem>>, vector<1x16x16x64xbf16>
    %84 = vector.shape_cast %83 : vector<1x16x16x64xbf16> to vector<16x16x64xbf16>
    %85 = vector.shape_cast %82 : vector<16x16x64xbf16> to vector<1x16x16x64xbf16>
    tpu.vector_store %arg5[%c0_63, %c0_64, %c0_65, %c0_66], %85 {strides = array<i32>} : memref<1x16x16x64xbf16, #tpu.memory_space<vmem>>, vector<1x16x16x64xbf16>,
    return
  }
  func.func @transform_0(%arg0: i32, %arg1: i32) -> (i32, i32, i32, i32) {
    %c0_i32 = arith.constant 0 : i32
    %c0_i32_0 = arith.constant 0 : i32
    %c0_i32_1 = arith.constant 0 : i32
    %c0_i32_2 = arith.constant 0 : i32
    return %arg0, %c0_i32, %c0_i32_0, %c0_i32_1 : i32, i32, i32, i32
  }
  func.func @transform_1(%arg0: i32, %arg1: i32) -> (i32, i32) {
    %c0_i32 = arith.constant 0 : i32
    %c0_i32_0 = arith.constant 0 : i32
    %c0_i32_1 = arith.constant 0 : i32
    return %c0_i32, %c0_i32_0 : i32, i32
  }
  func.func @transform_2(%arg0: i32, %arg1: i32) -> (i32, i32) {
    %c0_i32 = arith.constant 0 : i32
    %c0_i32_0 = arith.constant 0 : i32
    %c0_i32_1 = arith.constant 0 : i32
    return %c0_i32, %c0_i32_0 : i32, i32
  }
  func.func @transform_3(%arg0: i32, %arg1: i32) -> (i32, i32, i32, i32) {
    %c0_i32 = arith.constant 0 : i32
    %c0_i32_0 = arith.constant 0 : i32
    %c0_i32_1 = arith.constant 0 : i32
    return %arg0, %arg1, %c0_i32, %c0_i32_0 : i32, i32, i32, i32
  }
}

</mosaic_0001>

<bundles_post_ra>
// kernel: tpu_custom_call.1
= control target key start
LH: loop header
LB: loop body
LE: loop exit
PB: predicated region body
PF: predicated region fallthrough
CT: control target
= control target key end

     0   :  { %8 = vsyncpa [#allocation3], 0  ;;  %s9253_s0 = inlined_call_operand.vmem [shape: bf16[2,19,19,12], index: 0, kind: input, shape index: {}]   ;;  %s9254_s1 = inlined_call_operand.vmem [shape: bf16[192,64], index: 1, kind: input, shape index: {}]   ;;  %s9255_s2 = inlined_call_operand.vmem [shape: f32[1,64], index: 2, kind: input, shape index: {}]   ;;  %s9256_s3 = inlined_call_operand.hbm [shape: bf16[2,16,16,64], index: 3, kind: output, shape index: {}]  }
   0x1   :  { %10 = vsyncpa [#allocation3 + $0x1], 0  ;;  %s6404_s12 = smov 0   ;;  %s6406_s13 = smov 0  }
   0x2   :  { %s6408_s14 = smov 0   ;;  %s6410_s15 = smov 0  }
   0x3   :  { %s6412_s16 = smov 0   ;;  %s6414_s17 = smov 0  }
   0x4 LB: > { %s5213_s18 = sadd.s32 4294967295, %s6364_s17   ;;  %s5214_s19 = sadd.s32 4294967294, %s6364_s17   ;;  %s6364_s17 = sphi %s6414_s17, %s16_s17   ;;  %s6360_s16 = sphi %s6412_s16, %s9430_s16   ;;  %s6356_s15 = sphi %s6410_s15, %s9429_s15   ;;  %s6352_s14 = sphi %s6408_s14, %s9428_s14   ;;  %s6348_s13 = sphi %s6406_s13, %s9427_s13   ;;  %s6344_s12 = sphi %s6404_s12, %s9426_s12  }
   0x5   : > { %s28_s20 = sadd.s32 1, %s6360_s16  ;;  %s105_s21 = sadd.s32 1, %s6352_s14 }
   0x6   : > { %p30_p0 = scmp.ge.s32.totalorder %s28_s20, 2  ;;  %p115_p1 = scmp.ne.s32.totalorder %s6352_s14, %s6348_s13 }
   0x7   : > { %p116_p2 = scmp.eq.s32.totalorder %s5213_s18, 1  ;;  %p121_p3 = scmp.ne.s32.totalorder %s6348_s13, %s6344_s12 }
   0x8   : > { %s9432_s20 = smov (%p30_p0, %s28_s20), 0  ;;  %p122_p5 = scmp.eq.s32.totalorder %s5214_s19, 1 }
   0x9   : > { %p6444_p4 = por %p116_p2, %p115_p1  ;;  %s100_s23 = ssub.s32 %s6360_s16, %s9432_s20 }
   0xa   : > { %p5217_p6 = scmp.ge.s32.totalorder %s6364_s17, 1  ;;  %p103_p7 = scmp.eq.s32.totalorder %s100_s23, 0 }
   0xb   : > { %p6451_p8 = por %p122_p5, %p121_p3  ;;  %p154_p9 = scmp.lt.s32.totalorder %s6364_s17, 3 }
   0xc   : > { %s6457_s25 = scalar_select %p103_p7, %s6352_s14, %s105_s21  }
   0xd   : > { %p155_p10 = pnand %p5217_p6, %p154_p9 }
   0xf   : > { %158 = sbr.rel (%p155_p10) target bundleno = 888 (0x378), region = 32 }
  0x16   : > { %p178_p11 = scmp.lt.s32.totalorder %s6356_s15, 1  ;;  %vm649_vm0 = vsmask.f32 7424  ;;  %s6366_s4 = smov 12   ;;  %vm9278_vm1 = vcmask 1046528   ;;  %vm3948_vm3 = vcmask 97280  }
  0x17   : > { %s6367_s5 = smov 24   ;;  %vm1051_vm2 = vsmask.f32 6400  ;;  %s6368_s6 = smov 36   ;;  %vm9276_vm4 = vcmask 195584   ;;  %vm9275_vm5 = vcmask 293888  }
  0x18   : > { %s179_s26 = scalar_select %p178_p11, %s6356_s15, 1  ;;  %vm9277_vm6 = vcmask 392192   ;;  %vm4080_vm7 = vcmask 490496   ;;  %vm4113_vm8 = vcmask 588800   ;;  %vm4294_vm9 = vcmask 31744  }
  0x19   : > { %s6369_s7 = smov 48   ;;  %s6370_s8 = smov 60   ;;  %vm4146_vm10 = vcmask 687104   ;;  %vm4327_vm11 = vcmask 130048   ;;  %vm4360_vm12 = vcmask 228352   ;;  %vm4179_vm13 = vcmask 785408  }
  0x1a   : > { %s5871_s27 = smul.u32 228, %s179_s26  ;;  %s6371_s9 = smov 120   ;;  %vm4393_vm14 = vcmask 326656   ;;  %vm4212_vm15 = vcmask 883712  }
  0x1b   : > { %s6372_s10 = smov 4   ;;  %s6373_s11 = smov 72  }
  0x1c   : > { %s6464_s30 = scalar_lea.vmem %s9253_s0, %s5871_s27  ;;  %s6374_s18 = smov 16  }
  0x1d   : > { %v193_v0 = vld [vmem:[%s6464_s30 + $0x18] sm:$0xf]  ;;  %v6468_v1 = vld [vmem:[%s6464_s30 + $0x1c] sm:$0xf]  ;;  %v189_v4 = vld [vmem:[%s6464_s30] sm:$0xf] }
  0x1e   : > { %v6471_v2 = vcombine.low %v193_v0, %v6468_v1  ;;  %v6474_v3 = vld [vmem:[%s6464_s30 + $0x20] ss:$0 sps:$4 sm:$0x11]   ;;  %v6478_v5 = vld [vmem:[%s6464_s30 + $0x4] sm:$0xf]  ;;  %s6375_s19 = smov 84  }
  0x1f   : > { %v195_v6 = vld [vmem:[%s6464_s30 + $0x24] sm:$0xf]  ;;  %v682_v9 = vshll.u32 %v6474_v3, 16  ;;  %v6485_v10 = vcombine.low %v189_v4, %v6478_v5  ;;  %v6488_v11 = vld [vmem:[%s6464_s30 + $0x8] ss:$0 sps:$4 sm:$0x11]  }
  0x20   : > { %v675_v7 = vshrl.u32 %v6471_v2, 16  ;;  %v677_v8 = vshll.u32 %v6471_v2, 16  ;;  %v6491_v12 = vld [vmem:[%s6464_s30 + $0x28] sm:$0xf]  ;;  %v191_v13 = vld [vmem:[%s6464_s30 + $0xc] sm:$0xf] }
  0x21   : > { %9283 = vst [vmem:[#allocation5_spill] sm:$0xff] %v6485_v10  ;;  %v684_v15 = vrot.slane %v682_v9, 1  ;;  %v651_v16 = vshrl.u32 %v6485_v10, 16  ;;  %v653_v17 = vshll.u32 %v6485_v10, 16  ;;  %v6497_v18 = vld [vmem:[%s6464_s30 + $0x10] sm:$0xf]  ;;  %v6501_v20 = vcombine.low %v195_v6, %v6491_v12 }
  0x22   : > { %v679_v14 = vrot.slane %v677_v8, 1  ;;  %v658_v19 = vshll.u32 %v6488_v11, 16  ;;  %v6504_v21 = vld [vmem:[%s6464_s30 + $0x2c] ss:$0 sps:$4 sm:$0x11]   ;;  %v6507_v22 = vcombine.low %v191_v13, %v6497_v18  ;;  %s6376_s21 = smov 28  }
  0x23   : > { %v655_v24 = vrot.slane %v653_v17, 1  ;;  %v6510_v25 = vld [vmem:[%s6464_s30 + $0x14] ss:$0 sps:$4 sm:$0x11]   ;;  %v199_v26 = vld [vmem:[%s6464_s30 + $0x3c] sm:$0xf] }
  0x24   : > { %9284 = vst [vmem:[#allocation6_spill] sm:$0xff] %v6507_v22  ;;  %v680_v23 = vor.u32 %v679_v14, %v675_v7  ;;  %v660_v27 = vrot.slane %v658_v19, 1  ;;  %v687_v28 = vshrl.u32 %v6501_v20, 16  ;;  %v689_v29 = vshll.u32 %v6501_v20, 16  ;;  %v6517_v31 = vld [vmem:[%s6464_s30 + $0x40] sm:$0xf] }
  0x25   : > { %v694_v30 = vshll.u32 %v6504_v21, 16  ;;  %v656_v33 = vor.u32 %v655_v24, %v651_v16  ;;  %v663_v34 = vshrl.u32 %v6507_v22, 16  ;;  %v665_v35 = vshll.u32 %v6507_v22, 16  ;;  %v197_v36 = vld [vmem:[%s6464_s30 + $0x30] sm:$0xf]  ;;  %s6377_s23 = smov 96  }
  0x26   : > { %v685_v32 = vsel %vm649_vm0, %v680_v23, %v684_v15  ;;  %v691_v37 = vrot.slane %v689_v29, 1  ;;  %v670_v39 = vshll.u32 %v6510_v25, 16  ;;  %v6526_v40 = vcombine.low %v199_v26, %v6517_v31  ;;  %v6529_v41 = vld [vmem:[%s6464_s30 + $0x44] ss:$0 sps:$4 sm:$0x11]   ;;  %s6378_s26 = smov 40  }
  0x27   : > { %846 = vrot.lane.b32.xlu1 %v685_v32, %s6366_s4  ;;  %v696_v38 = vrot.slane %v694_v30, 1  ;;  %v661_v42 = vsel %vm649_vm0, %v656_v33, %v660_v27  ;;  %v667_v43 = vrot.slane %v665_v35, 1  ;;  %v6533_v44 = vld [vmem:[%s6464_s30 + $0x34] sm:$0xf]  ;;  %v718_v51 = vshll.u32 %v6529_v41, 16  ;;  %s6379_s27 = smov 108  }
  0x28   : > { %842 = vrot.lane.b32.xlu0 %v661_v42, %s6366_s4  ;;  %v692_v45 = vor.u32 %v691_v37, %v687_v28  ;;  %v672_v46 = vrot.slane %v670_v39, 1  ;;  %v711_v47 = vshrl.u32 %v6526_v40, 16  ;;  %v713_v48 = vshll.u32 %v6526_v40, 16  ;;  %v6539_v49 = vld [vmem:[%s6464_s30 + $0x38] ss:$0 sps:$4 sm:$0x11]  }
  0x29   : > { %v668_v50 = vor.u32 %v667_v43, %v663_v34  ;;  %v6543_v52 = vcombine.low %v197_v36, %v6533_v44  ;;  %v203_v53 = vld [vmem:[%s6464_s30 + $0x54] sm:$0xf]  ;;  %v6547_v54 = vld [vmem:[%s6464_s30 + $0x58] sm:$0xf]  ;;  %v706_v57 = vshll.u32 %v6539_v49, 16  ;;  %v720_v61 = vrot.slane %v718_v51, 1 }
  0x2a   : > { %v697_v55 = vsel %vm649_vm0, %v692_v45, %v696_v38  ;;  %v715_v56 = vrot.slane %v713_v48, 1  ;;  %v6552_v58 = vcombine.low %v203_v53, %v6547_v54  ;;  %v201_v59 = vld [vmem:[%s6464_s30 + $0x48] sm:$0xf]  ;;  %v6560_v0 = vld [vmem:[%s6464_s30 + $0x5c] ss:$0 sps:$4 sm:$0x11]  }
  0x2b   : > { %848 = vrot.lane.b32.xlu1 %v697_v55, %s6366_s4  ;;  %v673_v60 = vsel %vm649_vm0, %v668_v50, %v672_v46  ;;  %v699_v62 = vshrl.u32 %v6543_v52, 16  ;;  %v701_v63 = vshll.u32 %v6543_v52, 16  ;;  %v708_v6 = vrot.slane %v706_v57, 1  ;;  %v6566_v9 = vld [vmem:[%s6464_s30 + $0x4c] sm:$0xf]  ;;  %s6380_s28 = smov 52  }
  0x2c   : > { %844 = vrot.lane.b32.xlu0 %v673_v60, %s6366_s4  ;;  %v716_v4 = vor.u32 %v715_v56, %v711_v47  ;;  %v735_v7 = vshrl.u32 %v6552_v58, 16  ;;  %v737_v8 = vshll.u32 %v6552_v58, 16  ;;  %v742_v14 = vshll.u32 %v6560_v0, 16  ;;  %v207_v16 = vld [vmem:[%s6464_s30 + $0x6c] sm:$0xf] }
  0x2d   : > { %v703_v13 = vrot.slane %v701_v63, 1  ;;  %v6570_v15 = vcombine.low %v201_v59, %v6566_v9  ;;  %v6575_v23 = vld [vmem:[%s6464_s30 + $0x50] ss:$0 sps:$4 sm:$0x11]   ;;  %v205_v35 = vld [vmem:[%s6464_s30 + $0x60] sm:$0xf] }
  0x2e   : > { %v721_v17 = vsel %vm649_vm0, %v716_v4, %v720_v61  ;;  %v739_v19 = vrot.slane %v737_v8, 1  ;;  %v6578_v24 = vld [vmem:[%s6464_s30 + $0x70] sm:$0xf]  ;;  %v744_v27 = vrot.slane %v742_v14, 1  ;;  %v730_v32 = vshll.u32 %v6575_v23, 16 }
  0x2f   : > { %852 = vrot.lane.b32.xlu1 %v721_v17, %s6366_s4  ;;  %v704_v26 = vor.u32 %v703_v13, %v699_v62  ;;  %v723_v28 = vshrl.u32 %v6570_v15, 16  ;;  %v725_v29 = vshll.u32 %v6570_v15, 16  ;;  %v6585_v33 = vcombine.low %v207_v16, %v6578_v24  ;;  %v6588_v34 = vld [vmem:[%s6464_s30 + $0x74] ss:$0 sps:$4 sm:$0x11]  }
  0x30   : > { %v740_v30 = vor.u32 %v739_v19, %v735_v7  ;;  %v6593_v38 = vld [vmem:[%s6464_s30 + $0x64] sm:$0xf]  ;;  %v732_v42 = vrot.slane %v730_v32, 1  ;;  %v6600_v46 = vld [vmem:[%s6464_s30 + $0x68] ss:$0 sps:$4 sm:$0x11]  }
  0x31   : > { %9285 = vst [vmem:[#allocation7_spill] sm:$0xff] %v6585_v33  ;;  %v709_v36 = vsel %vm649_vm0, %v704_v26, %v708_v6  ;;  %v727_v37 = vrot.slane %v725_v29, 1  ;;  %v759_v43 = vshrl.u32 %v6585_v33, 16  ;;  %v761_v45 = vshll.u32 %v6585_v33, 16  ;;  %v211_v51 = vld [vmem:[%s6464_s30 + $0x84] sm:$0xf] }
  0x32   : > { %850 = vrot.lane.b32.xlu0 %v709_v36, %s6366_s4  ;;  %v745_v39 = vsel %vm649_vm0, %v740_v30, %v744_v27  ;;  %v766_v48 = vshll.u32 %v6588_v34, 16  ;;  %v6605_v50 = vcombine.low %v205_v35, %v6593_v38  ;;  %v6609_v53 = vld [vmem:[%s6464_s30 + $0x88] sm:$0xf]  ;;  %v754_v57 = vshll.u32 %v6600_v46, 16  ;;  %v209_v60 = vld [vmem:[%s6464_s30 + $0x78] sm:$0xf] }
  0x33   : > { %856 = vrot.lane.b32.xlu1 %v745_v39, %s6366_s4  ;;  %v728_v47 = vor.u32 %v727_v37, %v723_v28  ;;  %v763_v56 = vrot.slane %v761_v45, 1  ;;  %v6614_v59 = vcombine.low %v211_v51, %v6609_v53  ;;  %v6621_v6 = vld [vmem:[%s6464_s30 + $0x8c] ss:$0 sps:$4 sm:$0x11]   ;;  %v6627_v16 = vld [vmem:[%s6464_s30 + $0x7c] sm:$0xf] }
  0x34   : > { %9286 = vst [vmem:[#allocation8_spill] sm:$0xff] %v6605_v50  ;;  %v768_v62 = vrot.slane %v766_v48, 1  ;;  %v747_v63 = vshrl.u32 %v6605_v50, 16  ;;  %v749_v4 = vshll.u32 %v6605_v50, 16  ;;  %v756_v8 = vrot.slane %v754_v57, 1 }
  0x35   : > { %v733_v61 = vsel %vm649_vm0, %v728_v47, %v732_v42  ;;  %v764_v7 = vor.u32 %v763_v56, %v759_v43  ;;  %v783_v13 = vshrl.u32 %v6614_v59, 16  ;;  %v785_v14 = vshll.u32 %v6614_v59, 16  ;;  %v215_v27 = vld [vmem:[%s6464_s30 + $0x9c] sm:$0xf]  ;;  %v6639_v32 = vld [vmem:[%s6464_s30 + $0xa0] sm:$0xf] }
  0x36   : > { %854 = vrot.lane.b32.xlu0 %v733_v61, %s6366_s4  ;;  %v751_v17 = vrot.slane %v749_v4, 1  ;;  %v790_v19 = vshll.u32 %v6621_v6, 16  ;;  %v6631_v26 = vcombine.low %v209_v60, %v6627_v16  ;;  %v6636_v30 = vld [vmem:[%s6464_s30 + $0x80] ss:$0 sps:$4 sm:$0x11]   ;;  %v6646_v45 = vcombine.low %v215_v27, %v6639_v32 }
  0x37   : > { %v769_v28 = vsel %vm649_vm0, %v764_v7, %v768_v62  ;;  %v787_v29 = vrot.slane %v785_v14, 1  ;;  %v778_v43 = vshll.u32 %v6636_v30, 16  ;;  %v6649_v47 = vld [vmem:[%s6464_s30 + $0xa4] ss:$0 sps:$4 sm:$0x11]  }
  0x38   : > { %860 = vrot.lane.b32.xlu1 %v769_v28, %s6366_s4  ;;  %v752_v35 = vor.u32 %v751_v17, %v747_v63  ;;  %v792_v36 = vrot.slane %v790_v19, 1  ;;  %v771_v37 = vshrl.u32 %v6631_v26, 16  ;;  %v773_v39 = vshll.u32 %v6631_v26, 16  ;;  %v213_v48 = vld [vmem:[%s6464_s30 + $0x90] sm:$0xf] }
  0x39   : > { %v788_v42 = vor.u32 %v787_v29, %v783_v13  ;;  %v6654_v57 = vld [vmem:[%s6464_s30 + $0x94] sm:$0xf]  ;;  %v780_v62 = vrot.slane %v778_v43, 1  ;;  %v807_v63 = vshrl.u32 %v6646_v45, 16  ;;  %v809_v4 = vshll.u32 %v6646_v45, 16 }
  0x3a   : > { %v757_v51 = vsel %vm649_vm0, %v752_v35, %v756_v8  ;;  %v775_v56 = vrot.slane %v773_v39, 1  ;;  %v6662_v7 = vld [vmem:[%s6464_s30 + $0x98] ss:$0 sps:$4 sm:$0x11]   ;;  %v814_v13 = vshll.u32 %v6649_v47, 16  ;;  %v6667_v14 = vcombine.low %v213_v48, %v6654_v57 }
  0x3b   : > { %858 = vrot.lane.b32.xlu0 %v757_v51, %s6366_s4  ;;  %v793_v61 = vsel %vm649_vm0, %v788_v42, %v792_v36  ;;  %v219_v17 = vld [vmem:[%s6464_s30 + $0xb4] sm:$0xf]  ;;  %v6671_v19 = vld [vmem:[%s6464_s30 + $0xb8] sm:$0xf]  ;;  %v811_v28 = vrot.slane %v809_v4, 1  ;;  %v802_v29 = vshll.u32 %v6662_v7, 16 }
  0x3c   : > { %864 = vrot.lane.b32.xlu1 %v793_v61, %s6366_s4  ;;  %v776_v8 = vor.u32 %v775_v56, %v771_v37  ;;  %v6676_v35 = vcombine.low %v219_v17, %v6671_v19  ;;  %v217_v36 = vld [vmem:[%s6464_s30 + $0xa8] sm:$0xf]  ;;  %v816_v39 = vrot.slane %v814_v13, 1  ;;  %v795_v42 = vshrl.u32 %v6667_v14, 16  ;;  %v6689_v17 = vld [vmem:[%s6464_s30 + $0xac] sm:$0xf] }
  0x3d   : > { %v797_v43 = vshll.u32 %v6667_v14, 16  ;;  %v6683_v48 = vld [vmem:[%s6464_s30 + $0xbc] ss:$0 sps:$4 sm:$0x11]   ;;  %v812_v51 = vor.u32 %v811_v28, %v807_v63  ;;  %v804_v56 = vrot.slane %v802_v29, 1  ;;  %v6693_v13 = vcombine.low %v217_v36, %v6689_v17 }
  0x3e   : > { %v781_v37 = vsel %vm649_vm0, %v776_v8, %v780_v62  ;;  %v831_v61 = vshrl.u32 %v6676_v35, 16  ;;  %v833_v4 = vshll.u32 %v6676_v35, 16  ;;  %v838_v8 = vshll.u32 %v6683_v48, 16  ;;  %v238_v27 = vld [vmem:[%s6464_s30 + $0xc] sm:$0xe] }
  0x3f   : > { %862 = vrot.lane.b32.xlu0 %v781_v37, %s6366_s4  ;;  %v799_v62 = vrot.slane %v797_v43, 1  ;;  %v817_v60 = vsel %vm649_vm0, %v812_v51, %v816_v39  ;;  %v6698_v28 = vld [vmem:[%s6464_s30 + $0xb0] ss:$0 sps:$4 sm:$0x11]   ;;  %v6701_v29 = vcombine.low %v238_v27, %v6497_v18  ;;  %v237_v37 = vld [vmem:[%s6464_s30] sm:$0xe] }
  0x40   : > { %v835_v63 = vrot.slane %v833_v4, 1  ;;  %868 = vrot.lane.b32.xlu1 %v817_v60, %s6366_s4  ;;  %v840_v55 = vrot.slane %v838_v8, 1  ;;  %v819_v36 = vshrl.u32 %v6693_v13, 16  ;;  %v821_v33 = vshll.u32 %v6693_v13, 16  ;;  %v240_v22 = vld [vmem:[%s6464_s30 + $0x24] sm:$0xe] }
  0x41   : > { %v800_v43 = vor.u32 %v799_v62, %v795_v42  ;;  %v826_v51 = vshll.u32 %v6698_v28, 16  ;;  %v926_v4 = vrot.slane %v6701_v29, 1  ;;  %v6711_v18 = vcombine.low %v237_v37, %v6478_v5  ;;  %v239_v27 = vld [vmem:[%s6464_s30 + $0x18] sm:$0xe]  ;;  %v242_v50 = vld [vmem:[%s6464_s30 + $0x3c] sm:$0xe] }
  0x42   : > { %v836_v39 = vor.u32 %v835_v63, %v831_v61  ;;  %v823_v42 = vrot.slane %v821_v33, 1  ;;  %v6717_v62 = vcombine.low %v240_v22, %v6491_v12  ;;  %v6720_v8 = vcombine.low %v239_v27, %v6468_v1  ;;  %v241_v61 = vld [vmem:[%s6464_s30 + $0x30] sm:$0xe]  ;;  %v244_v63 = vld [vmem:[%s6464_s30 + $0x54] sm:$0xe] }
  0x43   : > { %v805_v60 = vsel %vm649_vm0, %v800_v43, %v804_v56  ;;  %v828_v37 = vrot.slane %v826_v51, 1  ;;  %v923_v10 = vrot.slane %v6711_v18, 1  ;;  %v930_v56 = vrot.slane %v6474_v3, 1  ;;  %v243_v43 = vld [vmem:[%s6464_s30 + $0x48] sm:$0xe] }
  0x44   : > { %866 = vrot.lane.b32.xlu0 %v805_v60, %s6366_s4  ;;  %v841_v5 = vsel %vm649_vm0, %v836_v39, %v840_v55  ;;  %v824_v12 = vor.u32 %v823_v42, %v819_v36  ;;  %v932_v1 = vrot.slane %v6717_v62, 1  ;;  %v6731_v22 = vcombine.low %v242_v50, %v6517_v31  ;;  %v246_v51 = vld [vmem:[%s6464_s30 + $0x6c] sm:$0xe]  ;;  %v245_v31 = vld [vmem:[%s6464_s30 + $0x60] sm:$0xe] }
  0x45   : > { %872 = vrot.lane.b32.xlu1 %v841_v5, %s6366_s4  ;;  %v939_v33 = vrot.slane %v6529_v41, 1  ;;  %v9287_v27 = vrot.slane %v6510_v25, 1  ;;  %v929_v3 = vrot.slane %v6720_v8, 1  ;;  %v6740_v39 = vcombine.low %v241_v61, %v6533_v44  ;;  %v248_v60 = vld [vmem:[%s6464_s30 + $0x84] sm:$0xe] }
  0x46   : > { %v6743_v36 = vcombine.low %v244_v63, %v6547_v54  ;;  %v829_v50 = vsel %vm649_vm0, %v824_v12, %v828_v37  ;;  %v938_v41 = vrot.slane %v6731_v22, 1  ;;  %v936_v25 = vrot.slane %v6539_v49, 1  ;;  %v247_v5 = vld [vmem:[%s6464_s30 + $0x78] sm:$0xe]  ;;  %v250_v37 = vld [vmem:[%s6464_s30 + $0x9c] sm:$0xe] }
  0x47   : > { %v928_v55 = vsel %vm9278_vm1, %v926_v4, %v9287_v27  ;;  %v9288_v4 = vrot.slane %v6488_v11, 1  ;;  %v9289_v42 = vrot.slane %v6504_v21, 1  ;;  %v945_v61 = vrot.slane %v6560_v0, 1  ;;  %v249_v0 = vld [vmem:[%s6464_s30 + $0x90] sm:$0xe] }
  0x48   : > { %870 = vrot.lane.b32.xlu0 %v829_v50, %s6366_s4  ;;  %v6760_v63 = vcombine.low %v243_v43, %v6566_v9  ;;  %v935_v49 = vrot.slane %v6740_v39, 1  ;;  %v944_v11 = vrot.slane %v6743_v36, 1  ;;  %v6771_v21 = vcombine.low %v245_v31, %v6593_v38 }
  0x49   : > { %v925_v44 = vsel %vm9278_vm1, %v923_v10, %v9288_v4  ;;  %v934_v54 = vsel %vm9278_vm1, %v932_v1, %v9289_v42  ;;  %973 = vrot.lane.b32.xlu1 %v928_v55, %s6367_s5  ;;  %v6768_v10 = vcombine.low %v246_v51, %v6578_v24  ;;  %v931_v9 = vsel %vm9278_vm1, %v929_v3, %v930_v56  ;;  %v252_v51 = vld [vmem:[%s6464_s30 + $0xb4] sm:$0xe]  ;;  %v5993_v42 = vld [vmem:[%s6464_s30 + $0x8] ss:$0 sps:$4 sm:$0x33]  }
  0x4a   : > { %v940_v12 = vsel %vm9278_vm1, %v938_v41, %v939_v33  ;;  %v941_v1 = vrot.slane %v6760_v63, 1  ;;  %v942_v43 = vrot.slane %v6575_v23, 1  ;;  %v951_v55 = vrot.slane %v6588_v34, 1  ;;  %v251_v34 = vld [vmem:[%s6464_s30 + $0xa8] sm:$0xe] }
  0x4b   : > { %v950_v27 = vrot.slane %v6768_v10, 1  ;;  %v948_v24 = vrot.slane %v6600_v46, 1  ;;  %v6782_v38 = vcombine.low %v248_v60, %v6609_v53  ;;  %v947_v56 = vrot.slane %v6771_v21, 1 }
  0x4c   : > { %971 = vrot.lane.b32.xlu0 %v925_v44, %s6367_s5  ;;  %v957_v33 = vrot.slane %v6621_v6, 1  ;;  %v6789_v3 = vcombine.low %v247_v5, %v6627_v16  ;;  %v6792_v23 = vcombine.low %v250_v37, %v6639_v32  ;;  %v937_v46 = vsel %vm9278_vm1, %v935_v49, %v936_v25  ;;  %v5992_v6 = vld [vmem:[%s6464_s30 + $0x14] ss:$0 sps:$4 sm:$0x33]  }
  0x4d   : > { %977 = vrot.lane.b32.xlu1 %v934_v54, %s6367_s5  ;;  %v946_v53 = vsel %vm9278_vm1, %v944_v11, %v945_v61  ;;  %v956_v31 = vrot.slane %v6782_v38, 1  ;;  %v954_v50 = vrot.slane %v6636_v30, 1  ;;  %v943_v16 = vsel %vm9278_vm1, %v941_v1, %v942_v43  ;;  %v5994_v5 = vld [vmem:[%s6464_s30 + $0x2c] ss:$0 sps:$4 sm:$0x33]  }
  0x4e   : > { %v953_v41 = vrot.slane %v6789_v3, 1  ;;  %v963_v32 = vrot.slane %v6649_v47, 1  ;;  %v6805_v60 = vcombine.low %v249_v0, %v6654_v57  ;;  %v962_v4 = vrot.slane %v6792_v23, 1 }
  0x4f   : > { %v960_v25 = vrot.slane %v6662_v7, 1  ;;  %v6810_v44 = vcombine.low %v252_v51, %v6671_v19  ;;  %v6813_v30 = vcombine.low %v251_v34, %v6689_v17  ;;  %v952_v54 = vsel %vm9278_vm1, %v950_v27, %v951_v55 }
  0x50   : > { %975 = vrot.lane.b32.xlu0 %v931_v9, %s6367_s5  ;;  %v949_v47 = vsel %vm9278_vm1, %v947_v56, %v948_v24  ;;  %v958_v57 = vsel %vm9278_vm1, %v956_v31, %v957_v33  ;;  %v959_v61 = vrot.slane %v6805_v60, 1  ;;  %v6824_v7 = vsel %vm9278_vm1, %v953_v41, %v954_v50  ;;  %v5995_v24 = vld [vmem:[%s6464_s30 + $0x20] ss:$0 sps:$4 sm:$0x33]  }
  0x51   : > { %981 = vrot.lane.b32.xlu1 %v940_v12, %s6367_s5  ;;  %v969_v19 = vrot.slane %v6683_v48, 1  ;;  %v1070_v17 = vshrl.u32 %v6701_v29, 16  ;;  %v1073_v37 = vshll.u32 %v6701_v29, 16  ;;  %v966_v49 = vrot.slane %v6698_v28, 1 }
  0x52   : > { %v1078_v11 = vshrl.u32 %v5992_v6, 16  ;;  %v1081_v0 = vshll.u32 %v5992_v6, 16  ;;  %v1053_v9 = vshrl.u32 %v6711_v18, 16  ;;  %v6832_v1 = vsel %vm9278_vm1, %v962_v4, %v963_v32 }
  0x53   : > { %v6835_v12 = vsel %vm9278_vm1, %v959_v61, %v960_v25  ;;  %v968_v48 = vrot.slane %v6810_v44, 1  ;;  %v965_v43 = vrot.slane %v6813_v30, 1  ;;  %v1072_v29 = vrot.slane %v1070_v17, 1 }
  0x54   : > { %979 = vrot.lane.b32.xlu0 %v937_v46, %s6367_s5  ;;  %v1075_v27 = vrot.slane %v1073_v37, 2  ;;  %v1080_v28 = vrot.slane %v1078_v11, 1  ;;  %v1056_v55 = vshll.u32 %v6711_v18, 16  ;;  %v1083_v51 = vrot.slane %v1081_v0, 2 }
  0x55   : > { %985 = vrot.lane.b32.xlu1 %v946_v53, %s6367_s5  ;;  %v1061_v56 = vshrl.u32 %v5993_v42, 16  ;;  %v1064_v33 = vshll.u32 %v5993_v42, 16  ;;  %v1104_v34 = vshrl.u32 %v6717_v62, 16  ;;  %v1055_v31 = vrot.slane %v1053_v9, 1 }
  0x56   : > { %v1058_v50 = vrot.slane %v1056_v55, 2  ;;  %v1107_v6 = vshll.u32 %v6717_v62, 16  ;;  %v1112_v41 = vshrl.u32 %v5994_v5, 16  ;;  %v1115_v25 = vshll.u32 %v5994_v5, 16 }
  0x57   : > { %v1063_v46 = vrot.slane %v1061_v56, 1  ;;  %v1066_v32 = vrot.slane %v1064_v33, 2  ;;  %v1106_v4 = vrot.slane %v1104_v34, 1  ;;  %v970_v18 = vsel %vm9278_vm1, %v968_v48, %v969_v19  ;;  %v5996_v0 = vld [vmem:[%s6464_s30 + $0x44] ss:$0 sps:$4 sm:$0x33]  }
  0x58   : > { %983 = vrot.lane.b32.xlu0 %v943_v16, %s6367_s5  ;;  %v1076_v53 = vor.u32 %v1075_v27, %v1072_v29  ;;  %v1109_v61 = vrot.slane %v1107_v6, 2  ;;  %v1114_v42 = vrot.slane %v1112_v41, 1  ;;  %v1084_v17 = vor.u32 %v1083_v51, %v1080_v28  ;;  %v5997_v56 = vld [vmem:[%s6464_s30 + $0x38] ss:$0 sps:$4 sm:$0x33]  }
  0x59   : > { %989 = vrot.lane.b32.xlu1 %v952_v54, %s6367_s5  ;;  %v1117_v37 = vrot.slane %v1115_v25, 2  ;;  %v1087_v62 = vshrl.u32 %v6720_v8, 16  ;;  %v1090_v11 = vshll.u32 %v6720_v8, 16  ;;  %v1059_v9 = vor.u32 %v1058_v50, %v1055_v31  ;;  %v5998_v50 = vld [vmem:[%s6464_s30 + $0x5c] ss:$0 sps:$4 sm:$0x33]  }
  0x5a   : > { %v1095_v55 = vshrl.u32 %v5995_v24, 16  ;;  %v1098_v5 = vshll.u32 %v5995_v24, 16  ;;  %v1138_v16 = vshrl.u32 %v6731_v22, 16  ;;  %v1067_v19 = vor.u32 %v1066_v32, %v1063_v46 }
  0x5b   : > { %v1110_v48 = vor.u32 %v1109_v61, %v1106_v4  ;;  %v1118_v29 = vor.u32 %v1117_v37, %v1114_v42  ;;  %v1089_v27 = vrot.slane %v1087_v62, 1  ;;  %v1092_v54 = vrot.slane %v1090_v11, 2  ;;  %v5999_v61 = vld [vmem:[%s6464_s30 + $0x50] ss:$0 sps:$4 sm:$0x33]  }
  0x5c   : > { %987 = vrot.lane.b32.xlu0 %v949_v47, %s6367_s5  ;;  %v1097_v28 = vrot.slane %v1095_v55, 1  ;;  %v1100_v51 = vrot.slane %v1098_v5, 2  ;;  %v1141_v33 = vshll.u32 %v6731_v22, 16  ;;  %v967_v8 = vsel %vm9278_vm1, %v965_v43, %v966_v49 }
  0x5d   : > { %993 = vrot.lane.b32.xlu1 %v958_v57, %s6367_s5  ;;  %v1085_v24 = vsel %vm1051_vm2, %v1076_v53, %v1084_v17  ;;  %v1146_v34 = vshrl.u32 %v5996_v0, 16  ;;  %v1149_v31 = vshll.u32 %v5996_v0, 16  ;;  %v1140_v6 = vrot.slane %v1138_v16, 1 }
  0x5e   : > { %v1143_v41 = vrot.slane %v1141_v33, 2  ;;  %v1121_v46 = vshrl.u32 %v6740_v39, 16  ;;  %v1124_v47 = vshll.u32 %v6740_v39, 16  ;;  %v1129_v25 = vshrl.u32 %v5997_v56, 16 }
  0x5f   : > { %v1148_v32 = vrot.slane %v1146_v34, 1  ;;  %v1151_v4 = vrot.slane %v1149_v31, 2  ;;  %v1132_v22 = vshll.u32 %v5997_v56, 16  ;;  %v1068_v57 = vsel %vm1051_vm2, %v1059_v9, %v1067_v19  ;;  %v6000_v19 = vld [vmem:[%s6464_s30 + $0x74] ss:$0 sps:$4 sm:$0x33]  }
  0x60   : > { %991 = vrot.lane.b32.xlu0 %v6824_v7, %s6367_s5  ;;  %v1119_v49 = vsel %vm1051_vm2, %v1110_v48, %v1118_v29  ;;  %v1093_v43 = vor.u32 %v1092_v54, %v1089_v27  ;;  %v1101_v53 = vor.u32 %v1100_v51, %v1097_v28  ;;  %v1123_v42 = vrot.slane %v1121_v46, 1 }
  0x61   : > { %997 = vrot.lane.b32.xlu1 %v6832_v1, %s6367_s5  ;;  %v1126_v39 = vrot.slane %v1124_v47, 2  ;;  %v1131_v17 = vrot.slane %v1129_v25, 1  ;;  %v1172_v37 = vshrl.u32 %v6743_v36, 16  ;;  %v1134_v62 = vrot.slane %v1132_v22, 2 }
  0x62   : > { %v1175_v11 = vshll.u32 %v6743_v36, 16  ;;  %v1180_v7 = vshrl.u32 %v5998_v50, 16  ;;  %v1183_v0 = vshll.u32 %v5998_v50, 16  ;;  %v1144_v9 = vor.u32 %v1143_v41, %v1140_v6  ;;  %v6001_v50 = vld [vmem:[%s6464_s30 + $0x68] ss:$0 sps:$4 sm:$0x33]  }
  0x63   : > { %v1152_v55 = vor.u32 %v1151_v4, %v1148_v32  ;;  %v1174_v5 = vrot.slane %v1172_v37, 1  ;;  %v1155_v16 = vshrl.u32 %v6760_v63, 16  ;;  %v1158_v27 = vshll.u32 %v6760_v63, 16  ;;  %v6002_v4 = vld [vmem:[%s6464_s30 + $0x8c] ss:$0 sps:$4 sm:$0x33]  }
  0x64   : > { %995 = vrot.lane.b32.xlu0 %v6835_v12, %s6367_s5  ;;  %v1177_v1 = vrot.slane %v1175_v11, 2  ;;  %v1182_v48 = vrot.slane %v1180_v7, 1  ;;  %v1185_v29 = vrot.slane %v1183_v0, 2  ;;  %v1102_v36 = vsel %vm1051_vm2, %v1093_v43, %v1101_v53  ;;  %v6003_v11 = vld [vmem:[%s6464_s30 + $0x80] ss:$0 sps:$4 sm:$0x33]  }
  0x65   : > { %1001 = vrot.lane.b32.xlu1 %v970_v18, %s6367_s5  ;;  %v1127_v56 = vor.u32 %v1126_v39, %v1123_v42  ;;  %v1163_v54 = vshrl.u32 %v5999_v61, 16  ;;  %v1166_v28 = vshll.u32 %v5999_v61, 16  ;;  %v1135_v51 = vor.u32 %v1134_v62, %v1131_v17 }
  0x66   : > { %v1157_v33 = vrot.slane %v1155_v16, 1  ;;  %v1160_v34 = vrot.slane %v1158_v27, 2  ;;  %v1206_v31 = vshrl.u32 %v6768_v10, 16  ;;  %v1209_v41 = vshll.u32 %v6768_v10, 16 }
  0x67   : > { %v1165_v12 = vrot.slane %v1163_v54, 1  ;;  %v1168_v6 = vrot.slane %v1166_v28, 2  ;;  %v1214_v46 = vshrl.u32 %v6000_v19, 16  ;;  %v1153_v63 = vsel %vm1051_vm2, %v1144_v9, %v1152_v55  ;;  %v6004_v27 = vld [vmem:[%s6464_s30 + $0xa4] ss:$0 sps:$4 sm:$0x33]  }
  0x68   : > { %999 = vrot.lane.b32.xlu0 %v967_v8, %s6367_s5  ;;  %v1178_v18 = vor.u32 %v1177_v1, %v1174_v5  ;;  %v1186_v47 = vor.u32 %v1185_v29, %v1182_v48  ;;  %v1217_v32 = vshll.u32 %v6000_v19, 16  ;;  %v1208_v25 = vrot.slane %v1206_v31, 1 }
  0x69   : > { %1326 = vrot.lane.b32.xlu1 %v1085_v24, %s6368_s6  ;;  %v1211_v22 = vrot.slane %v1209_v41, 2  ;;  %v1216_v43 = vrot.slane %v1214_v46, 1  ;;  %v1189_v53 = vshrl.u32 %v6771_v21, 16  ;;  %v1192_v10 = vshll.u32 %v6771_v21, 16 }
  0x6a   : > { %v1219_v61 = vrot.slane %v1217_v32, 2  ;;  %v1197_v42 = vshrl.u32 %v6001_v50, 16  ;;  %v1200_v8 = vshll.u32 %v6001_v50, 16  ;;  %v1136_v39 = vsel %vm1051_vm2, %v1127_v56, %v1135_v51 }
  0x6b   : > { %v1161_v17 = vor.u32 %v1160_v34, %v1157_v33  ;;  %v1169_v37 = vor.u32 %v1168_v6, %v1165_v12  ;;  %v1240_v62 = vshrl.u32 %v6782_v38, 16  ;;  %v1191_v24 = vrot.slane %v1189_v53, 1  ;;  %v6005_v6 = vld [vmem:[%s6464_s30 + $0x98] ss:$0 sps:$4 sm:$0x33]  }
  0x6c   : > { %1324 = vrot.lane.b32.xlu0 %v1068_v57, %s6368_s6  ;;  %v1194_v7 = vrot.slane %v1192_v10, 2  ;;  %v1199_v0 = vrot.slane %v1197_v42, 1  ;;  %v1202_v9 = vrot.slane %v1200_v8, 2  ;;  %v1243_v21 = vshll.u32 %v6782_v38, 16 }
  0x6d   : > { %1330 = vrot.lane.b32.xlu1 %v1119_v49, %s6368_s6  ;;  %v1242_v55 = vrot.slane %v1240_v62, 1  ;;  %v1248_v5 = vshrl.u32 %v6002_v4, 16  ;;  %v1251_v16 = vshll.u32 %v6002_v4, 16  ;;  %v1187_v19 = vsel %vm1051_vm2, %v1178_v18, %v1186_v47 }
  0x6e   : > { %v1212_v1 = vor.u32 %v1211_v22, %v1208_v25  ;;  %v1220_v48 = vor.u32 %v1219_v61, %v1216_v43  ;;  %v1223_v29 = vshrl.u32 %v6789_v3, 16  ;;  %v1245_v57 = vrot.slane %v1243_v21, 2  ;;  %v6006_v25 = vld [vmem:[%s6464_s30 + $0xbc] ss:$0 sps:$4 sm:$0x33]  }
  0x6f   : > { %v1250_v56 = vrot.slane %v1248_v5, 1  ;;  %v1253_v54 = vrot.slane %v1251_v16, 2  ;;  %v1226_v28 = vshll.u32 %v6789_v3, 16  ;;  %v1170_v49 = vsel %vm1051_vm2, %v1161_v17, %v1169_v37 }
  0x70   : > { %1328 = vrot.lane.b32.xlu0 %v1102_v36, %s6368_s6  ;;  %v1195_v38 = vor.u32 %v1194_v7, %v1191_v24  ;;  %v1231_v51 = vshrl.u32 %v6003_v11, 16  ;;  %v1234_v33 = vshll.u32 %v6003_v11, 16  ;;  %v1203_v34 = vor.u32 %v1202_v9, %v1199_v0  ;;  %v6007_v0 = vld [vmem:[%s6464_s30 + $0xb0] ss:$0 sps:$4 sm:$0x33]  }
  0x71   : > { %1334 = vrot.lane.b32.xlu1 %v1153_v63, %s6368_s6  ;;  %v1246_v31 = vor.u32 %v1245_v57, %v1242_v55  ;;  %v1225_v50 = vrot.slane %v1223_v29, 1  ;;  %v1274_v12 = vshrl.u32 %v6792_v23, 16  ;;  %v1254_v41 = vor.u32 %v1253_v54, %v1250_v56 }
  0x72   : > { %v1228_v46 = vrot.slane %v1226_v28, 2  ;;  %v1277_v3 = vshll.u32 %v6792_v23, 16  ;;  %v1282_v18 = vshrl.u32 %v6004_v27, 16  ;;  %v1221_v36 = vsel %vm1051_vm2, %v1212_v1, %v1220_v48 }
  0x73   : > { %v1233_v47 = vrot.slane %v1231_v51, 1  ;;  %v1236_v32 = vrot.slane %v1234_v33, 2  ;;  %v1285_v4 = vshll.u32 %v6004_v27, 16  ;;  %v1276_v63 = vrot.slane %v1274_v12, 1 }
  0x74   : > { %1332 = vrot.lane.b32.xlu0 %v1136_v39, %s6368_s6  ;;  %v1279_v22 = vrot.slane %v1277_v3, 2  ;;  %v1284_v43 = vrot.slane %v1282_v18, 1  ;;  %v1257_v53 = vshrl.u32 %v6805_v60, 16  ;;  %v1260_v23 = vshll.u32 %v6805_v60, 16  ;;  %v5222_v3 = vld [vmem:[%s6464_s30 + $0x18] sm:$0xf] }
  0x75   : > { %1338 = vrot.lane.b32.xlu1 %v1187_v19, %s6368_s6  ;;  %v1287_v61 = vrot.slane %v1285_v4, 2  ;;  %v1265_v10 = vshrl.u32 %v6005_v6, 16  ;;  %v1268_v42 = vshll.u32 %v6005_v6, 16  ;;  %v1204_v8 = vsel %vm1051_vm2, %v1195_v38, %v1203_v34  ;;  %v6927_v18 = vld [vmem:[%s6464_s30 + $0x1c] sm:$0xf] }
  0x76   : > { %v1255_v17 = vsel %vm1051_vm2, %v1246_v31, %v1254_v41  ;;  %v1229_v37 = vor.u32 %v1228_v46, %v1225_v50  ;;  %v1308_v39 = vshrl.u32 %v6810_v44, 16  ;;  %v1237_v62 = vor.u32 %v1236_v32, %v1233_v47  ;;  %v5220_v32 = vld [vmem:[%s6464_s30 + $0xc] sm:$0xf]  ;;  %v6937_v4 = vld [vmem:[%s6464_s30 + $0x10] sm:$0xf] }
  0x77   : > { %v1259_v11 = vrot.slane %v1257_v53, 1  ;;  %v1262_v24 = vrot.slane %v1260_v23, 2  ;;  %v1267_v7 = vrot.slane %v1265_v10, 1  ;;  %v1270_v9 = vrot.slane %v1268_v42, 2  ;;  %v5224_v53 = vld [vmem:[%s6464_s30 + $0x24] sm:$0xf] }
  0x78   : > { %1336 = vrot.lane.b32.xlu0 %v1170_v49, %s6368_s6  ;;  %v1311_v55 = vshll.u32 %v6810_v44, 16  ;;  %v1316_v60 = vshrl.u32 %v6006_v25, 16  ;;  %v1319_v21 = vshll.u32 %v6006_v25, 16  ;;  %v1280_v5 = vor.u32 %v1279_v22, %v1276_v63  ;;  %v5226_v25 = vld [vmem:[%s6464_s30 + $0x30] sm:$0xf] }
  0x79   : > { %1342 = vrot.lane.b32.xlu1 %v1221_v36, %s6368_s6  ;;  %v1288_v16 = vor.u32 %v1287_v61, %v1284_v43  ;;  %v1310_v19 = vrot.slane %v1308_v39, 1  ;;  %v1291_v1 = vshrl.u32 %v6813_v30, 16  ;;  %v1294_v57 = vshll.u32 %v6813_v30, 16  ;;  %v5227_v63 = vld [vmem:[%s6464_s30 + $0x34] sm:$0xf] }
  0x7a   : > { %v1313_v48 = vrot.slane %v1311_v55, 2  ;;  %v1318_v29 = vrot.slane %v1316_v60, 1  ;;  %v1321_v27 = vrot.slane %v1319_v21, 2  ;;  %v1299_v56 = vshrl.u32 %v6007_v0, 16  ;;  %v5225_v61 = vld [vmem:[%s6464_s30 + $0x28] sm:$0xf] }
  0x7b   : > { %v1302_v54 = vshll.u32 %v6007_v0, 16  ;;  %v1238_v44 = vsel %vm1051_vm2, %v1229_v37, %v1237_v62  ;;  %v1263_v28 = vor.u32 %v1262_v24, %v1259_v11  ;;  %v1271_v49 = vor.u32 %v1270_v9, %v1267_v7  ;;  %v5230_v23 = vld [vmem:[%s6464_s30 + $0x48] sm:$0xf]  ;;  %v5231_v10 = vld [vmem:[%s6464_s30 + $0x4c] sm:$0xf] }
  0x7c   : > { %1340 = vrot.lane.b32.xlu0 %v1204_v8, %s6368_s6  ;;  %v1293_v38 = vrot.slane %v1291_v1, 1  ;;  %v1296_v51 = vrot.slane %v1294_v57, 2  ;;  %v1301_v33 = vrot.slane %v1299_v56, 1  ;;  %v1289_v31 = vsel %vm1051_vm2, %v1280_v5, %v1288_v16  ;;  %v5229_v37 = vld [vmem:[%s6464_s30 + $0x40] sm:$0xf] }
  0x7d   : > { %1346 = vrot.lane.b32.xlu1 %v1255_v17, %s6368_s6  ;;  %v1304_v34 = vrot.slane %v1302_v54, 2  ;;  %v1314_v30 = vor.u32 %v1313_v48, %v1310_v19  ;;  %v1322_v50 = vor.u32 %v1321_v27, %v1318_v29  ;;  %v1272_v12 = vsel %vm1051_vm2, %v1263_v28, %v1271_v49  ;;  %v5228_v17 = vld [vmem:[%s6464_s30 + $0x3c] sm:$0xf]  ;;  %v5234_v39 = vld [vmem:[%s6464_s30 + $0x60] sm:$0xf] }
  0x7e   : > { %v1297_v6 = vor.u32 %v1296_v51, %v1293_v38  ;;  %v6933_v47 = vcombine.low %v5222_v3, %v6927_v18  ;;  %v6943_v22 = vcombine.low %v5220_v32, %v6937_v4  ;;  %v6947_v43 = vcombine.low %v5226_v25, %v5227_v63  ;;  %v5235_v62 = vld [vmem:[%s6464_s30 + $0x64] sm:$0xf]  ;;  %v5236_v11 = vld [vmem:[%s6464_s30 + $0x6c] sm:$0xf]  ;;  %v6971_v7 = vld [vmem:[%s6464_s30 + $0x70] sm:$0xf] }
  0x7f   : > { %v1305_v41 = vor.u32 %v1304_v34, %v1301_v33  ;;  %v1323_v46 = vsel %vm1051_vm2, %v1314_v30, %v1322_v50  ;;  %v6955_v42 = vcombine.low %v5224_v53, %v5225_v61  ;;  %v6959_v8 = vcombine.low %v5230_v23, %v5231_v10  ;;  %v5232_v9 = vld [vmem:[%s6464_s30 + $0x54] sm:$0xf]  ;;  %v5233_v55 = vld [vmem:[%s6464_s30 + $0x58] sm:$0xf]  ;;  %v6981_v21 = vld [vmem:[%s6464_s30 + $0x7c] sm:$0xf] }
  0x80   : > { %1344 = vrot.lane.b32.xlu0 %v1238_v44, %s6368_s6  ;;  %v6968_v24 = vcombine.low %v5228_v17, %v5229_v37  ;;  %v6975_v0 = vcombine.low %v5234_v39, %v5235_v62  ;;  %v5238_v60 = vld [vmem:[%s6464_s30 + $0x78] sm:$0xf]  ;;  %v5532_v5 = vcombine.low %v5236_v11, %v6971_v7  ;;  %v6986_v16 = vcombine.low %v5232_v9, %v5233_v55  ;;  %v6994_v48 = vld [vmem:[%s6464_s30 + $0x74] ss:$0 sps:$4 sm:$0x11]  }
  0x81   : > { %1350 = vrot.lane.b32.xlu1 %v1289_v31, %s6368_s6  ;;  %v1306_v36 = vsel %vm1051_vm2, %v1297_v6, %v1305_v41  ;;  %9290 = vst [vmem:[#allocation9_spill] sm:$0xff] %v6959_v8  ;;  %v6991_v19 = vcombine.low %v5238_v60, %v6981_v21  ;;  %v5242_v27 = vld [vmem:[%s6464_s30 + $0x90] sm:$0xf]  ;;  %v5243_v57 = vld [vmem:[%s6464_s30 + $0x94] sm:$0xf]  ;;  %v1519_v56 = vshll.u32 %v6943_v22, 16 }
  0x82   : > { %9291 = vst [vmem:[#allocation10_spill] sm:$0xff] %v6968_v24  ;;  %9292 = vst [vmem:[#allocation11_spill] sm:$0xff] %v6975_v0  ;;  %v1615_v1 = vshll.u32 %v5532_v5, 16  ;;  %v5240_v54 = vld [vmem:[%s6464_s30 + $0x84] sm:$0xf]  ;;  %v7022_v50 = vcombine.low %v5242_v27, %v5243_v57  ;;  %v1620_v41 = vshll.u32 %v6994_v48, 16 }
  0x83   : > { %9293 = vst [vmem:[#allocation12_spill] sm:$0xff] %v6986_v16  ;;  %v5241_v44 = vld [vmem:[%s6464_s30 + $0x88] sm:$0xf]  ;;  %v7004_v28 = vld [vmem:[%s6464_s30 + $0x14] ss:$0 sps:$4 sm:$0x11]  }
  0x84   : > { %1348 = vrot.lane.b32.xlu0 %v1272_v12, %s6368_s6  ;;  %v7007_v49 = vld [vmem:[%s6464_s30 + $0x7c] sm:$0xf]  ;;  %v5356_v38 = vld [vmem:[%s6464_s30 + $0x78] sm:$0xe]  ;;  %v5246_v33 = vld [vmem:[%s6464_s30 + $0xa8] sm:$0xf]  ;;  %v7035_v53 = vcombine.low %v5240_v54, %v5241_v44 }
  0x85   : > { %1354 = vrot.lane.b32.xlu1 %v1323_v46, %s6368_s6  ;;  %v5247_v34 = vld [vmem:[%s6464_s30 + $0xac] sm:$0xf]  ;;  %v7017_v31 = vld [vmem:[%s6464_s30 + $0x1c] sm:$0xf]  ;;  %v5348_v30 = vld [vmem:[%s6464_s30 + $0x18] sm:$0xe]  ;;  %v5628_v46 = vcombine.low %v5356_v38, %v7007_v49 }
  0x86   : > { %v1613_v12 = vshrl.u32 %v5532_v5, 16  ;;  %v1617_v6 = vrot.slane %v1615_v1, 1  ;;  %v6042_v3 = vld [vmem:[%s6464_s30 + $0x80] ss:$0 sps:$4 sm:$0x33]   ;;  %v7031_v25 = vcombine.low %v5348_v30, %v7017_v31  ;;  %v1517_v10 = vshrl.u32 %v6943_v22, 16 }
  0x87   : > { %v5244_v32 = vld [vmem:[%s6464_s30 + $0x9c] sm:$0xf]  ;;  %v6043_v63 = vld [vmem:[%s6464_s30 + $0x20] ss:$0 sps:$4 sm:$0x33]   ;;  %v1521_v17 = vrot.slane %v1519_v56, 1  ;;  %v7043_v37 = vcombine.low %v5246_v33, %v5247_v34 }
  0x88   : > { %1352 = vrot.lane.b32.xlu0 %v1306_v36, %s6368_s6  ;;  %v5245_v23 = vld [vmem:[%s6464_s30 + $0xa0] sm:$0xf]  ;;  %v1618_v39 = vor.u32 %v1617_v6, %v1613_v12  ;;  %v1622_v62 = vrot.slane %v1620_v41, 1  ;;  %v1524_v11 = vshll.u32 %v7004_v28, 16  ;;  %v2917_v55 = vshrl.u32 %v5628_v46, 16 }
  0x89   : > { %1438 = vrot.lane.b32.xlu1 %v6933_v47, %s6369_s7  ;;  %9296 = vst [vmem:[#allocation15_spill] sm:$0xff] %v7043_v37  ;;  %v7047_v9 = vld [vmem:[%s6464_s30 + $0x80] ss:$0 sps:$4 sm:$0x11]   ;;  %v2920_v60 = vshll.u32 %v5628_v46, 16  ;;  %v2928_v1 = vshll.u32 %v6042_v3, 16  ;;  %v7056_v54 = vcombine.low %v5244_v32, %v5245_v23  ;;  %v1522_v44 = vor.u32 %v1521_v17, %v1517_v10 }
  0x8a   : > { %v2784_v57 = vshll.u32 %v7031_v25, 16  ;;  %v5276_v56 = vld [vmem:[%s6464_s30 + $0x6c] sm:$0xe]  ;;  %v2789_v38 = vshrl.u32 %v6043_v63, 16  ;;  %v2792_v33 = vshll.u32 %v6043_v63, 16  ;;  %v1623_v34 = vsel %vm649_vm0, %v1618_v39, %v1622_v62 }
  0x8b   : > { %9297 = vst [vmem:[#allocation16_spill] sm:$0xff] %v7056_v54  ;;  %v1526_v30 = vrot.slane %v1524_v11, 1  ;;  %v2676_v12 = vrot.slane %v5628_v46, 1  ;;  %v2677_v6 = vrot.slane %v7047_v9, 1  ;;  %v2930_v23 = vrot.slane %v2928_v1, 2 }
  0x8c   : > { %1436 = vrot.lane.b32.xlu0 %v6943_v22, %s6369_s7  ;;  %v2781_v22 = vshrl.u32 %v7031_v25, 16  ;;  %v7063_v41 = vld [vmem:[%s6464_s30 + $0x20] ss:$0 sps:$4 sm:$0x11]   ;;  %v5268_v10 = vld [vmem:[%s6464_s30 + $0xc] sm:$0xe]  ;;  %v5564_v62 = vcombine.low %v5276_v56, %v6971_v7 }
  0x8d   : > { %1442 = vrot.lane.b32.xlu1 %v6947_v43, %s6369_s7  ;;  %v2791_v46 = vrot.slane %v2789_v38, 1  ;;  %v2794_v39 = vrot.slane %v2792_v33, 2  ;;  %v1527_v11 = vsel %vm649_vm0, %v1522_v44, %v1526_v30  ;;  %v2678_v1 = vsel %vm9278_vm1, %v2676_v12, %v2677_v6  ;;  %v6048_v38 = vld [vmem:[%s6464_s30 + $0x74] ss:$0 sps:$4 sm:$0x33]  }
  0x8e   : > { %v2783_v63 = vrot.slane %v2781_v22, 1  ;;  %v5556_v7 = vcombine.low %v5268_v10, %v6937_v4  ;;  %v5396_v56 = vld [vmem:[%s6464_s30 + $0x84] sm:$0xf]  ;;  %v7084_v33 = vld [vmem:[%s6464_s30 + $0x88] sm:$0xf]  ;;  %v1812_v4 = vrot.slane %v5564_v62, 1 }
  0x8f   : > { %v7089_v30 = vld [vmem:[%s6464_s30 + $0x28] sm:$0xf]  ;;  %v1813_v12 = vrot.slane %v6994_v48, 1  ;;  %v6049_v6 = vld [vmem:[%s6464_s30 + $0x14] ss:$0 sps:$4 sm:$0x33]  }
  0x90   : > { %1440 = vrot.lane.b32.xlu0 %v6955_v42, %s6369_s7  ;;  %v2064_v10 = vshll.u32 %v6048_v38, 16 }
  0x91   : > { %1446 = vrot.lane.b32.xlu1 %v6959_v8, %s6369_s7  ;;  %v2056_v8 = vshll.u32 %v5564_v62, 16 }
  0x94   : > { %1444 = vrot.lane.b32.xlu0 %v6968_v24, %s6369_s7 }
  0x95   : > { %1450 = vrot.lane.b32.xlu1 %v6975_v0, %s6369_s7  ;;  %v2919_v0 = vrot.slane %v2917_v55, 1  ;;  %v2652_v55 = vrot.slane %v7031_v25, 1  ;;  %v5380_v25 = vld [vmem:[%s6464_s30 + $0x24] sm:$0xf] }
  0x98   : > { %1448 = vrot.lane.b32.xlu0 %v6986_v16, %s6369_s7  ;;  %v2922_v16 = vrot.slane %v2920_v60, 2  ;;  %v2653_v60 = vrot.slane %v7063_v41, 1 }
  0x99   : > { %v6996_v29 = vpop.permute.xlu1 %846  ;;  %1454 = vrot.lane.b32.xlu1 %v6991_v19, %s6369_s7 }
  0x9a   : > { %v7012_v51 = vpop.permute.xlu0 %842  ;;  %v2923_v22 = vor.u32 %v2922_v16, %v2919_v0  ;;  %v2654_v0 = vsel %vm9278_vm1, %v2652_v55, %v2653_v60  ;;  %v2058_v55 = vrot.slane %v2056_v8, 2 }
  0x9b   : > { %9294 = vst [vmem:[#allocation13_spill] sm:$0xff] %v7012_v51 }
  0x9c   : > { %1452 = vrot.lane.b32.xlu0 %v5532_v5, %s6369_s7  ;;  %v2925_v5 = vshrl.u32 %v6042_v3, 16 }
  0x9d   : > { %v7027_v36 = vpop.permute.xlu1 %848  ;;  %1458 = vrot.lane.b32.xlu1 %v7022_v50, %s6369_s7 }
  0x9e   : > { %v7037_v61 = vpop.permute.xlu0 %844  ;;  %v2927_v32 = vrot.slane %v2925_v5, 1 }
  0x9f   : > { %9295 = vst [vmem:[#allocation14_spill] sm:$0xff] %v7037_v61  ;;  %v2053_v61 = vshrl.u32 %v5564_v62, 16  ;;  %v5652_v62 = vcombine.low %v5380_v25, %v7089_v30 }
  0xa0   : > { %1456 = vrot.lane.b32.xlu0 %v7035_v53, %s6369_s7 }
  0xa1   : > { %v7049_v27 = vpop.permute.xlu1 %852  ;;  %1462 = vrot.lane.b32.xlu1 %v7043_v37, %s6369_s7  ;;  %v2786_v37 = vrot.slane %v2784_v57, 2  ;;  %v2931_v57 = vor.u32 %v2930_v23, %v2927_v32  ;;  %v2061_v23 = vshrl.u32 %v6048_v38, 16  ;;  %v2055_v48 = vrot.slane %v2053_v61, 1 }
  0xa2   : > { %v1814_v38 = vsel %vm9278_vm1, %v1812_v4, %v1813_v12  ;;  %v3247_v25 = vshll.u32 %v5652_v62, 16  ;;  %v5436_v4 = vld [vmem:[%s6464_s30 + $0x84] sm:$0xe] }
  0xa3   : > { %v2787_v44 = vor.u32 %v2786_v37, %v2783_v63  ;;  %v2932_v32 = vsel %vm1051_vm2, %v2923_v22, %v2931_v57  ;;  %v5660_v37 = vcombine.low %v5396_v56, %v7084_v33  ;;  %v1788_v63 = vrot.slane %v5556_v7, 1 }
  0xa4   : > { %v7065_v3 = vpop.permute.xlu0 %850  ;;  %1460 = vrot.lane.b32.xlu0 %v7056_v54, %s6369_s7  ;;  %v1920_v22 = vshll.u32 %v5556_v7, 16  ;;  %v1928_v57 = vshll.u32 %v6049_v6, 16  ;;  %v3249_v51 = vrot.slane %v3247_v25, 1 }
  0xa5   : > { %v7068_v17 = vpop.permute.xlu1 %856  ;;  %1724 = vrot.lane.b32.xlu1 %v1623_v34, %s6370_s8  ;;  %v2795_v34 = vor.u32 %v2794_v39, %v2791_v46  ;;  %v1789_v46 = vrot.slane %v7004_v28, 1  ;;  %v1925_v28 = vshrl.u32 %v6049_v6, 16  ;;  %v3343_v56 = vshll.u32 %v5660_v37, 16 }
  0xa6   : > { %v1922_v6 = vrot.slane %v1920_v22, 2  ;;  %v5428_v22 = vld [vmem:[%s6464_s30 + $0x24] sm:$0xe] }
  0xa7   : > { %v1790_v61 = vsel %vm9278_vm1, %v1788_v63, %v1789_v46  ;;  %v3345_v54 = vrot.slane %v3343_v56, 1  ;;  %v5316_v63 = vld [vmem:[%s6464_s30 + $0x78] sm:$0xf] }
  0xa8   : > { %v7077_v5 = vpop.permute.xlu0 %854  ;;  %1708 = vrot.lane.b32.xlu0 %v1527_v11, %s6370_s8  ;;  %v2796_v11 = vsel %vm1051_vm2, %v2787_v44, %v2795_v34  ;;  %v2066_v44 = vrot.slane %v2064_v10, 2  ;;  %v7110_v34 = vld [vmem:[%s6464_s30 + $0x8c] ss:$0 sps:$4 sm:$0x11]   ;;  %v1930_v10 = vrot.slane %v1928_v57, 2  ;;  %v5596_v25 = vcombine.low %v5316_v63, %v7007_v49 }
  0xa9   : > { %2716 = vrot.lane.b32.xlu1 %v2678_v1, %s6371_s9  ;;  %v1917_v1 = vshrl.u32 %v5556_v7, 16  ;;  %v2059_v7 = vor.u32 %v2058_v55, %v2055_v48  ;;  %v5300_v48 = vld [vmem:[%s6464_s30 + $0x18] sm:$0xf]  ;;  %v3245_v55 = vshrl.u32 %v5652_v62, 16  ;;  %v3954_v49 = vsel %vm3948_vm3, %v6471_v2, %v6996_v29 }
  0xaa   : > { %v7093_v16 = vpop.permute.xlu1 %860  ;;  %v3956_v2 = vsel %vm3948_vm3, %v6501_v20, %v7027_v36  ;;  %v3960_v29 = vsel %vm3948_vm3, %v6526_v40, %v7049_v27  ;;  %v6055_v40 = vld [vmem:[%s6464_s30 + $0x2c] ss:$0 sps:$4 sm:$0x33]  }
  0xab   : > { %9298 = vst [vmem:[#allocation17_spill] sm:$0xff] %v7093_v16  ;;  %v1919_v12 = vrot.slane %v1917_v1, 1  ;;  %v3341_v16 = vshrl.u32 %v5660_v37, 16  ;;  %v7129_v1 = vcombine.low %v5436_v4, %v7084_v33  ;;  %v7140_v33 = vcombine.low %v5300_v48, %v7017_v31 }
  0xac   : > { %2700 = vrot.lane.b32.xlu0 %v2654_v0, %s6371_s9  ;;  %v2063_v0 = vrot.slane %v2061_v23, 1  ;;  %v1927_v23 = vrot.slane %v1925_v28, 1 }
  0xad   : > { %v7101_v39 = vpop.permute.xlu0 %858  ;;  %3068 = vrot.lane.b32.xlu1 %v2932_v32, %s6372_s10  ;;  %v7117_v32 = vld [vmem:[%s6464_s30 + $0x2c] ss:$0 sps:$4 sm:$0x11]   ;;  %v1923_v28 = vor.u32 %v1922_v6, %v1919_v12  ;;  %v3250_v12 = vor.u32 %v3249_v51, %v3245_v55  ;;  %v3540_v51 = vrot.slane %v7129_v1, 1  ;;  %v3781_v27 = vshrl.u32 %v7129_v1, 16 }
  0xae   : > { %9299 = vst [vmem:[#allocation18_spill] sm:$0xff] %v7101_v39  ;;  %v7106_v60 = vpop.permute.xlu1 %864  ;;  %v3348_v39 = vshll.u32 %v7110_v34, 16  ;;  %v1931_v57 = vor.u32 %v1930_v10, %v1927_v23  ;;  %v2383_v10 = vshll.u32 %v7140_v33, 16  ;;  %v3517_v36 = vrot.slane %v7117_v32, 1 }
  0xaf   : > { %v3784_v63 = vshll.u32 %v7129_v1, 16 }
  0xb0   : > { %3052 = vrot.lane.b32.xlu0 %v2796_v11, %s6372_s10  ;;  %v2067_v11 = vor.u32 %v2066_v44, %v2063_v0  ;;  %v3346_v44 = vor.u32 %v3345_v54, %v3341_v16  ;;  %v1932_v31 = vsel %vm1051_vm2, %v1923_v28, %v1931_v57  ;;  %v6054_v54 = vld [vmem:[%s6464_s30 + $0x8c] ss:$0 sps:$4 sm:$0x33]   ;;  %v2484_v28 = vshll.u32 %v7047_v9, 16 }
  0xb1   : > { %v7113_v8 = vpop.permute.xlu0 %862  ;;  %1852 = vrot.lane.b32.xlu1 %v1814_v38, %s6373_s11  ;;  %v3252_v38 = vshll.u32 %v7117_v32, 16  ;;  %v3789_v48 = vshrl.u32 %v6054_v54, 16  ;;  %v7186_v57 = vld [vmem:[%s6464_s30 + $0x80] ss:$0 sps:$4 sm:$0x11]   ;;  %v3656_v9 = vshll.u32 %v6055_v40, 16 }
  0xb2   : > { %v7123_v46 = vpop.permute.xlu1 %868  ;;  %v2068_v0 = vsel %vm1051_vm2, %v2059_v7, %v2067_v11  ;;  %v1627_v7 = vshll.u32 %v6991_v19, 16  ;;  %v7171_v11 = vsel %vm3948_vm3, %v6543_v52, %v7065_v3  ;;  %v3792_v52 = vshll.u32 %v6054_v54, 16 }
  0xb3   : > { %v3254_v6 = vrot.slane %v3252_v38, 1  ;;  %v2477_v38 = vshrl.u32 %v5596_v25, 16  ;;  %v3783_v54 = vrot.slane %v3781_v27, 1  ;;  %v1632_v27 = vshll.u32 %v7186_v57, 16 }
  0xb4   : > { %1836 = vrot.lane.b32.xlu0 %v1790_v61, %s6373_s11  ;;  %v3350_v61 = vrot.slane %v3348_v39, 1  ;;  %v2479_v39 = vshll.u32 %v5596_v25, 16 }
  0xb5   : > { %3180 = vrot.lane.b32.xlu1 %v5660_v37, %s6374_s18  ;;  %v7144_v37 = vcombine.low %v5428_v22, %v7089_v30 }
  0xb6   : > { %v7133_v56 = vpop.permute.xlu0 %866  ;;  %v3351_v30 = vsel %vm649_vm0, %v3346_v44, %v3350_v61  ;;  %v2481_v22 = vrot.slane %v2479_v39, 1  ;;  %v2385_v44 = vrot.slane %v2383_v10, 1  ;;  %v3791_v39 = vrot.slane %v3789_v48, 1 }
  0xb7   : > { %v7137_v24 = vpop.permute.xlu1 %872  ;;  %v3516_v20 = vrot.slane %v7144_v37, 1  ;;  %v3645_v61 = vshrl.u32 %v7144_v37, 16  ;;  %v3648_v1 = vshll.u32 %v7144_v37, 16  ;;  %v2486_v10 = vrot.slane %v2484_v28, 1 }
  0xb8   : > { %3164 = vrot.lane.b32.xlu0 %v5652_v62, %s6374_s18  ;;  %v3541_v62 = vrot.slane %v7110_v34, 1  ;;  %v3255_v34 = vsel %vm649_vm0, %v3250_v12, %v3254_v6  ;;  %v2388_v6 = vshll.u32 %v7063_v41, 16  ;;  %v2482_v37 = vor.u32 %v2481_v22, %v2477_v38 }
  0xb9   : > { %2204 = vrot.lane.b32.xlu1 %v2068_v0, %s6375_s19  ;;  %v2381_v0 = vshrl.u32 %v7140_v33, 16  ;;  %v3647_v4 = vrot.slane %v3645_v61, 1 }
  0xba   : > { %v7154_v16 = vpop.permute.xlu0 %870  ;;  %v3542_v55 = vsel %vm9278_vm1, %v3540_v51, %v3541_v62  ;;  %v3794_v51 = vrot.slane %v3792_v52, 2  ;;  %v7213_v52 = vld [vmem:[%s6464_s30 + $0x20] ss:$0 sps:$4 sm:$0x11]   ;;  %v2390_v22 = vrot.slane %v2388_v6, 1 }
  0xbb   : > { %v7165_v23 = vpop.permute.xlu1 %973  ;;  %v2386_v38 = vor.u32 %v2385_v44, %v2381_v0 }
  0xbc   : > { %2188 = vrot.lane.b32.xlu0 %v1932_v31, %s6375_s19  ;;  %v3653_v31 = vshrl.u32 %v6055_v40, 16  ;;  %v3795_v61 = vor.u32 %v3794_v51, %v3791_v39  ;;  %v7234_v39 = vld [vmem:[%s6464_s30 + $0x8c] ss:$0 sps:$4 sm:$0x11]  }
  0xbd   : > { %3452 = vrot.lane.b32.xlu1 %v3351_v30, %s6376_s21  ;;  %v3786_v30 = vrot.slane %v3784_v63, 2  ;;  %v5357_v63 = vld [vmem:[%s6464_s30 + $0x84] sm:$0xe] }
  0xbe   : > { %v7181_v3 = vpop.permute.xlu0 %971 }
  0xbf   : > { %v978_v32 = vpop.permute.xlu1 %977  ;;  %v3787_v28 = vor.u32 %v3786_v30, %v3783_v54  ;;  %v1634_v54 = vrot.slane %v1632_v27, 1  ;;  %v1529_v30 = vshrl.u32 %v6933_v47, 16 }
  0xc0   : > { %3436 = vrot.lane.b32.xlu0 %v3255_v34, %s6376_s21  ;;  %v7193_v12 = vsel %vm9276_vm4, %v3956_v2, %v978_v32  ;;  %v1625_v34 = vshrl.u32 %v6991_v19, 16  ;;  %v1629_v2 = vrot.slane %v1627_v7, 1  ;;  %v7199_v32 = vld [vmem:[%s6464_s30 + $0x88] sm:$0xf]  ;;  %v3518_v19 = vsel %vm9278_vm1, %v3516_v20, %v3517_v36 }
  0xc1   : > { %2316 = vrot.lane.b32.xlu1 %v5596_v25, %s6377_s23  ;;  %v3650_v25 = vrot.slane %v3648_v1, 2  ;;  %v3655_v7 = vrot.slane %v3653_v31, 1  ;;  %v3964_v20 = vsel %vm3948_vm3, %v6552_v58, %v7068_v17  ;;  %v2487_v1 = vsel %vm649_vm0, %v2482_v37, %v2486_v10  ;;  %v5269_v58 = vld [vmem:[%s6464_s30 + $0x18] sm:$0xe] }
  0xc2   : > { %v976_v62 = vpop.permute.xlu0 %975  ;;  %v1630_v31 = vor.u32 %v1629_v2, %v1625_v34  ;;  %v2391_v10 = vsel %vm649_vm0, %v2386_v38, %v2390_v22  ;;  %v3796_v34 = vsel %vm1051_vm2, %v3787_v28, %v3795_v61  ;;  %v2680_v38 = vrot.slane %v7234_v39, 1  ;;  %v7265_v22 = vld [vmem:[%s6464_s30 + $0x2c] ss:$0 sps:$4 sm:$0x11]   ;;  %v5277_v28 = vld [vmem:[%s6464_s30 + $0x78] sm:$0xe] }
  0xc3   : > { %v7202_v41 = vsel %vm9276_vm4, %v3954_v49, %v976_v62  ;;  %v982_v40 = vpop.permute.xlu1 %981  ;;  %v3658_v49 = vrot.slane %v3656_v9, 2  ;;  %v7225_v9 = vcombine.low %v5357_v63, %v7199_v32  ;;  %v3651_v6 = vor.u32 %v3650_v25, %v3647_v4 }
  0xc4   : > { %2300 = vrot.lane.b32.xlu0 %v7140_v33, %s6377_s23  ;;  %v7209_v48 = vsel %vm9276_vm4, %v3960_v29, %v982_v40  ;;  %v7217_v33 = vld [vmem:[%s6464_s30 + $0x28] sm:$0xf]  ;;  %v5349_v29 = vld [vmem:[%s6464_s30 + $0x24] sm:$0xe]  ;;  %v9300_v62 = vshll.u32 %v6933_v47, 16  ;;  %v3962_v4 = vsel %vm3948_vm3, %v6570_v15, %v7077_v5  ;;  %v7255_v15 = vcombine.low %v5269_v58, %v6927_v18 }
  0xc5   : > { %3580 = vrot.lane.b32.xlu1 %v3542_v55, %s6378_s26  ;;  %v6062_v55 = vld [vmem:[%s6464_s30 + $0x8c] ss:$0 sps:$4 sm:$0x33]   ;;  %v3659_v51 = vor.u32 %v3658_v49, %v3655_v7  ;;  %v5621_v2 = vcombine.low %v5349_v29, %v7217_v33  ;;  %v2934_v25 = vshrl.u32 %v7225_v9, 16  ;;  %v2937_v27 = vshll.u32 %v7225_v9, 16 }
  0xc6   : > { %v980_v36 = vpop.permute.xlu0 %979  ;;  %v1533_v37 = vrot.slane %v9300_v62, 1  ;;  %v6063_v40 = vld [vmem:[%s6464_s30 + $0x2c] ss:$0 sps:$4 sm:$0x33]   ;;  %v2942_v63 = vshrl.u32 %v6062_v55, 16  ;;  %v1635_v49 = vsel %vm649_vm0, %v1630_v31, %v1634_v54  ;;  %v2679_v18 = vrot.slane %v7225_v9, 1 }
  0xc7   : > { %v7230_v0 = vsel %vm9276_vm4, %v7171_v11, %v980_v36  ;;  %v986_v44 = vpop.permute.xlu1 %985  ;;  %v1536_v11 = vshll.u32 %v7213_v52, 16  ;;  %v3660_v61 = vsel %vm1051_vm2, %v3651_v6, %v3659_v51  ;;  %v2798_v36 = vshrl.u32 %v5621_v2, 16 }
  0xc8   : > { %3564 = vrot.lane.b32.xlu0 %v3518_v19, %s6378_s26  ;;  %v7239_v17 = vsel %vm9276_vm4, %v3964_v20, %v986_v44  ;;  %v2945_v19 = vshll.u32 %v6062_v55, 16  ;;  %v1534_v29 = vor.u32 %v1533_v37, %v1529_v30  ;;  %v2806_v55 = vshrl.u32 %v6063_v40, 16 }
  0xc9   : > { %2588 = vrot.lane.b32.xlu1 %v2487_v1, %s6379_s27  ;;  %v1538_v20 = vrot.slane %v1536_v11, 1  ;;  %v2801_v1 = vshll.u32 %v5621_v2, 16  ;;  %v2809_v31 = vshll.u32 %v6063_v40, 16  ;;  %v2936_v54 = vrot.slane %v2934_v25, 1 }
  0xca   : > { %v984_v47 = vpop.permute.xlu0 %983  ;;  %v2939_v58 = vrot.slane %v2937_v27, 2  ;;  %v2944_v62 = vrot.slane %v2942_v63, 1  ;;  %v7275_v6 = vcombine.low %v5277_v28, %v6981_v21  ;;  %v3972_v9 = vsel %vm3948_vm3, %v6614_v59, %v7106_v60  ;;  %v6068_v60 = vld [vmem:[%s6464_s30 + $0x80] ss:$0 sps:$4 sm:$0x33]  }
  0xcb   : > { %v7258_v5 = vsel %vm9276_vm4, %v3962_v4, %v984_v47  ;;  %v7260_v7 = vpop.permute.xlu1 %989  ;;  %v2947_v4 = vrot.slane %v2945_v19, 2  ;;  %v2655_v51 = vrot.slane %v5621_v2, 1  ;;  %v2656_v37 = vrot.slane %v7265_v22, 1  ;;  %v5398_v27 = vld [vmem:[%s6464_s30 + $0x90] sm:$0xf] }
  0xcc   : > { %2572 = vrot.lane.b32.xlu0 %v2391_v10, %s6379_s27  ;;  %v3970_v11 = vsel %vm3948_vm3, %v6631_v26, %v7113_v8  ;;  %v3976_v10 = vsel %vm3948_vm3, %v6646_v45, %v7123_v46  ;;  %v1539_v59 = vsel %vm649_vm0, %v1534_v29, %v1538_v20  ;;  %v2803_v2 = vrot.slane %v2801_v1, 2  ;;  %v7300_v63 = vld [vmem:[%s6464_s30 + $0x94] sm:$0xf] }
  0xcd   : > { %3932 = vrot.lane.b32.xlu1 %v3796_v34, %s6380_s28  ;;  %v2800_v34 = vrot.slane %v2798_v36, 1  ;;  %v2808_v40 = vrot.slane %v2806_v55, 1  ;;  %v2811_v26 = vrot.slane %v2809_v31, 2  ;;  %v3974_v8 = vsel %vm3948_vm3, %v6667_v14, %v7133_v56 }
  0xce   : > { %v7272_v44 = vpop.permute.xlu0 %987  ;;  %v2681_v46 = vsel %vm9278_vm1, %v2679_v18, %v2680_v38  ;;  %v2940_v47 = vor.u32 %v2939_v58, %v2936_v54  ;;  %v2948_v25 = vor.u32 %v2947_v4, %v2944_v62  ;;  %v3980_v19 = vsel %vm3948_vm3, %v6676_v35, %v7137_v24  ;;  %v6069_v35 = vld [vmem:[%s6464_s30 + $0x20] ss:$0 sps:$4 sm:$0x33]   ;;  %v5382_v4 = vld [vmem:[%s6464_s30 + $0x30] sm:$0xf] }
  0xcf   : > { %v994_v30 = vpop.permute.xlu1 %993  ;;  %v2070_v14 = vshrl.u32 %v7275_v6, 16  ;;  %v2073_v38 = vshll.u32 %v7275_v6, 16  ;;  %v2078_v29 = vshrl.u32 %v6068_v60, 16  ;;  %v2081_v20 = vshll.u32 %v6068_v60, 16 }
  0xd0   : > { %3916 = vrot.lane.b32.xlu0 %v3660_v61, %s6380_s28  ;;  %v7289_v21 = vsel %vm9276_vm4, %v3972_v9, %v994_v30  ;;  %v2657_v61 = vsel %vm9278_vm1, %v2655_v51, %v2656_v37  ;;  %v2804_v24 = vor.u32 %v2803_v2, %v2800_v34  ;;  %v2812_v18 = vor.u32 %v2811_v26, %v2808_v40  ;;  %v7325_v9 = vld [vmem:[%s6464_s30 + $0x34] sm:$0xf]  ;;  %v7340_v26 = vld [vmem:[%s6464_s30 + $0x98] ss:$0 sps:$4 sm:$0x11]  }
  0xd1   : > { %1726 = vrot.lane.b32.xlu1 %v1635_v49, %s6370_s8  ;;  %v1815_v36 = vrot.slane %v7275_v6, 1  ;;  %v1816_v1 = vrot.slane %v7186_v57, 1  ;;  %v2949_v31 = vsel %vm1051_vm2, %v2940_v47, %v2948_v25  ;;  %v1791_v54 = vrot.slane %v7255_v15, 1 }
  0xd2   : > { %v992_v45 = vpop.permute.xlu0 %991  ;;  %v1792_v58 = vrot.slane %v7213_v52, 1  ;;  %v5661_v62 = vcombine.low %v5398_v27, %v7300_v63  ;;  %v2072_v6 = vrot.slane %v2070_v14, 1  ;;  %v1934_v57 = vshrl.u32 %v7255_v15, 16  ;;  %v7352_v27 = vld [vmem:[%s6464_s30 + $0x38] ss:$0 sps:$4 sm:$0x11]  }
  0xd3   : > { %v7306_v49 = vsel %vm9276_vm4, %v3970_v11, %v992_v45  ;;  %v998_v28 = vpop.permute.xlu1 %997  ;;  %v1937_v37 = vshll.u32 %v7255_v15, 16  ;;  %v2075_v52 = vrot.slane %v2073_v38, 2  ;;  %v2813_v60 = vsel %vm1051_vm2, %v2804_v24, %v2812_v18 }
  0xd4   : > { %1710 = vrot.lane.b32.xlu0 %v1539_v59, %s6370_s8  ;;  %v7312_v56 = vsel %vm9276_vm4, %v3976_v10, %v998_v28  ;;  %v2080_v10 = vrot.slane %v2078_v29, 1  ;;  %v2083_v59 = vrot.slane %v2081_v20, 2  ;;  %v5653_v34 = vcombine.low %v5382_v4, %v7325_v9  ;;  %v5318_v20 = vld [vmem:[%s6464_s30 + $0x84] sm:$0xf] }
  0xd5   : > { %2718 = vrot.lane.b32.xlu1 %v2681_v46, %s6371_s9  ;;  %v1942_v2 = vshrl.u32 %v6069_v35, 16  ;;  %v1945_v40 = vshll.u32 %v6069_v35, 16  ;;  %v3978_v15 = vsel %vm3948_vm3, %v6693_v13, %v7154_v16  ;;  %v1817_v45 = vsel %vm9278_vm1, %v1815_v36, %v1816_v1 }
  0xd6   : > { %v996_v55 = vpop.permute.xlu0 %995  ;;  %v3355_v46 = vshll.u32 %v5661_v62, 16  ;;  %v2084_v28 = vor.u32 %v2083_v59, %v2080_v10  ;;  %v1939_v14 = vrot.slane %v1937_v37, 2  ;;  %v1793_v13 = vsel %vm9278_vm1, %v1791_v54, %v1792_v58  ;;  %v5437_v58 = vld [vmem:[%s6464_s30 + $0x90] sm:$0xe] }
  0xd7   : > { %v7328_v30 = vsel %vm9276_vm4, %v3974_v8, %v996_v55  ;;  %v1002_v51 = vpop.permute.xlu1 %1001  ;;  %v3259_v16 = vshll.u32 %v5653_v34, 16  ;;  %v1944_v38 = vrot.slane %v1942_v2, 1  ;;  %v1947_v29 = vrot.slane %v1945_v40, 2 }
  0xd8   : > { %2702 = vrot.lane.b32.xlu0 %v2657_v61, %s6371_s9  ;;  %v7334_v11 = vsel %vm9276_vm4, %v3980_v19, %v1002_v51  ;;  %v2076_v19 = vor.u32 %v2075_v52, %v2072_v6  ;;  %v1936_v61 = vrot.slane %v1934_v57, 1  ;;  %v3353_v24 = vshrl.u32 %v5661_v62, 16 }
  0xd9   : > { %3070 = vrot.lane.b32.xlu1 %v2949_v31, %s6372_s10  ;;  %v3357_v18 = vrot.slane %v3355_v46, 1  ;;  %v3360_v36 = vshll.u32 %v7340_v26, 16  ;;  %v1639_v1 = vshll.u32 %v7035_v53, 16  ;;  %v5302_v31 = vld [vmem:[%s6464_s30 + $0x24] sm:$0xf]  ;;  %v1948_v6 = vor.u32 %v1947_v29, %v1944_v38 }
  0xda   : > { %v1000_v8 = vpop.permute.xlu0 %999  ;;  %v2085_v4 = vsel %vm1051_vm2, %v2076_v19, %v2084_v28  ;;  %v1940_v51 = vor.u32 %v1939_v14, %v1936_v61  ;;  %v3257_v57 = vshrl.u32 %v5653_v34, 16  ;;  %v3261_v37 = vrot.slane %v3259_v16, 1 }
  0xdb   : > { %v7347_v47 = vsel %vm9276_vm4, %v3978_v15, %v1000_v8  ;;  %v7349_v25 = vpop.permute.xlu1 %1326  ;;  %v3264_v52 = vshll.u32 %v7352_v27, 16  ;;  %v3358_v59 = vor.u32 %v3357_v18, %v3353_v24  ;;  %v7373_v2 = vcombine.low %v5318_v20, %v7199_v32  ;;  %v5429_v15 = vld [vmem:[%s6464_s30 + $0x30] sm:$0xe] }
  0xdc   : > { %3054 = vrot.lane.b32.xlu0 %v2813_v60, %s6372_s10  ;;  %v3362_v60 = vrot.slane %v3360_v36, 1  ;;  %v1543_v46 = vshll.u32 %v6955_v42, 16  ;;  %v1637_v19 = vshrl.u32 %v7035_v53, 16  ;;  %v7399_v61 = vcombine.low %v5429_v15, %v7325_v9  ;;  %v7412_v9 = vld [vmem:[%s6464_s30 + $0x38] ss:$0 sps:$4 sm:$0x33]  }
  0xdd   : > { %1854 = vrot.lane.b32.xlu1 %v1817_v45, %s6373_s11  ;;  %v6074_v45 = vld [vmem:[%s6464_s30 + $0x98] ss:$0 sps:$4 sm:$0x33]   ;;  %v3266_v28 = vrot.slane %v3264_v52, 1  ;;  %v3544_v36 = vrot.slane %v7340_v26, 1 }
  0xde   : > { %v7358_v35 = vpop.permute.xlu0 %1324  ;;  %v3665_v15 = vshll.u32 %v7399_v61, 16 }
  0xdf   : > { %v1331_v55 = vpop.permute.xlu1 %1330 }
  0xe0   : > { %1838 = vrot.lane.b32.xlu0 %v1793_v13, %s6373_s11  ;;  %v7366_v54 = vsel %vm9275_vm5, %v7193_v12, %v1331_v55  ;;  %v7376_v12 = vcombine.low %v5302_v31, %v7217_v33  ;;  %v7394_v33 = vrot.slane %v1639_v1, 1  ;;  %v3363_v13 = vsel %vm649_vm0, %v3358_v59, %v3362_v60  ;;  %v6090_v55 = vld [vmem:[%s9254_s1] sm:$0xff]  }
  0xe1   : > { %9301 = vst [vmem:[#allocation19_spill] sm:$0xff] %v7366_v54  ;;  %3182 = vrot.lane.b32.xlu1 %v5661_v62, %s6374_s18  ;;  %v7383_v62 = vcombine.low %v5437_v58, %v7300_v63  ;;  %v3262_v63 = vor.u32 %v3261_v37, %v3257_v57  ;;  %v3806_v1 = vshrl.u32 %v6074_v45, 16  ;;  %v2489_v58 = vshrl.u32 %v7373_v2, 16  ;;  %v7804_v54 = vld [vmem:[%s6464_s30 + $0xac] sm:$0xf] }
  0xe2   : > { %v1329_v10 = vpop.permute.xlu0 %1328  ;;  %v2400_v57 = vshll.u32 %v7265_v22, 16  ;;  %v9273_v60 = vmov 0   ;;  %v6093_v22 = vld [vmem:[%s9254_s1 + $0x8] sm:$0xff]  }
  0xe3   : > { %v7380_v40 = vsel %vm9275_vm5, %v7202_v41, %v1329_v10  ;;  %v1335_v8 = vpop.permute.xlu1 %1334  ;;  %v1949_v41 = vsel %vm1051_vm2, %v1940_v51, %v1948_v6  ;;  %v3543_v29 = vrot.slane %v7383_v62, 1  ;;  %v3798_v20 = vshrl.u32 %v7383_v62, 16  ;;  %4595 = vmatprep.subr.bf16.mxu0 %v9273_v60  ;;  %5847 = vmatprep.subr.bf16.mxu1 %v9273_v60 }
  0xe4   : > { %9302 = vst [vmem:[#allocation20_spill] sm:$0xff] %v7380_v40  ;;  %3166 = vrot.lane.b32.xlu0 %v5653_v34, %s6374_s18  ;;  %v7392_v32 = vsel %vm9275_vm5, %v7209_v48, %v1335_v8  ;;  %v2491_v34 = vshll.u32 %v7373_v2, 16  ;;  %v2395_v48 = vshll.u32 %v7376_v12, 16  ;;  %v3801_v24 = vshll.u32 %v7383_v62, 16  ;;  %4596 = vmatpush1.bf16.msra.mxu0 %v6090_v55 }
  0xe5   : > { %9303 = vst [vmem:[#allocation21_spill] sm:$0xff] %v7392_v32  ;;  %2206 = vrot.lane.b32.xlu1 %v2085_v4, %s6375_s19  ;;  %v3267_v31 = vsel %vm649_vm0, %v3262_v63, %v3266_v28  ;;  %v2496_v4 = vshll.u32 %v7234_v39, 16  ;;  %v2393_v51 = vshrl.u32 %v7376_v12, 16  ;;  %v7435_v10 = vrot.slane %v3798_v20, 1  ;;  %5859 = vmatpush1.bf16.msra.mxu1 %v6090_v55  ;;  %v7739_v32 = vld [vmem:[%s6464_s30 + $0x40] sm:$0xf] }
  0xe6   : > { %v1333_v14 = vpop.permute.xlu0 %1332  ;;  %v2493_v6 = vrot.slane %v2491_v34, 1  ;;  %v2397_v26 = vrot.slane %v2395_v48, 1  ;;  %v7437_v59 = vrot.slane %v3801_v24, 2  ;;  %v3662_v39 = vshrl.u32 %v7399_v61, 16  ;;  %4597 = vmatprep.subr.bf16.mxu0 %v9273_v60  ;;  %5848 = vmatprep.subr.bf16.mxu1 %v9273_v60 }
  0xe7   : > { %v7406_v16 = vsel %vm9275_vm5, %v7230_v0, %v1333_v14  ;;  %v1339_v38 = vpop.permute.xlu1 %1338  ;;  %v3809_v0 = vshll.u32 %v6074_v45, 16  ;;  %v7448_v8 = vld [vmem:[%s6464_s30 + $0x8c] ss:$0 sps:$4 sm:$0x11]   ;;  %v3519_v45 = vrot.slane %v7399_v61, 1  ;;  %v3670_v63 = vshrl.u32 %v7412_v9, 16 }
  0xe8   : > { %9304 = vst [vmem:[#allocation22_spill] sm:$0xff] %v7406_v16  ;;  %2190 = vrot.lane.b32.xlu0 %v1949_v41, %s6375_s19  ;;  %v7417_v18 = vsel %vm9275_vm5, %v7239_v17, %v1339_v38  ;;  %v3520_v41 = vrot.slane %v7352_v27, 1  ;;  %v3673_v28 = vshll.u32 %v7412_v9, 16  ;;  %v2494_v34 = vor.u32 %v2493_v6, %v2489_v58  ;;  %v7460_v38 = vld [vmem:[%s6464_s30 + $0x94] sm:$0xf]  ;;  %4598 = vmatpush1.bf16.msra.mxu0 %v6093_v22 }
  0xe9   : > { %9305 = vst [vmem:[#allocation23_spill] sm:$0xff] %v7417_v18  ;;  %3454 = vrot.lane.b32.xlu1 %v3363_v13, %s6376_s21  ;;  %v3811_v62 = vrot.slane %v3809_v0, 2  ;;  %v3545_v13 = vsel %vm9278_vm1, %v3543_v29, %v3544_v36  ;;  %v2498_v48 = vrot.slane %v2496_v4, 1  ;;  %v6096_v27 = vld [vmem:[%s9254_s1 + $0x10] sm:$0xff]   ;;  %v2398_v61 = vor.u32 %v2397_v26, %v2393_v51  ;;  %5860 = vmatpush1.bf16.msra.mxu1 %v6093_v22 }
  0xea   : > { %v1337_v17 = vpop.permute.xlu0 %1336  ;;  %v2402_v20 = vrot.slane %v2400_v57, 1  ;;  %v3804_v24 = vor.u32 %v7437_v59, %v7435_v10  ;;  %v7469_v29 = vrot.slane %v3662_v39, 1  ;;  %v7472_v9 = vld [vmem:[%s6464_s30 + $0x2c] ss:$0 sps:$4 sm:$0x11]   ;;  %v1644_v58 = vshll.u32 %v7448_v8, 16  ;;  %4599 = vmatprep.subr.bf16.mxu0 %v9273_v60  ;;  %5849 = vmatprep.subr.bf16.mxu1 %v9273_v60 }
  0xeb   : > { %v7431_v37 = vsel %vm9275_vm5, %v7258_v5, %v1337_v17  ;;  %v7433_v52 = vpop.permute.xlu1 %1342  ;;  %v3808_v5 = vrot.slane %v3806_v1, 1  ;;  %v5358_v36 = vld [vmem:[%s6464_s30 + $0x90] sm:$0xe]  ;;  %v7476_v1 = vld [vmem:[%s6464_s30 + $0x34] sm:$0xf]  ;;  %v3521_v51 = vsel %vm9278_vm1, %v3519_v45, %v3520_v41  ;;  %v3672_v17 = vrot.slane %v3670_v63, 1 }
  0xec   : > { %9306 = vst [vmem:[#allocation24_spill] sm:$0xff] %v7431_v37  ;;  %3438 = vrot.lane.b32.xlu0 %v3267_v31, %s6376_s21  ;;  %v3667_v31 = vrot.slane %v3665_v15, 2  ;;  %v5350_v4 = vld [vmem:[%s6464_s30 + $0x30] sm:$0xe]  ;;  %v3675_v6 = vrot.slane %v3673_v28, 2  ;;  %v7491_v57 = vcombine.low %v5358_v36, %v7460_v38  ;;  %v1545_v59 = vrot.slane %v1543_v46, 1  ;;  %4600 = vmatpush1.bf16.msra.mxu0 %v6096_v27 }
  0xed   : > { %2318 = vrot.lane.b32.xlu1 %v7373_v2, %s6377_s23  ;;  %v3812_v55 = vor.u32 %v3811_v62, %v3808_v5  ;;  %v6082_v10 = vld [vmem:[%s6464_s30 + $0x98] ss:$0 sps:$4 sm:$0x33]   ;;  %v2403_v5 = vsel %vm649_vm0, %v2398_v61, %v2402_v20  ;;  %v7507_v15 = vcombine.low %v5350_v4, %v7476_v1  ;;  %5861 = vmatpush1.bf16.msra.mxu1 %v6096_v27  ;;  %v5278_v4 = vld [vmem:[%s6464_s30 + $0x84] sm:$0xe]  ;;  %v9319_v18 = vmov 0  }
  0xee   : > { %v7456_v14 = vpop.permute.xlu0 %1340  ;;  %v7504_v62 = vld [vmem:[%s6464_s30 + $0x98] ss:$0 sps:$4 sm:$0x11]   ;;  %v3668_v63 = vor.u32 %v3667_v31, %v7469_v29  ;;  %v3676_v28 = vor.u32 %v3675_v6, %v3672_v17  ;;  %v2951_v53 = vshrl.u32 %v7491_v57, 16  ;;  %4601 = vmatprep.subr.bf16.mxu0 %v9273_v60  ;;  %5850 = vmatprep.subr.bf16.mxu1 %v9273_v60  ;;  %v7730_v37 = vld [vmem:[%s6464_s30 + $0xa0] sm:$0xf] }
  0xef   : > { %v1347_v2 = vpop.permute.xlu1 %1346  ;;  %v6083_v46 = vld [vmem:[%s6464_s30 + $0x38] ss:$0 sps:$4 sm:$0x33]   ;;  %v2683_v27 = vrot.slane %v7504_v62, 1  ;;  %v2815_v29 = vshrl.u32 %v7507_v15, 16 }
  0xf0   : > { %2302 = vrot.lane.b32.xlu0 %v7376_v12, %s6377_s23  ;;  %v7482_v0 = vsel %vm9275_vm5, %v7289_v21, %v1347_v2  ;;  %v1541_v12 = vshrl.u32 %v6955_v42, 16  ;;  %v2499_v21 = vsel %vm649_vm0, %v2494_v34, %v2498_v48  ;;  %v3813_v42 = vsel %vm1051_vm2, %v3804_v24, %v3812_v55  ;;  %v6097_v41 = vld [vmem:[%s9254_s1 + $0x18] sm:$0xff]  }
  0xf1   : > { %9307 = vst [vmem:[#allocation25_spill] sm:$0xff] %v7482_v0  ;;  %3582 = vrot.lane.b32.xlu1 %v3545_v13, %s6378_s26  ;;  %v1548_v13 = vshll.u32 %v7472_v9, 16  ;;  %v2962_v48 = vshll.u32 %v6082_v10, 16  ;;  %v7535_v24 = vld [vmem:[%s6464_s30 + $0x38] ss:$0 sps:$4 sm:$0x11]   ;;  %4602 = vmatpush1.bf16.msra.mxu0 %v6097_v41 }
  0xf2   : > { %v1345_v26 = vpop.permute.xlu0 %1344  ;;  %v1546_v20 = vor.u32 %v1545_v59, %v1541_v12  ;;  %v2818_v55 = vshll.u32 %v7507_v15, 16  ;;  %v2823_v31 = vshrl.u32 %v6083_v46, 16  ;;  %5862 = vmatpush1.bf16.msra.mxu1 %v6097_v41  ;;  %4603 = vmatprep.subr.bf16.mxu0 %v9273_v60 }
  0xf3   : > { %v7500_v39 = vsel %vm9275_vm5, %v7306_v49, %v1345_v26  ;;  %v1351_v22 = vpop.permute.xlu1 %1350  ;;  %v1642_v49 = vor.u32 %v7394_v33, %v1637_v19  ;;  %v2954_v19 = vshll.u32 %v7491_v57, 16  ;;  %v2959_v33 = vshrl.u32 %v6082_v10, 16  ;;  %5851 = vmatprep.subr.bf16.mxu1 %v9273_v60 }
  0xf4   : > { %9308 = vst [vmem:[#allocation26_spill] sm:$0xff] %v7500_v39  ;;  %3566 = vrot.lane.b32.xlu0 %v3521_v51, %s6378_s26  ;;  %v7512_v45 = vsel %vm9275_vm5, %v7312_v56, %v1351_v22  ;;  %v1646_v56 = vrot.slane %v1644_v58, 1  ;;  %v2826_v58 = vshll.u32 %v6083_v46, 16  ;;  %v3677_v51 = vsel %vm1051_vm2, %v3668_v63, %v3676_v28  ;;  %v5270_v22 = vld [vmem:[%s6464_s30 + $0x24] sm:$0xe] }
  0xf5   : > { %9309 = vst [vmem:[#allocation27_spill] sm:$0xff] %v7512_v45  ;;  %2590 = vrot.lane.b32.xlu1 %v2499_v21, %s6379_s27  ;;  %v1550_v6 = vrot.slane %v1548_v13, 1  ;;  %v2953_v26 = vrot.slane %v2951_v53, 1  ;;  %v2956_v21 = vrot.slane %v2954_v19, 2  ;;  %v2961_v10 = vrot.slane %v2959_v33, 1 }
  0xf6   : > { %v1349_v34 = vpop.permute.xlu0 %1348  ;;  %v1647_v17 = vsel %vm649_vm0, %v1642_v49, %v1646_v56  ;;  %v2964_v59 = vrot.slane %v2962_v48, 2  ;;  %v2659_v49 = vrot.slane %v7535_v24, 1  ;;  %v2817_v46 = vrot.slane %v2815_v29, 1  ;;  %v6276_v56 = vld [vmem:[%s6464_s30 + $0x88] sm:$0xf] }
  0xf7   : > { %v7531_v2 = vsel %vm9275_vm5, %v7328_v30, %v1349_v34  ;;  %v1355_v61 = vpop.permute.xlu1 %1354  ;;  %v6098_v30 = vld [vmem:[%s9254_s1 + $0x20] sm:$0xff]   ;;  %v2820_v41 = vrot.slane %v2818_v55, 2  ;;  %v2825_v63 = vrot.slane %v2823_v31, 1  ;;  %v2828_v28 = vrot.slane %v2826_v58, 2  ;;  %v5400_v48 = vld [vmem:[%s6464_s30 + $0x9c] sm:$0xf] }
  0xf8   : > { %9310 = vst [vmem:[#allocation28_spill] sm:$0xff] %v7531_v2  ;;  %2574 = vrot.lane.b32.xlu0 %v2403_v5, %s6379_s27  ;;  %v7541_v36 = vsel %vm9275_vm5, %v7334_v11, %v1355_v61  ;;  %v2682_v11 = vrot.slane %v7491_v57, 1  ;;  %v2658_v57 = vrot.slane %v7507_v15, 1  ;;  %4604 = vmatpush1.bf16.msra.mxu0 %v6098_v30  ;;  %v5566_v13 = vcombine.low %v5278_v4, %v6276_v56  ;;  %v6088_v61 = vld [vmem:[%s6464_s30 + $0x8c] ss:$0 sps:$4 sm:$0x33]  }
  0xf9   : > { %9311 = vst [vmem:[#allocation29_spill] sm:$0xff] %v7541_v36  ;;  %3934 = vrot.lane.b32.xlu1 %v3813_v42, %s6380_s28  ;;  %v1551_v15 = vsel %vm649_vm0, %v1546_v20, %v1550_v6  ;;  %5863 = vmatpush1.bf16.msra.mxu1 %v6098_v30  ;;  %v2957_v19 = vor.u32 %v2956_v21, %v2953_v26  ;;  %v6277_v29 = vld [vmem:[%s6464_s30 + $0x28] sm:$0xf]  ;;  %v7581_v20 = vld [vmem:[%s6464_s30 + $0xa0] sm:$0xf] }
  0xfa   : > { %v1353_v12 = vpop.permute.xlu0 %1352  ;;  %v2684_v53 = vsel %vm9278_vm1, %v2682_v11, %v2683_v27  ;;  %v2965_v33 = vor.u32 %v2964_v59, %v2961_v10  ;;  %4605 = vmatprep.subr.bf16.mxu0 %v9273_v60  ;;  %5852 = vmatprep.subr.bf16.mxu1 %v9273_v60  ;;  %v5558_v55 = vcombine.low %v5270_v22, %v6277_v29  ;;  %v6089_v58 = vld [vmem:[%s6464_s30 + $0x2c] ss:$0 sps:$4 sm:$0x33]   ;;  %v6104_v27 = vld [vmem:[%s9254_s1 + $0x30] sm:$0xff]   ;;  %v1818_v6 = vrot.slane %v5566_v13, 1 }
  0xfb   : > { %v7557_v5 = vsel %vm9275_vm5, %v7347_v47, %v1353_v12  ;;  %v7559_v42 = vpop.permute.xlu1 %1438  ;;  %v6101_v47 = vld [vmem:[%s9254_s1 + $0x28] sm:$0xff]   ;;  %v2660_v30 = vsel %vm9278_vm1, %v2658_v57, %v2659_v49  ;;  %v2821_v4 = vor.u32 %v2820_v41, %v2817_v46  ;;  %v1819_v11 = vrot.slane %v7448_v8, 1  ;;  %v7593_v12 = vld [vmem:[%s6464_s30 + $0x40] sm:$0xf] }
  0xfc   : > { %9312 = vst [vmem:[#allocation30_spill] sm:$0xff] %v7557_v5  ;;  %3918 = vrot.lane.b32.xlu0 %v3677_v51, %s6380_s28  ;;  %v2829_v51 = vor.u32 %v2828_v28, %v2825_v63  ;;  %4606 = vmatpush1.bf16.msra.mxu0 %v6101_v47  ;;  %v2087_v26 = vshrl.u32 %v5566_v13, 16  ;;  %v2090_v21 = vshll.u32 %v5566_v13, 16  ;;  %v2966_v59 = vsel %vm1051_vm2, %v2957_v19, %v2965_v33  ;;  %v6109_v13 = vld [vmem:[%s9254_s1 + $0x38] sm:$0xff]  }
  0xfd   : > { %1728 = vrot.lane.b32.xlu1 %v1647_v17, %s6370_s8  ;;  %v5384_v17 = vld [vmem:[%s6464_s30 + $0x3c] sm:$0xf]  ;;  %5864 = vmatpush1.bf16.msra.mxu1 %v6101_v47  ;;  %v7599_v22 = vcombine.low %v5400_v48, %v7581_v20  ;;  %v2095_v57 = vshrl.u32 %v6088_v61, 16  ;;  %v2098_v49 = vshll.u32 %v6088_v61, 16  ;;  %v1794_v8 = vrot.slane %v5558_v55, 1 }
  0xfe   : > { %v7570_v34 = vpop.permute.xlu0 %1436  ;;  %4607 = vmatprep.subr.bf16.mxu0 %v9273_v60  ;;  %5853 = vmatprep.subr.bf16.mxu1 %v9273_v60  ;;  %v1795_v41 = vrot.slane %v7472_v9, 1  ;;  %v2830_v63 = vsel %vm1051_vm2, %v2821_v4, %v2829_v51  ;;  %v7609_v28 = vcombine.low %v5384_v17, %v7593_v12  ;;  %v1951_v47 = vshrl.u32 %v5558_v55, 16  ;;  %v7627_v51 = vld [vmem:[%s6464_s30 + $0x44] ss:$0 sps:$4 sm:$0x11]  }
  0xff   : > { %v7578_v31 = vpop.permute.xlu1 %1442  ;;  %v1954_v56 = vshll.u32 %v5558_v55, 16  ;;  %v2092_v9 = vrot.slane %v2090_v21, 2  ;;  %v1962_v19 = vshll.u32 %v6089_v58, 16  ;;  %v1820_v48 = vsel %vm9278_vm1, %v1818_v6, %v1819_v11  ;;  %v7619_v55 = vld [vmem:[%s6464_s30 + $0xa4] ss:$0 sps:$4 sm:$0x11]  }
 0x100   : > { %9313 = vst [vmem:[#allocation31_spill] sm:$0xff] %v7578_v31  ;;  %1712 = vrot.lane.b32.xlu0 %v1551_v15, %s6370_s8  ;;  %4608 = vmatpush1.bf16.msra.mxu0 %v6104_v27  ;;  %v2089_v15 = vrot.slane %v2087_v26, 1  ;;  %v2097_v61 = vrot.slane %v2095_v57, 1  ;;  %v2100_v29 = vrot.slane %v2098_v49, 2  ;;  %v1953_v17 = vrot.slane %v1951_v47, 1 }
 0x101   : > { %2720 = vrot.lane.b32.xlu1 %v2684_v53, %s6371_s9  ;;  %v1959_v53 = vshrl.u32 %v6089_v58, 16  ;;  %5865 = vmatpush1.bf16.msra.mxu1 %v6104_v27  ;;  %v6112_v58 = vld [vmem:[%s9254_s1 + $0x40] sm:$0xff]   ;;  %v1796_v27 = vsel %vm9278_vm1, %v1794_v8, %v1795_v41  ;;  %v3271_v6 = vshll.u32 %v7609_v28, 16  ;;  %v1956_v26 = vrot.slane %v1954_v56, 2  ;;  %v5304_v56 = vld [vmem:[%s6464_s30 + $0x30] sm:$0xf] }
 0x102   : > { %v7595_v10 = vpop.permute.xlu0 %1440  ;;  %4609 = vmatprep.subr.bf16.mxu0 %v9273_v60  ;;  %5854 = vmatprep.subr.bf16.mxu1 %v9273_v60  ;;  %v2093_v11 = vor.u32 %v2092_v9, %v2089_v15  ;;  %v2101_v49 = vor.u32 %v2100_v29, %v2097_v61  ;;  %v3372_v41 = vshll.u32 %v7619_v55, 16  ;;  %v5320_v15 = vld [vmem:[%s6464_s30 + $0x90] sm:$0xf]  ;;  %v5386_v31 = vld [vmem:[%s6464_s30 + $0x48] sm:$0xf] }
 0x103   : > { %9314 = vst [vmem:[#allocation32_spill] sm:$0xff] %v7595_v10  ;;  %v7603_v46 = vpop.permute.xlu1 %1446  ;;  %v1961_v21 = vrot.slane %v1959_v53, 1  ;;  %v3273_v9 = vrot.slane %v3271_v6, 1  ;;  %v3276_v53 = vshll.u32 %v7627_v51, 16  ;;  %v1957_v61 = vor.u32 %v1956_v26, %v1953_v17 }
 0x104   : > { %9315 = vst [vmem:[#allocation33_spill] sm:$0xff] %v7603_v46  ;;  %2704 = vrot.lane.b32.xlu0 %v2660_v30, %s6371_s9  ;;  %v3367_v30 = vshll.u32 %v7599_v22, 16  ;;  %4610 = vmatpush1.bf16.msra.mxu0 %v6109_v13  ;;  %v7659_v36 = vcombine.low %v5320_v15, %v7460_v38  ;;  %v6118_v38 = vld [vmem:[%s9254_s1 + $0x50] sm:$0xff]   ;;  %v6100_v15 = vld [vmem:[%s6464_s30 + $0x44] ss:$0 sps:$4 sm:$0x33]  }
 0x105   : > { %3072 = vrot.lane.b32.xlu1 %v2966_v59, %s6372_s10  ;;  %v1964_v59 = vrot.slane %v1962_v19, 2  ;;  %5866 = vmatpush1.bf16.msra.mxu1 %v6109_v13  ;;  %v3269_v13 = vshrl.u32 %v7609_v28, 16  ;;  %v6113_v19 = vld [vmem:[%s9254_s1 + $0x48] sm:$0xff]  }
 0x106   : > { %v7615_v33 = vpop.permute.xlu0 %1444  ;;  %v3369_v8 = vrot.slane %v3367_v30, 1  ;;  %4611 = vmatprep.subr.bf16.mxu0 %v9273_v60  ;;  %5855 = vmatprep.subr.bf16.mxu1 %v9273_v60  ;;  %v3374_v60 = vrot.slane %v3372_v41, 1 }
 0x107   : > { %9316 = vst [vmem:[#allocation34_spill] sm:$0xff] %v7615_v33  ;;  %v7624_v4 = vpop.permute.xlu1 %1450  ;;  %v1965_v29 = vor.u32 %v1964_v59, %v1961_v21  ;;  %v3274_v17 = vor.u32 %v3273_v9, %v3269_v13 }
 0x108   : > { %9317 = vst [vmem:[#allocation35_spill] sm:$0xff] %v7624_v4  ;;  %3056 = vrot.lane.b32.xlu0 %v2830_v63, %s6372_s10  ;;  %v3365_v63 = vshrl.u32 %v7599_v22, 16  ;;  %4612 = vmatpush1.bf16.msra.mxu0 %v6112_v58  ;;  %v5430_v4 = vld [vmem:[%s6464_s30 + $0x3c] sm:$0xe] }
 0x109   : > { %1856 = vrot.lane.b32.xlu1 %v1820_v48, %s6373_s11  ;;  %v5438_v48 = vld [vmem:[%s6464_s30 + $0x9c] sm:$0xe]  ;;  %5867 = vmatpush1.bf16.msra.mxu1 %v6112_v58  ;;  %v1966_v26 = vsel %vm1051_vm2, %v1957_v61, %v1965_v29  ;;  %v7682_v21 = vcombine.low %v5430_v4, %v7593_v12  ;;  %v2501_v29 = vshrl.u32 %v7659_v36, 16 }
 0x10a   : > { %v7636_v57 = vpop.permute.xlu0 %1448  ;;  %v3370_v6 = vor.u32 %v3369_v8, %v3365_v63  ;;  %4613 = vmatprep.subr.bf16.mxu0 %v9319_v18  ;;  %5856 = vmatprep.subr.bf16.mxu1 %v9319_v18  ;;  %v7670_v58 = vcombine.low %v5438_v48, %v7581_v20  ;;  %v1555_v63 = vshll.u32 %v6947_v43, 16  ;;  %v6121_v12 = vld [vmem:[%s9254_s1 + $0x58] sm:$0xff]  }
 0x10b   : > { %9318 = vst [vmem:[#allocation36_spill] sm:$0xff] %v7636_v57  ;;  %v7642_v47 = vpop.permute.xlu1 %1454  ;;  %v3522_v61 = vrot.slane %v7682_v21, 1 }
 0x10c   : > { %1840 = vrot.lane.b32.xlu0 %v1796_v27, %s6373_s11  ;;  %v2102_v27 = vsel %vm1051_vm2, %v2093_v11, %v2101_v49  ;;  %v3278_v11 = vrot.slane %v3276_v53, 1  ;;  %4614 = vmatpush1.bf16.msra.mxu0 %v6113_v19  ;;  %v3375_v59 = vsel %vm649_vm0, %v3370_v6, %v3374_v60  ;;  %v2503_v49 = vshll.u32 %v7659_v36, 16 }
 0x10d   : > { %3184 = vrot.lane.b32.xlu1 %v7599_v22, %s6374_s18  ;;  %v7667_v22 = vcombine.low %v5304_v56, %v7476_v1  ;;  %v6099_v1 = vld [vmem:[%s6464_s30 + $0xa4] ss:$0 sps:$4 sm:$0x33]   ;;  %5868 = vmatpush1.bf16.msra.mxu1 %v6113_v19  ;;  %v3546_v4 = vrot.slane %v7670_v58, 1  ;;  %v3547_v56 = vrot.slane %v7619_v55, 1  ;;  %v3815_v13 = vshrl.u32 %v7670_v58, 16 }
 0x10e   : > { %v7655_v30 = vpop.permute.xlu0 %1452  ;;  %4615 = vmatprep.subr.bf16.mxu0 %v9319_v18  ;;  %5857 = vmatprep.subr.bf16.mxu1 %v9319_v18  ;;  %v3279_v60 = vsel %vm649_vm0, %v3274_v17, %v3278_v11  ;;  %v3818_v9 = vshll.u32 %v7670_v58, 16  ;;  %v3823_v53 = vshrl.u32 %v6099_v1, 16  ;;  %v3826_v19 = vshll.u32 %v6099_v1, 16 }
 0x10f   : > { %v7664_v5 = vpop.permute.xlu1 %1458  ;;  %v2407_v41 = vshll.u32 %v7667_v22, 16  ;;  %v2508_v55 = vshll.u32 %v7504_v62, 16  ;;  %v3523_v58 = vrot.slane %v7627_v51, 1  ;;  %v2405_v17 = vshrl.u32 %v7667_v22, 16 }
 0x110   : > { %9320 = vst [vmem:[#allocation37_spill] sm:$0xff] %v7664_v5  ;;  %3168 = vrot.lane.b32.xlu0 %v7609_v28, %s6374_s18  ;;  %4616 = vmatpush1.bf16.msra.mxu0 %v6118_v38  ;;  %v3679_v62 = vshrl.u32 %v7682_v21, 16  ;;  %v3682_v1 = vshll.u32 %v7682_v21, 16  ;;  %v3817_v51 = vrot.slane %v3815_v13, 1  ;;  %v3828_v20 = vrot.slane %v3826_v19, 2 }
 0x111   : > { %2208 = vrot.lane.b32.xlu1 %v2102_v27, %s6375_s19  ;;  %5869 = vmatpush1.bf16.msra.mxu1 %v6118_v38  ;;  %v2505_v27 = vrot.slane %v2503_v49, 1  ;;  %v2409_v11 = vrot.slane %v2407_v41, 1  ;;  %v2412_v38 = vshll.u32 %v7535_v24, 16  ;;  %v7722_v49 = vld [vmem:[%s6464_s30 + $0x98] ss:$0 sps:$4 sm:$0x11]   ;;  %v3548_v45 = vsel %vm9278_vm1, %v3546_v4, %v3547_v56 }
 0x112   : > { %v7684_v28 = vpop.permute.xlu0 %1456  ;;  %4617 = vmatprep.subr.bf16.mxu0 %v9319_v18  ;;  %5858 = vmatprep.subr.bf16.mxu1 %v9319_v18  ;;  %v3687_v18 = vshrl.u32 %v6100_v15, 16  ;;  %v3820_v24 = vrot.slane %v3818_v9, 2  ;;  %v3825_v41 = vrot.slane %v3823_v53, 1  ;;  %v5279_v21 = vld [vmem:[%s6464_s30 + $0x90] sm:$0xe]  ;;  %v1557_v9 = vrot.slane %v1555_v63, 1 }
 0x113   : > { %9321 = vst [vmem:[#allocation38_spill] sm:$0xff] %v7684_v28  ;;  %v7691_v8 = vpop.permute.xlu1 %1462  ;;  %v5359_v13 = vld [vmem:[%s6464_s30 + $0x9c] sm:$0xe]  ;;  %v6278_v53 = vld [vmem:[%s6464_s30 + $0x34] sm:$0xf]  ;;  %v2414_v2 = vrot.slane %v2412_v38, 1  ;;  %v2410_v63 = vor.u32 %v2409_v11, %v2405_v17 }
 0x114   : > { %9322 = vst [vmem:[#allocation39_spill] sm:$0xff] %v7691_v8  ;;  %2192 = vrot.lane.b32.xlu0 %v1966_v26, %s6375_s19  ;;  %v5271_v26 = vld [vmem:[%s6464_s30 + $0x30] sm:$0xe]  ;;  %4618 = vmatpush1.bf16.msra.mxu0 %v6121_v12  ;;  %v2506_v8 = vor.u32 %v2505_v27, %v2501_v29  ;;  %v3681_v4 = vrot.slane %v3679_v62, 1  ;;  %v3684_v56 = vrot.slane %v3682_v1, 2  ;;  %v3689_v29 = vrot.slane %v3687_v18, 1 }
 0x115   : > { %3456 = vrot.lane.b32.xlu1 %v3375_v59, %s6376_s21  ;;  %v3690_v59 = vshll.u32 %v6100_v15, 16  ;;  %5870 = vmatpush1.bf16.msra.mxu1 %v6121_v12  ;;  %v1651_v15 = vshll.u32 %v7022_v50, 16  ;;  %v7742_v19 = vcombine.low %v5271_v26, %v6278_v53  ;;  %v3524_v12 = vsel %vm9278_vm1, %v3522_v61, %v3523_v58  ;;  %v6110_v1 = vld [vmem:[%s6464_s30 + $0xa4] ss:$0 sps:$4 sm:$0x33]   ;;  %v9324_v18 = vld [vmem:[#allocation10_spill] sm:$0xff] }
 0x116   : > { %v7705_v48 = vpop.permute.xlu0 %1460  ;;  %v3829_v26 = vor.u32 %v3828_v20, %v3825_v41  ;;  %v7752_v53 = vcombine.low %v5359_v13, %v7730_v37  ;;  %v1649_v61 = vshrl.u32 %v7022_v50, 16  ;;  %v1656_v62 = vshll.u32 %v7722_v49, 16  ;;  %v6279_v17 = vld [vmem:[%s6464_s30 + $0x94] sm:$0xf]  ;;  %v5402_v5 = vld [vmem:[%s6464_s30 + $0xa8] sm:$0xf] }
 0x117   : > { %9323 = vst [vmem:[#allocation40_spill] sm:$0xff] %v7705_v48  ;;  %v7712_v6 = vpop.permute.xlu1 %1724  ;;  %v5351_v48 = vld [vmem:[%s6464_s30 + $0x3c] sm:$0xe]  ;;  %v3692_v27 = vrot.slane %v3690_v59, 2  ;;  %v1653_v58 = vrot.slane %v1651_v15, 1  ;;  %v7762_v11 = vcombine.low %v5279_v21, %v6279_v17  ;;  %v3685_v41 = vor.u32 %v3684_v56, %v3681_v4 }
 0x118   : > { %3440 = vrot.lane.b32.xlu0 %v3279_v60, %s6376_s21  ;;  %v7727_v60 = vld [vmem:[%s6464_s30 + $0x38] ss:$0 sps:$4 sm:$0x11]   ;;  %v7768_v50 = vcombine.low %v5351_v48, %v7739_v32  ;;  %v2415_v21 = vsel %vm649_vm0, %v2410_v63, %v2414_v2  ;;  %v7779_v17 = vld [vmem:[%s6464_s30 + $0xa4] ss:$0 sps:$4 sm:$0x11]  }
 0x119   : > { %2320 = vrot.lane.b32.xlu1 %v7659_v36, %s6377_s23  ;;  %v2510_v36 = vrot.slane %v2508_v55, 1  ;;  %v3821_v55 = vor.u32 %v3820_v24, %v3817_v51  ;;  %v1560_v59 = vshll.u32 %v7727_v60, 16  ;;  %v9325_v51 = vld [vmem:[#allocation13_spill] sm:$0xff]  ;;  %v3693_v15 = vor.u32 %v3692_v27, %v3689_v29  ;;  %v9327_v29 = vld [vmem:[#allocation18_spill] sm:$0xff]  ;;  %v9328_v27 = vld [vmem:[#allocation8_spill] sm:$0xff] }
 0x11a   : > { %v7734_v57 = vpop.permute.xlu0 %1708  ;;  %v9326_v24 = vld [vmem:[#allocation5_spill] sm:$0xff]  ;;  %v2968_v48 = vshrl.u32 %v7752_v53, 16  ;;  %v2976_v4 = vshrl.u32 %v6110_v1, 16  ;;  %v2979_v56 = vshll.u32 %v6110_v1, 16  ;;  %v2835_v16 = vshll.u32 %v7768_v50, 16 }
 0x11b   : > { %v7744_v46 = vpop.permute.xlu1 %2716  ;;  %v3830_v13 = vsel %vm1051_vm2, %v3821_v55, %v3829_v26  ;;  %v1562_v63 = vrot.slane %v1560_v59, 1  ;;  %v7791_v55 = vld [vmem:[%s6464_s30 + $0x44] ss:$0 sps:$4 sm:$0x11]   ;;  %v2832_v26 = vshrl.u32 %v7768_v50, 16  ;;  %v2685_v59 = vrot.slane %v7752_v53, 1 }
 0x11c   : > { %2304 = vrot.lane.b32.xlu0 %v7667_v22, %s6377_s23  ;;  %v2511_v22 = vsel %vm649_vm0, %v2506_v8, %v2510_v36  ;;  %v3950_v8 = vsel %vm3948_vm3, %v9326_v24, %v9325_v51  ;;  %v6111_v36 = vld [vmem:[%s6464_s30 + $0x44] ss:$0 sps:$4 sm:$0x33]   ;;  %v1654_v24 = vor.u32 %v1653_v58, %v1649_v61  ;;  %v3694_v61 = vsel %vm1051_vm2, %v3685_v41, %v3693_v15 }
 0x11d   : > { %3584 = vrot.lane.b32.xlu1 %v3548_v45, %s6378_s26  ;;  %v2971_v45 = vshll.u32 %v7752_v53, 16  ;;  %v9329_v58 = vshrl.u32 %v6947_v43, 16  ;;  %v2840_v1 = vshrl.u32 %v6111_v36, 16  ;;  %v2970_v33 = vrot.slane %v2968_v48, 1 }
 0x11e   : > { %v7755_v38 = vpop.permute.xlu0 %2700  ;;  %v3983_v41 = vsel %vm9276_vm4, %v3950_v8, %v7181_v3  ;;  %v2978_v15 = vrot.slane %v2976_v4, 1  ;;  %v2661_v53 = vrot.slane %v7768_v50, 1  ;;  %v2834_v48 = vrot.slane %v2832_v26, 1  ;;  %v9330_v4 = vld [vmem:[#allocation16_spill] sm:$0xff] }
 0x11f   : > { %v7764_v20 = vpop.permute.xlu1 %3068  ;;  %v2973_v0 = vrot.slane %v2971_v45, 2  ;;  %v2662_v45 = vrot.slane %v7791_v55, 1  ;;  %v4016_v8 = vsel %vm9275_vm5, %v3983_v41, %v7358_v35  ;;  %v6120_v35 = vld [vmem:[%s6464_s30 + $0x38] ss:$0 sps:$4 sm:$0x33]  }
 0x120   : > { %3568 = vrot.lane.b32.xlu0 %v3524_v12, %s6378_s26  ;;  %v1658_v12 = vrot.slane %v1656_v62, 1  ;;  %v1558_v62 = vor.u32 %v1557_v9, %v9329_v58  ;;  %v2837_v58 = vrot.slane %v2835_v16, 2  ;;  %v7829_v16 = vsel %vm9277_vm6, %v4016_v8, %v7570_v34 }
 0x121   : > { %2592 = vrot.lane.b32.xlu1 %v2511_v22, %s6379_s27  ;;  %v3966_v22 = vsel %vm3948_vm3, %v9328_v27, %v9327_v29  ;;  %v2843_v29 = vshll.u32 %v6111_v36, 16  ;;  %v2686_v27 = vrot.slane %v7779_v17, 1  ;;  %v2981_v36 = vrot.slane %v2979_v56, 2 }
 0x122   : > { %v7783_v51 = vpop.permute.xlu0 %3052  ;;  %v1659_v9 = vsel %vm649_vm0, %v1654_v24, %v1658_v12  ;;  %v3999_v3 = vsel %vm9276_vm4, %v3966_v22, %v7272_v44  ;;  %v2842_v24 = vrot.slane %v2840_v1, 1  ;;  %v1563_v44 = vsel %vm649_vm0, %v1558_v62, %v1562_v63  ;;  %v7834_v22 = vld [vmem:[%s6464_s30 + $0x4c] sm:$0xf] }
 0x123   : > { %v7788_v2 = vpop.permute.xlu1 %1852  ;;  %v2845_v12 = vrot.slane %v2843_v29, 2  ;;  %v7825_v50 = vsel %vm9275_vm5, %v3999_v3, %v7456_v14  ;;  %v2974_v1 = vor.u32 %v2973_v0, %v2970_v33  ;;  %v2982_v29 = vor.u32 %v2981_v36, %v2978_v15 }
 0x124   : > { %2576 = vrot.lane.b32.xlu0 %v2415_v21, %s6379_s27  ;;  %v6119_v21 = vld [vmem:[%s6464_s30 + $0x98] ss:$0 sps:$4 sm:$0x33]   ;;  %v7841_v14 = vcombine.low %v5402_v5, %v7804_v54  ;;  %v2104_v34 = vshrl.u32 %v7762_v11, 16  ;;  %v2663_v62 = vsel %vm9278_vm1, %v2661_v53, %v2662_v45  ;;  %v2838_v8 = vor.u32 %v2837_v58, %v2834_v48 }
 0x125   : > { %3936 = vrot.lane.b32.xlu1 %v3830_v13, %s6380_s28  ;;  %v2112_v3 = vshrl.u32 %v6119_v21, 16  ;;  %v2115_v63 = vshll.u32 %v6119_v21, 16  ;;  %v7850_v0 = vcombine.low %v5386_v31, %v7834_v22  ;;  %v1968_v5 = vshrl.u32 %v7742_v19, 16  ;;  %v7861_v48 = vld [vmem:[%s6464_s30 + $0xb0] ss:$0 sps:$4 sm:$0x11]  }
 0x126   : > { %v7809_v43 = vpop.permute.xlu0 %1836  ;;  %v1971_v33 = vshll.u32 %v7742_v19, 16  ;;  %v1979_v15 = vshll.u32 %v6120_v35, 16  ;;  %v2983_v21 = vsel %vm1051_vm2, %v2974_v1, %v2982_v29  ;;  %v1821_v53 = vrot.slane %v7762_v11, 1  ;;  %v7871_v1 = vld [vmem:[%s6464_s30 + $0x50] ss:$0 sps:$4 sm:$0x11]  }
 0x127   : > { %v7812_v13 = vpop.permute.xlu1 %3180  ;;  %v1822_v45 = vrot.slane %v7722_v49, 1  ;;  %v3379_v31 = vshll.u32 %v7841_v14, 16  ;;  %v1798_v49 = vrot.slane %v7727_v60, 1  ;;  %v3283_v29 = vshll.u32 %v7850_v0, 16  ;;  %v5439_v60 = vld [vmem:[%s6464_s30 + $0xa8] sm:$0xe] }
 0x128   : > { %3920 = vrot.lane.b32.xlu0 %v3694_v61, %s6380_s28  ;;  %v2687_v61 = vsel %vm9278_vm1, %v2685_v59, %v2686_v27  ;;  %v2846_v59 = vor.u32 %v2845_v12, %v2842_v24  ;;  %v1976_v27 = vshrl.u32 %v6120_v35, 16  ;;  %v2106_v24 = vrot.slane %v2104_v34, 1 }
 0x129   : > { %1730 = vrot.lane.b32.xlu1 %v1659_v9, %s6370_s8  ;;  %v2107_v9 = vshll.u32 %v7762_v11, 16  ;;  %v2117_v35 = vrot.slane %v2115_v63, 2  ;;  %v1797_v11 = vrot.slane %v7742_v19, 1  ;;  %v1970_v34 = vrot.slane %v1968_v5, 1 }
 0x12a   : > { %v7837_v26 = vpop.permute.xlu0 %3164  ;;  %v1981_v63 = vrot.slane %v1979_v15, 2  ;;  %v1823_v19 = vsel %vm9278_vm1, %v1821_v53, %v1822_v45  ;;  %v3384_v56 = vshll.u32 %v7861_v48, 16  ;;  %v5431_v15 = vld [vmem:[%s6464_s30 + $0x48] sm:$0xe]  ;;  %v3281_v39 = vshrl.u32 %v7850_v0, 16 }
 0x12b   : > { %v7843_v41 = vpop.permute.xlu1 %2204  ;;  %v2109_v12 = vrot.slane %v2107_v9, 2  ;;  %v1973_v9 = vrot.slane %v1971_v33, 2  ;;  %v3285_v53 = vrot.slane %v3283_v29, 1  ;;  %v3288_v45 = vshll.u32 %v7871_v1, 16 }
 0x12c   : > { %1714 = vrot.lane.b32.xlu0 %v1563_v44, %s6370_s8  ;;  %v2114_v44 = vrot.slane %v2112_v3, 1  ;;  %v1978_v3 = vrot.slane %v1976_v27, 1  ;;  %v5322_v27 = vld [vmem:[%s6464_s30 + $0x9c] sm:$0xf]  ;;  %v7889_v28 = vcombine.low %v5439_v60, %v7804_v54  ;;  %v4065_v29 = vsel %vm9277_vm6, %v7825_v50, %v7655_v30 }
 0x12d   : > { %2722 = vrot.lane.b32.xlu1 %v2687_v61, %s6371_s9  ;;  %v2847_v61 = vsel %vm1051_vm2, %v2838_v8, %v2846_v59  ;;  %v3377_v8 = vshrl.u32 %v7841_v14, 16  ;;  %v3381_v59 = vrot.slane %v3379_v31, 1  ;;  %v1799_v31 = vsel %vm9278_vm1, %v1797_v11, %v1798_v49 }
 0x12e   : > { %v7855_v36 = vpop.permute.xlu0 %2188  ;;  %v2118_v33 = vor.u32 %v2117_v35, %v2114_v44  ;;  %v1974_v40 = vor.u32 %v1973_v9, %v1970_v34  ;;  %v7893_v10 = vcombine.low %v5322_v27, %v7730_v37  ;;  %v7899_v11 = vcombine.low %v5431_v15, %v7834_v22  ;;  %v6126_v37 = vld [vmem:[%s6464_s30 + $0xb0] ss:$0 sps:$4 sm:$0x33]  }
 0x12f   : > { %v7864_v58 = vpop.permute.xlu1 %3452  ;;  %v3382_v35 = vor.u32 %v3381_v59, %v3377_v8  ;;  %vm4426_vm5 = vcmask 424960   ;;  %vm9280_vm4 = vcmask 523264   ;;  %v3286_v49 = vor.u32 %v3285_v53, %v3281_v39 }
 0x130   : > { %2706 = vrot.lane.b32.xlu0 %v2663_v62, %s6371_s9  ;;  %v3290_v34 = vrot.slane %v3288_v45, 1  ;;  %vm9279_vm6 = vcmask 982016   ;;  %v3549_v50 = vrot.slane %v7889_v28, 1  ;;  %v3550_v22 = vrot.slane %v7861_v48, 1 }
 0x131   : > { %3074 = vrot.lane.b32.xlu1 %v2983_v21, %s6372_s10  ;;  %v2110_v21 = vor.u32 %v2109_v12, %v2106_v24  ;;  %v1982_v24 = vor.u32 %v1981_v63, %v1978_v3  ;;  %v5306_v12 = vld [vmem:[%s6464_s30 + $0x3c] sm:$0xf]  ;;  %v4098_v9 = vsel %vm4080_vm7, %v4065_v29, %v7712_v6  ;;  %v2515_v63 = vshll.u32 %v7893_v10, 16 }
 0x132   : > { %v7875_v62 = vpop.permute.xlu0 %3436  ;;  %v2520_v8 = vshll.u32 %v7779_v17, 16  ;;  %v4312_v6 = vsel %vm4294_vm9, %v7744_v46, %v7764_v20  ;;  %v3832_v20 = vshrl.u32 %v7889_v28, 16  ;;  %v3840_v53 = vshrl.u32 %v6126_v37, 16 }
 0x133   : > { %v2317_v5 = vpop.permute.xlu1 %2316  ;;  %v2119_v54 = vsel %vm1051_vm2, %v2110_v21, %v2118_v33  ;;  %v1983_v30 = vsel %vm1051_vm2, %v1974_v40, %v1982_v24  ;;  %v4131_v40 = vsel %vm4113_vm8, %v4098_v9, %v7788_v2  ;;  %v4345_v17 = vsel %vm4327_vm11, %v4312_v6, %v7812_v13 }
 0x134   : > { %3058 = vrot.lane.b32.xlu0 %v2847_v61, %s6372_s10  ;;  %v3386_v61 = vrot.slane %v3384_v56, 1  ;;  %v7904_v56 = vcombine.low %v5306_v12, %v7739_v32  ;;  %v2513_v32 = vshrl.u32 %v7893_v10, 16  ;;  %v4164_v21 = vsel %vm4146_vm10, %v4131_v40, %v7843_v41  ;;  %v6127_v12 = vld [vmem:[%s6464_s30 + $0x50] ss:$0 sps:$4 sm:$0x33]  }
 0x135   : > { %1858 = vrot.lane.b32.xlu1 %v1823_v19, %s6373_s11  ;;  %v4197_v2 = vsel %vm4179_vm13, %v4164_v21, %v2317_v5  ;;  %v3835_v33 = vshll.u32 %v7889_v28, 16  ;;  %v4296_v13 = vsel %vm4294_vm9, %v7755_v38, %v7783_v51  ;;  %v3843_v24 = vshll.u32 %v6126_v37, 16  ;;  %v8003_v28 = vld [vmem:[%s6464_s30 + $0x4c] sm:$0xf] }
 0x136   : > { %v2301_v44 = vpop.permute.xlu0 %2300  ;;  %v3387_v39 = vsel %vm649_vm0, %v3382_v35, %v3386_v61  ;;  %v2417_v59 = vshrl.u32 %v7904_v56, 16  ;;  %v2517_v61 = vrot.slane %v2515_v63, 1  ;;  %v3842_v9 = vrot.slane %v3840_v53, 1  ;;  %v7970_v63 = vld [vmem:[%s6464_s30 + $0xa4] ss:$0 sps:$4 sm:$0x11]  }
 0x137   : > { %v3581_v19 = vpop.permute.xlu1 %3580  ;;  %v1661_v40 = vshrl.u32 %v9330_v4, 16  ;;  %v3525_v21 = vrot.slane %v7899_v11, 1  ;;  %v1668_v48 = vshll.u32 %v7970_v63, 16 }
 0x138   : > { %1842 = vrot.lane.b32.xlu0 %v1799_v31, %s6373_s11 }
 0x139   : > { %3186 = vrot.lane.b32.xlu1 %v7841_v14, %s6374_s18  ;;  %v4082_v14 = vsel %vm4080_vm7, %v7829_v16, %v7734_v57  ;;  %v3291_v57 = vsel %vm649_vm0, %v3286_v49, %v3290_v34  ;;  %v2419_v16 = vshll.u32 %v7904_v56, 16  ;;  %v3834_v49 = vrot.slane %v3832_v20, 1 }
 0x13a   : > { %v3565_v3 = vpop.permute.xlu0 %3564  ;;  %v4115_v41 = vsel %vm4113_vm8, %v4082_v14, %v7809_v43  ;;  %v4329_v43 = vsel %vm4327_vm11, %v4296_v13, %v7837_v26  ;;  %v3707_v14 = vshll.u32 %v6127_v12, 16  ;;  %v6134_v13 = vld [vmem:[%s6464_s30 + $0xb0] ss:$0 sps:$4 sm:$0x33]  }
 0x13b   : > { %v2589_v60 = vpop.permute.xlu1 %2588  ;;  %v4148_v5 = vsel %vm4146_vm10, %v4115_v41, %v7855_v36  ;;  %v4362_v51 = vsel %vm4360_vm12, %v4329_v43, %v7875_v62  ;;  %v3696_v62 = vshrl.u32 %v7899_v11, 16 }
 0x13c   : > { %3170 = vrot.lane.b32.xlu0 %v7850_v0, %s6374_s18  ;;  %v4378_v0 = vsel %vm4360_vm12, %v4345_v17, %v7864_v58  ;;  %v4230_v27 = vsel %vm4212_vm15, %v4197_v2, %v2589_v60  ;;  %v4181_v58 = vsel %vm4179_vm13, %v4148_v5, %v2301_v44  ;;  %v2424_v44 = vshll.u32 %v7791_v55, 16 }
 0x13d   : > { %2210 = vrot.lane.b32.xlu1 %v2119_v54, %s6375_s19  ;;  %v4411_v45 = vsel %vm4393_vm14, %v4378_v0, %v3581_v19  ;;  %v4271_v26 = vsel %vm9279_vm6, %v4230_v27, %v7744_v46  ;;  %v4395_v29 = vsel %vm4393_vm14, %v4362_v51, %v3565_v3  ;;  %v2421_v54 = vrot.slane %v2419_v16, 1  ;;  %v8009_v27 = vld [vmem:[%s6464_s30 + $0x44] ss:$0 sps:$4 sm:$0x11]  }
 0x13e   : > { %v2573_v15 = vpop.permute.xlu0 %2572  ;;  %v3699_v55 = vshll.u32 %v7899_v11, 16  ;;  %v3704_v3 = vshrl.u32 %v6127_v12, 16  ;;  %v9331_v60 = vshll.u32 %v9330_v4, 16  ;;  %v3551_v4 = vsel %vm9278_vm1, %v3549_v50, %v3550_v22  ;;  %v5352_v50 = vld [vmem:[%s6464_s30 + $0x48] sm:$0xe] }
 0x13f   : > { %v3933_v31 = vpop.permute.xlu1 %3932  ;;  %v4214_v36 = vsel %vm4212_vm15, %v4181_v58, %v2573_v15  ;;  %v2518_v17 = vor.u32 %v2517_v61, %v2513_v32  ;;  %v2522_v2 = vrot.slane %v2520_v8, 1  ;;  %v2426_v20 = vrot.slane %v2424_v44, 1 }
 0x140   : > { %2194 = vrot.lane.b32.xlu0 %v1983_v30, %s6375_s19  ;;  %v4444_v35 = vsel %vm4426_vm5, %v4411_v45, %v3933_v31  ;;  %v3837_v30 = vrot.slane %v3835_v33, 2  ;;  %v4247_v46 = vsel %vm9279_vm6, %v4214_v36, %v7755_v38  ;;  %v1665_v6 = vrot.slane %v9331_v60, 1  ;;  %v5360_v33 = vld [vmem:[%s6464_s30 + $0xa8] sm:$0xe] }
 0x141   : > { %3458 = vrot.lane.b32.xlu1 %v3387_v39, %s6376_s21  ;;  %5737 = vmatprep.mubr.msk.bf16.mxu1 %vm9280_vm4, %v4444_v35  ;;  %v3845_v39 = vrot.slane %v3843_v24, 2  ;;  %v3526_v38 = vrot.slane %v7871_v1, 1  ;;  %v2422_v1 = vor.u32 %v2421_v54, %v2417_v59  ;;  %v3698_v0 = vrot.slane %v3696_v62, 1  ;;  %v8022_v45 = vld [vmem:[%s6464_s30 + $0xb0] ss:$0 sps:$4 sm:$0x11]  }
 0x142   : > { %v3917_v19 = vpop.permute.xlu0 %3916  ;;  %4692 = vmatmul.mubr.bf16.vlgmr.msra.gmra.mrb[0].mxu1 %v4271_v26  ;;  %v3838_v41 = vor.u32 %v3837_v30, %v3834_v49  ;;  %v3701_v22 = vrot.slane %v3699_v55, 2  ;;  %v3706_v32 = vrot.slane %v3704_v3, 1  ;;  %v3709_v8 = vrot.slane %v3707_v14, 2  ;;  %v6135_v24 = vld [vmem:[%s6464_s30 + $0x50] ss:$0 sps:$4 sm:$0x33]  }
 0x143   : > { %v4428_v34 = vsel %vm4426_vm5, %v4395_v29, %v3917_v19  ;;  %v7967_v37 = vpop.permute.xlu1 %1726  ;;  %v1565_v59 = vshrl.u32 %v9324_v18, 16  ;;  %v3527_v15 = vsel %vm9278_vm1, %v3525_v21, %v3526_v38  ;;  %v5624_v31 = vcombine.low %v5352_v50, %v8003_v28  ;;  %v8032_v36 = vld [vmem:[%s6464_s30 + $0x50] ss:$0 sps:$4 sm:$0x11]   ;;  %v5272_v55 = vld [vmem:[%s6464_s30 + $0x3c] sm:$0xe] }
 0x144   : > { %3442 = vrot.lane.b32.xlu0 %v3291_v57, %s6376_s21  ;;  %5729 = vmatprep.mubr.msk.bf16.mxu0 %vm9280_vm4, %v4428_v34  ;;  %v7985_v57 = vld [vmem:[%s6464_s30 + $0xac] sm:$0xf]  ;;  %v9332_v12 = vshll.u32 %v9324_v18, 16  ;;  %v2427_v35 = vsel %vm649_vm0, %v2422_v1, %v2426_v20  ;;  %v1666_v61 = vor.u32 %v1665_v6, %v1661_v40  ;;  %v1670_v51 = vrot.slane %v1668_v48, 1  ;;  %v5280_v21 = vld [vmem:[%s6464_s30 + $0x9c] sm:$0xe] }
 0x145   : > { %4628 = vmatmul.mubr.bf16.vlgmr.msra.gmra.mrb[0].mxu0 %v4247_v46  ;;  %2322 = vrot.lane.b32.xlu1 %v7893_v10, %s6377_s23  ;;  %v3846_v10 = vor.u32 %v3845_v39, %v3842_v9  ;;  %v8015_v53 = vcombine.low %v5360_v33, %v7985_v57  ;;  %v3702_v44 = vor.u32 %v3701_v22, %v3698_v0  ;;  %v1572_v19 = vshll.u32 %v8009_v27, 16  ;;  %v5404_v0 = vld [vmem:[%s6464_s30 + $0xb4] sm:$0xf] }
 0x146   : > { %v7987_v16 = vpop.permute.xlu0 %1710  ;;  %v1569_v43 = vrot.slane %v9332_v12, 1  ;;  %v3710_v29 = vor.u32 %v3709_v8, %v3706_v32  ;;  %v2993_v49 = vshrl.u32 %v6134_v13, 16  ;;  %v2996_v62 = vshll.u32 %v6134_v13, 16  ;;  %v8057_v8 = vld [vmem:[%s6464_s30 + $0xb8] sm:$0xf] }
 0x147   : > { %v7997_v11 = vpop.permute.xlu1 %2718  ;;  %v3847_v26 = vsel %vm1051_vm2, %v3838_v41, %v3846_v10  ;;  %v2985_v18 = vshrl.u32 %v8015_v53, 16  ;;  %v2988_v54 = vshll.u32 %v8015_v53, 16  ;;  %v2849_v30 = vshrl.u32 %v5624_v31, 16 }
 0x148   : > { %2306 = vrot.lane.b32.xlu0 %v7904_v56, %s6377_s23  ;;  %v2523_v56 = vsel %vm649_vm0, %v2518_v17, %v2522_v2  ;;  %v2852_v9 = vshll.u32 %v5624_v31, 16  ;;  %v2857_v39 = vshrl.u32 %v6135_v24, 16  ;;  %v2860_v46 = vshll.u32 %v6135_v24, 16  ;;  %v5388_v24 = vld [vmem:[%s6464_s30 + $0x54] sm:$0xf] }
 0x149   : > { %3586 = vrot.lane.b32.xlu1 %v3551_v4, %s6378_s26  ;;  %v1671_v14 = vsel %vm649_vm0, %v1666_v61, %v1670_v51  ;;  %v1570_v40 = vor.u32 %v1569_v43, %v1565_v59  ;;  %v2689_v60 = vrot.slane %v8022_v45, 1  ;;  %v2665_v6 = vrot.slane %v8032_v36, 1  ;;  %v8074_v51 = vld [vmem:[%s6464_s30 + $0x58] sm:$0xf] }
 0x14a   : > { %v8018_v5 = vpop.permute.xlu0 %2702  ;;  %v3711_v38 = vsel %vm1051_vm2, %v3702_v44, %v3710_v29  ;;  %v1574_v4 = vrot.slane %v1572_v19, 1  ;;  %v2688_v17 = vrot.slane %v8015_v53, 1  ;;  %v2664_v2 = vrot.slane %v5624_v31, 1  ;;  %v6280_v53 = vld [vmem:[%s6464_s30 + $0x40] sm:$0xf] }
 0x14b   : > { %v8028_v58 = vpop.permute.xlu1 %3070  ;;  %v2987_v20 = vrot.slane %v2985_v18, 1  ;;  %v2990_v33 = vrot.slane %v2988_v54, 2  ;;  %v2995_v1 = vrot.slane %v2993_v49, 1  ;;  %v2998_v41 = vrot.slane %v2996_v62, 2 }
 0x14c   : > { %3570 = vrot.lane.b32.xlu0 %v3527_v15, %s6378_s26  ;;  %v2851_v50 = vrot.slane %v2849_v30, 1  ;;  %v2854_v10 = vrot.slane %v2852_v9, 2  ;;  %v2859_v22 = vrot.slane %v2857_v39, 1  ;;  %v2862_v32 = vrot.slane %v2860_v46, 2 }
 0x14d   : > { %2594 = vrot.lane.b32.xlu1 %v2523_v56, %s6379_s27  ;;  %v6140_v15 = vld [vmem:[%s6464_s30 + $0xa4] ss:$0 sps:$4 sm:$0x33]   ;;  %v5560_v13 = vcombine.low %v5272_v55, %v6280_v53  ;;  %v6281_v56 = vld [vmem:[%s6464_s30 + $0xa0] sm:$0xf]  ;;  %v1575_v12 = vsel %vm649_vm0, %v1570_v40, %v1574_v4  ;;  %v2690_v43 = vsel %vm9278_vm1, %v2688_v17, %v2689_v60  ;;  %v8071_v61 = vcombine.low %v5404_v0, %v8057_v8 }
 0x14e   : > { %v8040_v34 = vpop.permute.xlu0 %3054  ;;  %v5568_v31 = vcombine.low %v5280_v21, %v6281_v56  ;;  %v2991_v29 = vor.u32 %v2990_v33, %v2987_v20  ;;  %v2999_v19 = vor.u32 %v2998_v41, %v2995_v1  ;;  %v2855_v18 = vor.u32 %v2854_v10, %v2851_v50  ;;  %v8086_v60 = vld [vmem:[%s6464_s30 + $0xbc] ss:$0 sps:$4 sm:$0x11]  }
 0x14f   : > { %v8043_v3 = vpop.permute.xlu1 %1854  ;;  %v2863_v54 = vor.u32 %v2862_v32, %v2859_v22  ;;  %v2129_v9 = vshrl.u32 %v6140_v15, 16  ;;  %v2132_v39 = vshll.u32 %v6140_v15, 16  ;;  %v8083_v55 = vcombine.low %v5388_v24, %v8074_v51  ;;  %v8097_v41 = vld [vmem:[%s6464_s30 + $0x5c] ss:$0 sps:$4 sm:$0x11]  }
 0x150   : > { %2578 = vrot.lane.b32.xlu0 %v2427_v35, %s6379_s27  ;;  %v2666_v35 = vsel %vm9278_vm1, %v2664_v2, %v2665_v6  ;;  %v2121_v62 = vshrl.u32 %v5568_v31, 16  ;;  %v2124_v30 = vshll.u32 %v5568_v31, 16  ;;  %v1824_v46 = vrot.slane %v5568_v31, 1 }
 0x151   : > { %3938 = vrot.lane.b32.xlu1 %v3847_v26, %s6380_s28  ;;  %v6141_v26 = vld [vmem:[%s6464_s30 + $0x44] ss:$0 sps:$4 sm:$0x33]   ;;  %v1988_v40 = vshll.u32 %v5560_v13, 16  ;;  %v1825_v6 = vrot.slane %v7970_v63, 1  ;;  %v3391_v4 = vshll.u32 %v8071_v61, 16  ;;  %v3000_v2 = vsel %vm1051_vm2, %v2991_v29, %v2999_v19 }
 0x152   : > { %v8054_v48 = vpop.permute.xlu0 %1838  ;;  %v1993_v21 = vshrl.u32 %v6141_v26, 16  ;;  %v2864_v20 = vsel %vm1051_vm2, %v2855_v18, %v2863_v54  ;;  %v1800_v33 = vrot.slane %v5560_v13, 1  ;;  %v1801_v1 = vrot.slane %v8009_v27, 1  ;;  %v9334_v29 = vld [vmem:[#allocation14_spill] sm:$0xff]  ;;  %v9336_v54 = vld [vmem:[#allocation17_spill] sm:$0xff] }
 0x153   : > { %v8059_v59 = vpop.permute.xlu1 %3182  ;;  %v2123_v50 = vrot.slane %v2121_v62, 1  ;;  %v2126_v10 = vrot.slane %v2124_v30, 2  ;;  %v2131_v63 = vrot.slane %v2129_v9, 1  ;;  %v2134_v22 = vrot.slane %v2132_v39, 2  ;;  %v9335_v19 = vld [vmem:[#allocation6_spill] sm:$0xff]  ;;  %v9337_v62 = vld [vmem:[#allocation7_spill] sm:$0xff] }
 0x154   : > { %3922 = vrot.lane.b32.xlu0 %v3711_v38, %s6380_s28  ;;  %v1996_v38 = vshll.u32 %v6141_v26, 16  ;;  %v1990_v15 = vrot.slane %v1988_v40, 2  ;;  %v3389_v53 = vshrl.u32 %v8071_v61, 16  ;;  %v1995_v27 = vrot.slane %v1993_v21, 1  ;;  %v5432_v40 = vld [vmem:[%s6464_s30 + $0x54] sm:$0xe] }
 0x155   : > { %1732 = vrot.lane.b32.xlu1 %v1671_v14, %s6370_s8  ;;  %v1985_v14 = vshrl.u32 %v5560_v13, 16  ;;  %v3295_v13 = vshll.u32 %v8083_v55, 16  ;;  %v3393_v31 = vrot.slane %v3391_v4, 1  ;;  %v3396_v24 = vshll.u32 %v8086_v60, 16 }
 0x156   : > { %v8077_v44 = vpop.permute.xlu0 %3166  ;;  %v1998_v56 = vrot.slane %v1996_v38, 2  ;;  %v3952_v18 = vsel %vm3948_vm3, %v9335_v19, %v9334_v29  ;;  %v3968_v30 = vsel %vm3948_vm3, %v9337_v62, %v9336_v54  ;;  %v1802_v39 = vsel %vm9278_vm1, %v1800_v33, %v1801_v1 }
 0x157   : > { %v8079_v49 = vpop.permute.xlu1 %2206  ;;  %v1987_v32 = vrot.slane %v1985_v14, 1  ;;  %v5440_v14 = vld [vmem:[%s6464_s30 + $0xb4] sm:$0xe]  ;;  %v2127_v21 = vor.u32 %v2126_v10, %v2123_v50  ;;  %v2135_v38 = vor.u32 %v2134_v22, %v2131_v63  ;;  %v3300_v4 = vshll.u32 %v8097_v41, 16 }
 0x158   : > { %1716 = vrot.lane.b32.xlu0 %v1575_v12, %s6370_s8  ;;  %v9333_v12 = vld [vmem:[#allocation9_spill] sm:$0xff]  ;;  %v1999_v19 = vor.u32 %v1998_v56, %v1995_v27  ;;  %v3394_v54 = vor.u32 %v3393_v31, %v3389_v53  ;;  %v3398_v62 = vrot.slane %v3396_v24, 1  ;;  %vm9338_vm3 = vcmask 195584   ;;  %v9340_v63 = vld [vmem:[#allocation15_spill] sm:$0xff] }
 0x159   : > { %2724 = vrot.lane.b32.xlu1 %v2690_v43, %s6371_s9  ;;  %v1991_v29 = vor.u32 %v1990_v15, %v1987_v32  ;;  %v5308_v43 = vld [vmem:[%s6464_s30 + $0x48] sm:$0xf]  ;;  %v3985_v33 = vsel %vm9338_vm3, %v3952_v18, %v7165_v23  ;;  %v8130_v50 = vcombine.low %v5440_v14, %v8057_v8  ;;  %v8133_v10 = vcombine.low %v5432_v40, %v8074_v51 }
 0x15a   : > { %v8091_v17 = vpop.permute.xlu0 %2190  ;;  %v1675_v22 = vshll.u32 %v9340_v63, 16  ;;  %vm9341_vm6 = vcmask 293888   ;;  %v3302_v51 = vrot.slane %v3300_v4, 1  ;;  %v3553_v31 = vrot.slane %v8086_v60, 1 }
 0x15b   : > { %v8099_v0 = vpop.permute.xlu1 %3454  ;;  %v4018_v32 = vsel %vm9341_vm6, %v3985_v33, %v7349_v25  ;;  %vm9342_vm4 = vmmov %vm9341_vm6  ;;  %v3528_v24 = vrot.slane %v8133_v10, 1  ;;  %vm9346_vm6 = vcmask 982016   ;;  %v6147_v33 = vld [vmem:[%s6464_s30 + $0x5c] ss:$0 sps:$4 sm:$0x33]  }
 0x15c   : > { %2708 = vrot.lane.b32.xlu0 %v2666_v35, %s6371_s9  ;;  %v1826_v35 = vsel %vm9278_vm1, %v1824_v46, %v1825_v6  ;;  %v3293_v46 = vshrl.u32 %v8083_v55, 16  ;;  %v3297_v6 = vrot.slane %v3295_v13, 1  ;;  %vm9339_vm1 = vmmov %vm9338_vm3  ;;  %v8147_v13 = vcombine.low %v5308_v43, %v8003_v28 }
 0x15d   : > { %3076 = vrot.lane.b32.xlu1 %v3000_v2, %s6372_s10  ;;  %v5324_v2 = vld [vmem:[%s6464_s30 + $0xa8] sm:$0xf]  ;;  %v3552_v28 = vrot.slane %v8130_v50, 1  ;;  %v3529_v43 = vrot.slane %v8097_v41, 1  ;;  %v5353_v41 = vld [vmem:[%s6464_s30 + $0x54] sm:$0xe] }
 0x15e   : > { %v8107_v26 = vpop.permute.xlu0 %3438  ;;  %v8141_v23 = vcombine.low %v5324_v2, %v7985_v57  ;;  %v3298_v8 = vor.u32 %v3297_v6, %v3293_v46  ;;  %v2000_v57 = vsel %vm1051_vm2, %v1991_v29, %v1999_v19  ;;  %v2431_v14 = vshll.u32 %v8147_v13, 16 }
 0x15f   : > { %v2319_v9 = vpop.permute.xlu1 %2318 }
 0x160   : > { %3060 = vrot.lane.b32.xlu0 %v2864_v20, %s6372_s10  ;;  %v4001_v20 = vsel %vm9339_vm1, %v3968_v30, %v7260_v7  ;;  %vm9343_vm1 = vcmask 392192   ;;  %v2527_v18 = vshll.u32 %v8141_v23, 16  ;;  %v6146_v30 = vld [vmem:[%s6464_s30 + $0xbc] ss:$0 sps:$4 sm:$0x33]  }
 0x161   : > { %1860 = vrot.lane.b32.xlu1 %v1826_v35, %s6373_s11  ;;  %v4034_v15 = vsel %vm9342_vm4, %v4001_v20, %v7433_v52  ;;  %v4051_v7 = vsel %vm9343_vm1, %v4018_v32, %v7559_v42  ;;  %vm9344_vm3 = vmmov %vm9343_vm1  ;;  %v2136_v52 = vsel %vm1051_vm2, %v2127_v21, %v2135_v38  ;;  %v3399_v42 = vsel %vm649_vm0, %v3394_v54, %v3398_v62 }
 0x162   : > { %v2303_v1 = vpop.permute.xlu0 %2302  ;;  %v4067_v25 = vsel %vm9344_vm3, %v4034_v15, %v7642_v47  ;;  %v2525_v35 = vshrl.u32 %v8141_v23, 16  ;;  %v4084_v40 = vsel %vm4080_vm7, %v4051_v7, %v7987_v16  ;;  %v3852_v16 = vshll.u32 %v8130_v50, 16  ;;  %vm9348_vm3 = vmmov %vm9346_vm6 }
 0x163   : > { %v3583_v53 = vpop.permute.xlu1 %3582  ;;  %v4100_v27 = vsel %vm4080_vm7, %v4067_v25, %v7967_v37  ;;  %v4314_v37 = vsel %vm4294_vm9, %v7997_v11, %v8028_v58  ;;  %v3849_v58 = vshrl.u32 %v8130_v50, 16  ;;  %v3860_v54 = vshll.u32 %v6146_v30, 16 }
 0x164   : > { %1844 = vrot.lane.b32.xlu0 %v1802_v39, %s6373_s11  ;;  %v4133_v47 = vsel %vm4113_vm8, %v4100_v27, %v8043_v3  ;;  %v3303_v3 = vsel %vm649_vm0, %v3298_v8, %v3302_v51  ;;  %v4347_v21 = vsel %vm4327_vm11, %v4314_v37, %v8059_v59  ;;  %v4298_v59 = vsel %vm4294_vm9, %v8018_v5, %v8040_v34 }
 0x165   : > { %3188 = vrot.lane.b32.xlu1 %v8071_v61, %s6374_s18  ;;  %v4166_v39 = vsel %vm4146_vm10, %v4133_v47, %v8079_v49  ;;  %v4117_v49 = vsel %vm4113_vm8, %v4084_v40, %v8054_v48  ;;  %v3857_v48 = vshrl.u32 %v6146_v30, 16  ;;  %vm9345_vm4 = vcmask 523264   ;;  %v8235_v30 = vld [vmem:[%s6464_s30 + $0x50] ss:$0 sps:$4 sm:$0x11]  }
 0x166   : > { %v3567_v56 = vpop.permute.xlu0 %3566  ;;  %v4199_v38 = vsel %vm4179_vm13, %v4166_v39, %v2319_v9  ;;  %v4150_v9 = vsel %vm4146_vm10, %v4117_v49, %v8091_v17  ;;  %v2529_v32 = vrot.slane %v2527_v18, 1  ;;  %v2429_v15 = vshrl.u32 %v8147_v13, 16  ;;  %vm9347_vm1 = vmmov %vm9345_vm4 }
 0x167   : > { %v2591_v61 = vpop.permute.xlu1 %2590  ;;  %v4183_v29 = vsel %vm4179_vm13, %v4150_v9, %v2303_v1  ;;  %v2433_v8 = vrot.slane %v2431_v14, 1  ;;  %v3851_v51 = vrot.slane %v3849_v58, 1  ;;  %v3859_v25 = vrot.slane %v3857_v48, 1  ;;  %v8253_v14 = vld [vmem:[%s6464_s30 + $0x58] sm:$0xf] }
 0x168   : > { %3172 = vrot.lane.b32.xlu0 %v8083_v55, %s6374_s18  ;;  %v4380_v55 = vsel %vm4360_vm12, %v4347_v21, %v8099_v0  ;;  %v4232_v46 = vsel %vm4212_vm15, %v4199_v38, %v2591_v61  ;;  %v4331_v0 = vsel %vm4327_vm11, %v4298_v59, %v8077_v44  ;;  %v2532_v44 = vshll.u32 %v8022_v45, 16  ;;  %v6154_v58 = vld [vmem:[%s6464_s30 + $0xbc] ss:$0 sps:$4 sm:$0x33]  }
 0x169   : > { %2212 = vrot.lane.b32.xlu1 %v2136_v52, %s6375_s19  ;;  %v4413_v4 = vsel %vm4393_vm14, %v4380_v55, %v3583_v53  ;;  %v4364_v34 = vsel %vm4360_vm12, %v4331_v0, %v8107_v26  ;;  %v4274_v17 = vsel %vm9346_vm6, %v4232_v46, %v7997_v11  ;;  %v2436_v26 = vshll.u32 %v8032_v36, 16  ;;  %v8278_v48 = vld [vmem:[%s6464_s30 + $0xbc] ss:$0 sps:$4 sm:$0x11]  }
 0x16a   : > { %v2575_v6 = vpop.permute.xlu0 %2574  ;;  %v4397_v20 = vsel %vm4393_vm14, %v4364_v34, %v3567_v56  ;;  %v3854_v11 = vrot.slane %v3852_v16, 2  ;;  %v3862_v52 = vrot.slane %v3860_v54, 2  ;;  %v3713_v36 = vshrl.u32 %v8133_v10, 16  ;;  %v8224_v56 = vld [vmem:[%s6464_s30 + $0xb0] ss:$0 sps:$4 sm:$0x11]  }
 0x16b   : > { %v3935_v2 = vpop.permute.xlu1 %3934  ;;  %v4216_v62 = vsel %vm4212_vm15, %v4183_v29, %v2575_v6  ;;  %v3724_v27 = vshll.u32 %v6147_v33, 16  ;;  %v1673_v47 = vshrl.u32 %v9340_v63, 16  ;;  %v2534_v18 = vrot.slane %v2532_v44, 1  ;;  %v6155_v6 = vld [vmem:[%s6464_s30 + $0x5c] ss:$0 sps:$4 sm:$0x33]  }
 0x16c   : > { %2196 = vrot.lane.b32.xlu0 %v2000_v57, %s6375_s19  ;;  %v4446_v19 = vsel %vm4426_vm5, %v4413_v4, %v3935_v2  ;;  %v4250_v45 = vsel %vm9348_vm3, %v4216_v62, %v8018_v5  ;;  %v3716_v57 = vshll.u32 %v8133_v10, 16  ;;  %v1677_v37 = vrot.slane %v1675_v22, 1  ;;  %v8283_v34 = vld [vmem:[%s6464_s30 + $0x5c] ss:$0 sps:$4 sm:$0x11]  }
 0x16d   : > { %3460 = vrot.lane.b32.xlu1 %v3399_v42, %s6376_s21  ;;  %5738 = vmatprep.mubr.msk.bf16.mxu1 %vm9345_vm4, %v4446_v19  ;;  %v3721_v42 = vshrl.u32 %v6147_v33, 16  ;;  %vm9349_vm4 = vcmask 1046528   ;;  %v2438_v50 = vrot.slane %v2436_v26, 1  ;;  %v3863_v63 = vor.u32 %v3862_v52, %v3859_v25  ;;  %v5281_v25 = vld [vmem:[%s6464_s30 + $0xa8] sm:$0xe] }
 0x16e   : > { %v3919_v1 = vpop.permute.xlu0 %3918  ;;  %4700 = vmatmul.mubr.bf16.gmra.mrb[4].mxu1 %v4274_v17  ;;  %v3554_v5 = vsel %vm9349_vm4, %v3552_v28, %v3553_v31  ;;  %vm9350_vm6 = vmmov %vm9349_vm4  ;;  %v5361_v28 = vld [vmem:[%s6464_s30 + $0xb4] sm:$0xe]  ;;  %v2434_v31 = vor.u32 %v2433_v8, %v2429_v15  ;;  %v3715_v22 = vrot.slane %v3713_v36, 1  ;;  %v3718_v10 = vrot.slane %v3716_v57, 2 }
 0x16f   : > { %v4430_v53 = vsel %vm4426_vm5, %v4397_v20, %v3919_v1  ;;  %v8213_v7 = vpop.permute.xlu1 %1728  ;;  %v3530_v60 = vsel %vm9350_vm6, %v3528_v24, %v3529_v43  ;;  %v3723_v24 = vrot.slane %v3721_v42, 1  ;;  %v3726_v43 = vrot.slane %v3724_v27, 2  ;;  %v5406_v27 = vld [vmem:[%s6464_s30 + $0xc0] sm:$0xf] }
 0x170   : > { %3444 = vrot.lane.b32.xlu0 %v3303_v3, %s6376_s21  ;;  %5730 = vmatprep.mubr.msk.bf16.mxu0 %vm9347_vm1, %v4430_v53  ;;  %v8247_v3 = vld [vmem:[%s6464_s30 + $0xb8] sm:$0xf]  ;;  %v1680_v40 = vshll.u32 %v8224_v56, 16  ;;  %v1577_v49 = vshrl.u32 %v9333_v12, 16  ;;  %v8269_v46 = vcombine.low %v5353_v41, %v8253_v14  ;;  %v9351_v16 = vshll.u32 %v9333_v12, 16  ;;  %vm9352_vm1 = vmmov %vm9349_vm4 }
 0x171   : > { %4636 = vmatmul.mubr.bf16.gmra.mrb[4].mxu0 %v4250_v45  ;;  %2324 = vrot.lane.b32.xlu1 %v8141_v23, %s6377_s23  ;;  %v2530_v23 = vor.u32 %v2529_v32, %v2525_v35  ;;  %v3855_v35 = vor.u32 %v3854_v11, %v3851_v51  ;;  %v8262_v38 = vcombine.low %v5361_v28, %v8247_v3  ;;  %v1584_v2 = vshll.u32 %v8235_v30, 16  ;;  %v5273_v53 = vld [vmem:[%s6464_s30 + $0x48] sm:$0xe]  ;;  %v8314_v41 = vld [vmem:[%s6464_s30 + $0x64] sm:$0xf]  ;;  %vm9353_vm3 = vmmov %vm9352_vm1 }
 0x172   : > { %v8227_v61 = vpop.permute.xlu0 %1712  ;;  %v1581_v59 = vrot.slane %v9351_v16, 1  ;;  %v2439_v9 = vsel %vm649_vm0, %v2434_v31, %v2438_v50  ;;  %v1678_v4 = vor.u32 %v1677_v37, %v1673_v47  ;;  %v3719_v29 = vor.u32 %v3718_v10, %v3715_v22  ;;  %v5390_v22 = vld [vmem:[%s6464_s30 + $0x60] sm:$0xf]  ;;  %v6160_v10 = vld [vmem:[%s6464_s30 + $0xb0] ss:$0 sps:$4 sm:$0x33]   ;;  %vm9354_vm4 = vmmov %vm9352_vm1 }
 0x173   : > { %v8239_v39 = vpop.permute.xlu1 %2720  ;;  %v3864_v0 = vsel %vm1051_vm2, %v3855_v35, %v3863_v63  ;;  %v3727_v19 = vor.u32 %v3726_v43, %v3723_v24  ;;  %v1682_v54 = vrot.slane %v1680_v40, 1  ;;  %v3002_v62 = vshrl.u32 %v8262_v38, 16  ;;  %v6282_v24 = vld [vmem:[%s6464_s30 + $0x4c] sm:$0xf]  ;;  %vm9355_vm6 = vmmov %vm9352_vm1 }
 0x174   : > { %2308 = vrot.lane.b32.xlu0 %v8147_v13, %s6377_s23  ;;  %v2535_v13 = vsel %vm649_vm0, %v2530_v23, %v2534_v18  ;;  %v3005_v17 = vshll.u32 %v8262_v38, 16  ;;  %v3010_v44 = vshrl.u32 %v6154_v58, 16  ;;  %v3013_v33 = vshll.u32 %v6154_v58, 16  ;;  %v6283_v40 = vld [vmem:[%s6464_s30 + $0xac] sm:$0xf] }
 0x175   : > { %3588 = vrot.lane.b32.xlu1 %v3554_v5, %s6378_s26  ;;  %v2866_v1 = vshrl.u32 %v8269_v46, 16  ;;  %v2869_v32 = vshll.u32 %v8269_v46, 16  ;;  %v2874_v15 = vshrl.u32 %v6155_v6, 16  ;;  %v2877_v26 = vshll.u32 %v6155_v6, 16 }
 0x176   : > { %v8258_v21 = vpop.permute.xlu0 %2704  ;;  %v1582_v8 = vor.u32 %v1581_v59, %v1577_v49  ;;  %v1586_v51 = vrot.slane %v1584_v2, 1  ;;  %v2691_v11 = vrot.slane %v8262_v38, 1  ;;  %v2692_v45 = vrot.slane %v8278_v48, 1  ;;  %v6161_v58 = vld [vmem:[%s6464_s30 + $0x50] ss:$0 sps:$4 sm:$0x33]  }
 0x177   : > { %v8266_v55 = vpop.permute.xlu1 %3072  ;;  %v3728_v52 = vsel %vm1051_vm2, %v3719_v29, %v3727_v19  ;;  %v1683_v36 = vsel %vm649_vm0, %v1678_v4, %v1682_v54  ;;  %v2667_v57 = vrot.slane %v8269_v46, 1  ;;  %v2668_v42 = vrot.slane %v8283_v34, 1 }
 0x178   : > { %3572 = vrot.lane.b32.xlu0 %v3530_v60, %s6378_s26  ;;  %v3004_v5 = vrot.slane %v3002_v62, 1  ;;  %v3007_v23 = vrot.slane %v3005_v17, 2  ;;  %v3012_v18 = vrot.slane %v3010_v44, 1  ;;  %v3015_v37 = vrot.slane %v3013_v33, 2  ;;  %v8307_v60 = vld [vmem:[%s6464_s30 + $0xc4] sm:$0xf] }
 0x179   : > { %2596 = vrot.lane.b32.xlu1 %v2535_v13, %s6379_s27  ;;  %v2868_v28 = vrot.slane %v2866_v1, 1  ;;  %v2871_v31 = vrot.slane %v2869_v32, 2  ;;  %v2876_v35 = vrot.slane %v2874_v15, 1  ;;  %v2879_v63 = vrot.slane %v2877_v26, 2 }
 0x17a   : > { %v8285_v12 = vpop.permute.xlu0 %3056  ;;  %v5561_v43 = vcombine.low %v5273_v53, %v6282_v24  ;;  %v5569_v13 = vcombine.low %v5281_v25, %v6283_v40  ;;  %v1587_v38 = vsel %vm649_vm0, %v1582_v8, %v1586_v51  ;;  %v2693_v46 = vsel %vm9352_vm1, %v2691_v11, %v2692_v45  ;;  %v8341_v51 = vld [vmem:[%s6464_s30 + $0xc8] ss:$0 sps:$4 sm:$0x11]   ;;  %v5433_v40 = vld [vmem:[%s6464_s30 + $0x60] sm:$0xe] }
 0x17b   : > { %v8289_v20 = vpop.permute.xlu1 %1856  ;;  %v3008_v6 = vor.u32 %v3007_v23, %v3004_v5  ;;  %v3016_v16 = vor.u32 %v3015_v37, %v3012_v18  ;;  %v8326_v59 = vcombine.low %v5406_v27, %v8307_v60  ;;  %v2669_v4 = vsel %vm9353_vm3, %v2667_v57, %v2668_v42  ;;  %v8349_v57 = vld [vmem:[%s6464_s30 + $0x68] ss:$0 sps:$4 sm:$0x11]   ;;  %v5441_v18 = vld [vmem:[%s6464_s30 + $0xc0] sm:$0xe] }
 0x17c   : > { %2580 = vrot.lane.b32.xlu0 %v2439_v9, %s6379_s27  ;;  %v2872_v2 = vor.u32 %v2871_v31, %v2868_v28  ;;  %v8332_v29 = vcombine.low %v5390_v22, %v8314_v41  ;;  %v2138_v19 = vshrl.u32 %v5569_v13, 16  ;;  %v2141_v54 = vshll.u32 %v5569_v13, 16 }
 0x17d   : > { %3940 = vrot.lane.b32.xlu1 %v3864_v0, %s6380_s28  ;;  %v2880_v0 = vor.u32 %v2879_v63, %v2876_v35  ;;  %v2146_v62 = vshrl.u32 %v6160_v10, 16  ;;  %v2149_v17 = vshll.u32 %v6160_v10, 16  ;;  %v2002_v44 = vshrl.u32 %v5561_v43, 16 }
 0x17e   : > { %v8304_v47 = vpop.permute.xlu0 %1840  ;;  %v2005_v33 = vshll.u32 %v5561_v43, 16  ;;  %v2010_v1 = vshrl.u32 %v6161_v58, 16  ;;  %v2013_v32 = vshll.u32 %v6161_v58, 16  ;;  %v3017_v26 = vsel %vm1051_vm2, %v3008_v6, %v3016_v16  ;;  %v5326_v16 = vld [vmem:[%s6464_s30 + $0xb4] sm:$0xf] }
 0x17f   : > { %v8309_v50 = vpop.permute.xlu1 %3184  ;;  %v1827_v53 = vrot.slane %v5569_v13, 1  ;;  %v1828_v8 = vrot.slane %v8224_v56, 1  ;;  %v3403_v11 = vshll.u32 %v8326_v59, 16  ;;  %v2881_v25 = vsel %vm1051_vm2, %v2872_v2, %v2880_v0 }
 0x180   : > { %3924 = vrot.lane.b32.xlu0 %v3728_v52, %s6380_s28  ;;  %v1803_v52 = vrot.slane %v5561_v43, 1  ;;  %v3307_v42 = vshll.u32 %v8332_v29, 16  ;;  %v2140_v27 = vrot.slane %v2138_v19, 1  ;;  %v2143_v56 = vrot.slane %v2141_v54, 2  ;;  %v5310_v54 = vld [vmem:[%s6464_s30 + $0x54] sm:$0xf] }
 0x181   : > { %1734 = vrot.lane.b32.xlu1 %v1683_v36, %s6370_s8  ;;  %v1804_v36 = vrot.slane %v8235_v30, 1  ;;  %v2148_v5 = vrot.slane %v2146_v62, 1  ;;  %v2151_v23 = vrot.slane %v2149_v17, 2  ;;  %v2004_v37 = vrot.slane %v2002_v44, 1 }
 0x182   : > { %v8322_v49 = vpop.permute.xlu0 %3168  ;;  %v2007_v28 = vrot.slane %v2005_v33, 2  ;;  %v2012_v31 = vrot.slane %v2010_v1, 1  ;;  %v2015_v35 = vrot.slane %v2013_v32, 2  ;;  %v1829_v63 = vsel %vm9354_vm4, %v1827_v53, %v1828_v8  ;;  %v9356_v53 = vld [vmem:[#allocation12_spill] sm:$0xff] }
 0x183   : > { %v8328_v9 = vpop.permute.xlu1 %2208  ;;  %v3401_v22 = vshrl.u32 %v8326_v59, 16  ;;  %v3405_v10 = vrot.slane %v3403_v11, 1  ;;  %v3408_v24 = vshll.u32 %v8341_v51, 16  ;;  %v3305_v13 = vshrl.u32 %v8332_v29, 16  ;;  %v9357_v11 = vld [vmem:[#allocation32_spill] sm:$0xff] }
 0x184   : > { %1718 = vrot.lane.b32.xlu0 %v1587_v38, %s6370_s8  ;;  %v3309_v38 = vrot.slane %v3307_v42, 1  ;;  %v3312_v58 = vshll.u32 %v8349_v57, 16  ;;  %v8366_v6 = vcombine.low %v5441_v18, %v8307_v60  ;;  %v2152_v2 = vor.u32 %v2151_v23, %v2148_v5  ;;  %v9361_v42 = vld [vmem:[#allocation26_spill] sm:$0xff] }
 0x185   : > { %2726 = vrot.lane.b32.xlu1 %v2693_v46, %s6371_s9  ;;  %v1805_v46 = vsel %vm9355_vm6, %v1803_v52, %v1804_v36  ;;  %v2008_v0 = vor.u32 %v2007_v28, %v2004_v37  ;;  %v2016_v19 = vor.u32 %v2015_v35, %v2012_v31  ;;  %v8372_v17 = vcombine.low %v5433_v40, %v8314_v41  ;;  %v9360_v36 = vld [vmem:[#allocation38_spill] sm:$0xff] }
 0x186   : > { %v8336_v15 = vpop.permute.xlu0 %2192  ;;  %v3406_v44 = vor.u32 %v3405_v10, %v3401_v22  ;;  %v3410_v33 = vrot.slane %v3408_v24, 1  ;;  %v3310_v32 = vor.u32 %v3309_v38, %v3305_v13  ;;  %v8375_v60 = vcombine.low %v5326_v16, %v8247_v3  ;;  %v6166_v24 = vld [vmem:[%s6464_s30 + $0xc8] ss:$0 sps:$4 sm:$0x33]  }
 0x187   : > { %v8344_v45 = vpop.permute.xlu1 %3456  ;;  %v1591_v8 = vshll.u32 %v9356_v53, 16  ;;  %vm9359_vm1 = vcmask 392192   ;;  %v8386_v41 = vcombine.low %v5310_v54, %v8253_v14  ;;  %v3555_v5 = vrot.slane %v8366_v6, 1 }
 0x188   : > { %2710 = vrot.lane.b32.xlu0 %v2669_v4, %s6371_s9  ;;  %v2144_v4 = vor.u32 %v2143_v56, %v2140_v27  ;;  %vm9362_vm3 = vmmov %vm9359_vm1  ;;  %v2017_v56 = vsel %vm1051_vm2, %v2008_v0, %v2016_v19  ;;  %v3556_v23 = vrot.slane %v8341_v51, 1  ;;  %v3411_v28 = vsel %vm649_vm0, %v3406_v44, %v3410_v33  ;;  %v6167_v33 = vld [vmem:[%s6464_s30 + $0x68] ss:$0 sps:$4 sm:$0x33]  }
 0x189   : > { %3078 = vrot.lane.b32.xlu1 %v3017_v26, %s6372_s10  ;;  %v3314_v26 = vrot.slane %v3312_v58, 1  ;;  %v4069_v27 = vsel %vm9362_vm3, %v9361_v42, %v9360_v36  ;;  %v3531_v14 = vrot.slane %v8372_v17, 1  ;;  %v3532_v31 = vrot.slane %v8349_v57, 1 }
 0x18a   : > { %v8355_v30 = vpop.permute.xlu0 %3440  ;;  %v2153_v3 = vsel %vm1051_vm2, %v2144_v4, %v2152_v2  ;;  %v4102_v18 = vsel %vm4080_vm7, %v4069_v27, %v8213_v7  ;;  %v2537_v22 = vshrl.u32 %v8375_v60, 16  ;;  %v2539_v10 = vshll.u32 %v8375_v60, 16 }
 0x18b   : > { %v2321_v43 = vpop.permute.xlu1 %2320  ;;  %v4316_v7 = vsel %vm4294_vm9, %v8239_v39, %v8266_v55  ;;  %v2443_v13 = vshll.u32 %v8386_v41, 16  ;;  %v3866_v55 = vshrl.u32 %v8366_v6, 16  ;;  %v3877_v54 = vshll.u32 %v6166_v24, 16 }
 0x18c   : > { %3062 = vrot.lane.b32.xlu0 %v2881_v25, %s6372_s10  ;;  %v9358_v25 = vld [vmem:[#allocation20_spill] sm:$0xff]  ;;  %v4349_v58 = vsel %vm4327_vm11, %v4316_v7, %v8309_v50  ;;  %v4300_v50 = vsel %vm4294_vm9, %v8258_v21, %v8285_v12  ;;  %vm9363_vm4 = vcmask 523264   ;;  %vm9364_vm6 = vcmask 982016  }
 0x18d   : > { %1862 = vrot.lane.b32.xlu1 %v1829_v63, %s6373_s11  ;;  %v4053_v52 = vsel %vm9359_vm1, %v9358_v25, %v9357_v11  ;;  %v3315_v63 = vsel %vm649_vm0, %v3310_v32, %v3314_v26  ;;  %v2441_v32 = vshrl.u32 %v8386_v41, 16  ;;  %v2445_v26 = vrot.slane %v2443_v13, 1  ;;  %vm9365_vm1 = vmmov %vm9363_vm4 }
 0x18e   : > { %v2305_v62 = vpop.permute.xlu0 %2304  ;;  %v4086_v38 = vsel %vm4080_vm7, %v4053_v52, %v8227_v61  ;;  %v3869_v61 = vshll.u32 %v8366_v6, 16  ;;  %v3868_v52 = vrot.slane %v3866_v55, 1  ;;  %vm9366_vm3 = vmmov %vm9364_vm6  ;;  %v3879_v27 = vrot.slane %v3877_v54, 2  ;;  %v8503_v55 = vld [vmem:[%s6464_s30 + $0x68] ss:$0 sps:$4 sm:$0x11]  }
 0x18f   : > { %v3585_v1 = vpop.permute.xlu1 %3584 }
 0x190   : > { %1846 = vrot.lane.b32.xlu0 %v1805_v46, %s6373_s11  ;;  %v3871_v36 = vrot.slane %v3869_v61, 2  ;;  %v5362_v61 = vld [vmem:[%s6464_s30 + $0xc0] sm:$0xe] }
 0x191   : > { %3190 = vrot.lane.b32.xlu1 %v8326_v59, %s6374_s18  ;;  %v4135_v59 = vsel %vm4113_vm8, %v4102_v18, %v8289_v20  ;;  %v2544_v20 = vshll.u32 %v8278_v48, 16  ;;  %v4382_v48 = vsel %vm4360_vm12, %v4349_v58, %v8344_v45  ;;  %v4333_v45 = vsel %vm4327_vm11, %v4300_v50, %v8322_v49  ;;  %v6174_v58 = vld [vmem:[%s6464_s30 + $0x68] ss:$0 sps:$4 sm:$0x33]  }
 0x192   : > { %v3569_v37 = vpop.permute.xlu0 %3568  ;;  %v4168_v40 = vsel %vm4146_vm10, %v4135_v59, %v8328_v9  ;;  %v4119_v9 = vsel %vm4113_vm8, %v4086_v38, %v8304_v47  ;;  %v4415_v4 = vsel %vm4393_vm14, %v4382_v48, %v3585_v1  ;;  %v3874_v47 = vshrl.u32 %v6166_v24, 16 }
 0x193   : > { %v2593_v35 = vpop.permute.xlu1 %2592  ;;  %v4201_v46 = vsel %vm4179_vm13, %v4168_v40, %v2321_v43  ;;  %v4152_v43 = vsel %vm4146_vm10, %v4119_v9, %v8336_v15  ;;  %v4366_v12 = vsel %vm4360_vm12, %v4333_v45, %v8355_v30  ;;  %v2541_v49 = vrot.slane %v2539_v10, 1  ;;  %v5248_v10 = vld [vmem:[%s6464_s30 + $0xb4] sm:$0xf] }
 0x194   : > { %3174 = vrot.lane.b32.xlu0 %v8332_v29, %s6374_s18  ;;  %v4234_v29 = vsel %vm4212_vm15, %v4201_v46, %v2593_v35  ;;  %v4185_v0 = vsel %vm4179_vm13, %v4152_v43, %v2305_v62  ;;  %v4399_v62 = vsel %vm4393_vm14, %v4366_v12, %v3569_v37  ;;  %v2448_v30 = vshll.u32 %v8283_v34, 16  ;;  %v8461_v37 = vld [vmem:[%s6464_s30 + $0x5c] ss:$0 sps:$4 sm:$0x11]  }
 0x195   : > { %2214 = vrot.lane.b32.xlu1 %v2153_v3, %s6375_s19  ;;  %v4277_v15 = vsel %vm9364_vm6, %v4234_v29, %v8239_v39  ;;  %v3876_v42 = vrot.slane %v3874_v47, 1  ;;  %v3730_v34 = vshrl.u32 %v8372_v17, 16  ;;  %v3733_v3 = vshll.u32 %v8372_v17, 16 }
 0x196   : > { %v2577_v16 = vpop.permute.xlu0 %2576  ;;  %v3741_v18 = vshll.u32 %v6167_v33, 16  ;;  %v2542_v35 = vor.u32 %v2541_v49, %v2537_v22  ;;  %v1593_v24 = vrot.slane %v1591_v8, 1  ;;  %v2446_v40 = vor.u32 %v2445_v26, %v2441_v32  ;;  %v6177_v49 = vld [vmem:[%s6464_s30 + $0xc8] ss:$0 sps:$4 sm:$0x33]  }
 0x197   : > { %v3937_v2 = vpop.permute.xlu1 %3936  ;;  %v4218_v44 = vsel %vm4212_vm15, %v4185_v0, %v2577_v16  ;;  %v2450_v6 = vrot.slane %v2448_v30, 1  ;;  %v3880_v8 = vor.u32 %v3879_v27, %v3876_v42  ;;  %v3732_v22 = vrot.slane %v3730_v34, 1  ;;  %v8509_v16 = vld [vmem:[%s6464_s30 + $0xc4] sm:$0xf] }
 0x198   : > { %2198 = vrot.lane.b32.xlu0 %v2017_v56, %s6375_s19  ;;  %v4448_v19 = vsel %vm4426_vm5, %v4415_v4, %v3937_v2  ;;  %v4253_v39 = vsel %vm9366_vm3, %v4218_v44, %v8258_v21  ;;  %v3738_v56 = vshrl.u32 %v6167_v33, 16  ;;  %v3743_v17 = vrot.slane %v3741_v18, 2  ;;  %v8514_v2 = vld [vmem:[%s6464_s30 + $0xbc] ss:$0 sps:$4 sm:$0x11]  }
 0x199   : > { %3462 = vrot.lane.b32.xlu1 %v3411_v28, %s6376_s21  ;;  %5739 = vmatprep.mubr.msk.bf16.mxu1 %vm9363_vm4, %v4448_v19  ;;  %v1589_v28 = vshrl.u32 %v9356_v53, 16  ;;  %vm9367_vm4 = vcmask 1046528   ;;  %v3872_v53 = vor.u32 %v3871_v36, %v3868_v52  ;;  %v2451_v9 = vsel %vm649_vm0, %v2446_v40, %v2450_v6  ;;  %v5274_v33 = vld [vmem:[%s6464_s30 + $0x54] sm:$0xe] }
 0x19a   : > { %v3921_v1 = vpop.permute.xlu0 %3920  ;;  %4708 = vmatmul.mubr.bf16.gmra.mrb[8].mxu1 %v4277_v15  ;;  %v3557_v21 = vsel %vm9367_vm4, %v3555_v5, %v3556_v23  ;;  %vm9368_vm6 = vmmov %vm9367_vm4  ;;  %v8485_v5 = vld [vmem:[%s6464_s30 + $0x64] sm:$0xf]  ;;  %v5354_v23 = vld [vmem:[%s6464_s30 + $0x60] sm:$0xe]  ;;  %v3740_v57 = vrot.slane %v3738_v56, 1  ;;  %v2891_v54 = vshrl.u32 %v6174_v58, 16  ;;  %v8522_v15 = vcombine.low %v5362_v61, %v8509_v16 }
 0x19b   : > { %v4432_v11 = vsel %vm4426_vm5, %v4399_v62, %v3921_v1  ;;  %v8450_v25 = vpop.permute.xlu1 %1730  ;;  %v3533_v51 = vsel %vm9368_vm6, %v3531_v14, %v3532_v31  ;;  %v1596_v14 = vshll.u32 %v8461_v37, 16  ;;  %v5626_v38 = vcombine.low %v5354_v23, %v8485_v5  ;;  %v8534_v36 = vld [vmem:[%s6464_s30 + $0xc8] ss:$0 sps:$4 sm:$0x11]   ;;  %v5392_v56 = vld [vmem:[%s6464_s30 + $0x6c] sm:$0xf] }
 0x19c   : > { %3446 = vrot.lane.b32.xlu0 %v3315_v63, %s6376_s21  ;;  %5731 = vmatprep.mubr.msk.bf16.mxu0 %vm9365_vm1, %v4432_v11  ;;  %v2546_v63 = vrot.slane %v2544_v20, 1  ;;  %v3735_v20 = vrot.slane %v3733_v3, 2  ;;  %v3881_v48 = vsel %vm1051_vm2, %v3872_v53, %v3880_v8  ;;  %v1594_v29 = vor.u32 %v1593_v24, %v1589_v28  ;;  %v6284_v24 = vld [vmem:[%s6464_s30 + $0x58] sm:$0xf]  ;;  %vm9369_vm1 = vmmov %vm9367_vm4 }
 0x19d   : > { %4644 = vmatmul.mubr.bf16.gmra.mrb[8].mxu0 %v4253_v39  ;;  %2326 = vrot.lane.b32.xlu1 %v8375_v60, %s6377_s23  ;;  %v8473_v60 = vld [vmem:[%s6464_s30 + $0xb8] sm:$0xf]  ;;  %v3744_v43 = vor.u32 %v3743_v17, %v3740_v57  ;;  %v1598_v4 = vrot.slane %v1596_v14, 1  ;;  %v2883_v0 = vshrl.u32 %v5626_v38, 16  ;;  %v2886_v19 = vshll.u32 %v5626_v38, 16  ;;  %vm9370_vm3 = vmmov %vm9369_vm1 }
 0x19e   : > { %v8464_v59 = vpop.permute.xlu0 %1714  ;;  %v8493_v31 = vcombine.low %v5248_v10, %v8473_v60  ;;  %v3736_v50 = vor.u32 %v3735_v20, %v3732_v22  ;;  %v2894_v12 = vshll.u32 %v6174_v58, 16  ;;  %v2670_v62 = vrot.slane %v5626_v38, 1  ;;  %v8544_v10 = vld [vmem:[%s6464_s30 + $0x70] sm:$0xf]  ;;  %vm9371_vm4 = vmmov %vm9369_vm1 }
 0x19f   : > { %v8477_v7 = vpop.permute.xlu1 %2722  ;;  %v2671_v1 = vrot.slane %v8503_v55, 1  ;;  %v1599_v30 = vsel %vm649_vm0, %v1594_v29, %v1598_v4  ;;  %v1692_v52 = vshll.u32 %v8514_v2, 16  ;;  %v2885_v39 = vrot.slane %v2883_v0, 1  ;;  %v6180_v40 = vld [vmem:[%s6464_s30 + $0x5c] ss:$0 sps:$4 sm:$0x33]  }
 0x1a0   : > { %2310 = vrot.lane.b32.xlu0 %v8386_v41, %s6377_s23  ;;  %v2547_v41 = vsel %vm649_vm0, %v2542_v35, %v2546_v63  ;;  %v1687_v47 = vshll.u32 %v8493_v31, 16  ;;  %v1685_v32 = vshrl.u32 %v8493_v31, 16  ;;  %v3745_v26 = vsel %vm1051_vm2, %v3736_v50, %v3744_v43  ;;  %v5282_v29 = vld [vmem:[%s6464_s30 + $0xb4] sm:$0xe] }
 0x1a1   : > { %3590 = vrot.lane.b32.xlu1 %v3557_v21, %s6378_s26  ;;  %v2888_v27 = vrot.slane %v2886_v19, 2  ;;  %v2893_v34 = vrot.slane %v2891_v54, 1  ;;  %v2896_v3 = vrot.slane %v2894_v12, 2  ;;  %v3019_v28 = vshrl.u32 %v8522_v15, 16 }
 0x1a2   : > { %v8495_v13 = vpop.permute.xlu0 %2706  ;;  %v1689_v11 = vrot.slane %v1687_v47, 1  ;;  %v3022_v21 = vshll.u32 %v8522_v15, 16  ;;  %v3027_v35 = vshrl.u32 %v6177_v49, 16  ;;  %v3030_v63 = vshll.u32 %v6177_v49, 16 }
 0x1a3   : > { %v8500_v46 = vpop.permute.xlu1 %3074  ;;  %v2672_v6 = vsel %vm9369_vm1, %v2670_v62, %v2671_v1  ;;  %v1694_v53 = vrot.slane %v1692_v52, 1  ;;  %v2695_v8 = vrot.slane %v8534_v36, 1  ;;  %v2889_v20 = vor.u32 %v2888_v27, %v2885_v39  ;;  %v6184_v0 = vld [vmem:[%s6464_s30 + $0xbc] ss:$0 sps:$4 sm:$0x33]  }
 0x1a4   : > { %3574 = vrot.lane.b32.xlu0 %v3533_v51, %s6378_s26  ;;  %v5562_v51 = vcombine.low %v5274_v33, %v6284_v24  ;;  %v1690_v23 = vor.u32 %v1689_v11, %v1685_v32  ;;  %v2897_v57 = vor.u32 %v2896_v3, %v2893_v34  ;;  %v2694_v17 = vrot.slane %v8522_v15, 1  ;;  %v8571_v49 = vld [vmem:[%s6464_s30 + $0x74] ss:$0 sps:$4 sm:$0x11]   ;;  %v8581_v27 = vld [vmem:[%s6464_s30 + $0xd0] sm:$0xf] }
 0x1a5   : > { %2598 = vrot.lane.b32.xlu1 %v2547_v41, %s6379_s27  ;;  %v8556_v14 = vcombine.low %v5392_v56, %v8544_v10  ;;  %v3021_v38 = vrot.slane %v3019_v28, 1  ;;  %v3024_v58 = vrot.slane %v3022_v21, 2  ;;  %v2027_v43 = vshrl.u32 %v6180_v40, 16 }
 0x1a6   : > { %v8517_v45 = vpop.permute.xlu0 %3058  ;;  %v2019_v61 = vshrl.u32 %v5562_v51, 16  ;;  %v2022_v50 = vshll.u32 %v5562_v51, 16  ;;  %v2030_v4 = vshll.u32 %v6180_v40, 16  ;;  %v1695_v47 = vsel %vm649_vm0, %v1690_v23, %v1694_v53  ;;  %v5434_v40 = vld [vmem:[%s6464_s30 + $0x6c] sm:$0xe] }
 0x1a7   : > { %v8519_v44 = vpop.permute.xlu1 %1858  ;;  %v2898_v54 = vsel %vm1051_vm2, %v2889_v20, %v2897_v57  ;;  %v1806_v12 = vrot.slane %v5562_v51, 1  ;;  %v1807_v15 = vrot.slane %v8461_v37, 1  ;;  %v5570_v33 = vcombine.low %v5282_v29, %v8473_v60  ;;  %v5312_v29 = vld [vmem:[%s6464_s30 + $0x60] sm:$0xf] }
 0x1a8   : > { %2582 = vrot.lane.b32.xlu0 %v2451_v9, %s6379_s27  ;;  %v3029_v9 = vrot.slane %v3027_v35, 1  ;;  %v2696_v1 = vsel %vm9370_vm3, %v2694_v17, %v2695_v8  ;;  %v3025_v32 = vor.u32 %v3024_v58, %v3021_v38  ;;  %v2021_v11 = vrot.slane %v2019_v61, 1  ;;  %v8597_v17 = vld [vmem:[%s6464_s30 + $0xd4] ss:$0 sps:$4 sm:$0x11]  }
 0x1a9   : > { %3942 = vrot.lane.b32.xlu1 %v3881_v48, %s6380_s28  ;;  %v3032_v48 = vrot.slane %v3030_v63, 2  ;;  %v2024_v52 = vrot.slane %v2022_v50, 2  ;;  %v2029_v39 = vrot.slane %v2027_v43, 1  ;;  %v2032_v37 = vrot.slane %v2030_v4, 2 }
 0x1aa   : > { %v8536_v42 = vpop.permute.xlu0 %1842  ;;  %v2155_v34 = vshrl.u32 %v5570_v33, 16  ;;  %v2158_v60 = vshll.u32 %v5570_v33, 16  ;;  %v2163_v3 = vshrl.u32 %v6184_v0, 16  ;;  %v2166_v56 = vshll.u32 %v6184_v0, 16 }
 0x1ab   : > { %v8539_v18 = vpop.permute.xlu1 %3186  ;;  %v1808_v21 = vsel %vm9371_vm4, %v1806_v12, %v1807_v15  ;;  %v3317_v35 = vshrl.u32 %v8556_v14, 16  ;;  %v3324_v24 = vshll.u32 %v8571_v49, 16  ;;  %v1831_v8 = vrot.slane %v8514_v2, 1  ;;  %v9373_v2 = vld [vmem:[#allocation19_spill] sm:$0xff]  ;;  %v9375_v15 = vld [vmem:[#allocation37_spill] sm:$0xff] }
 0x1ac   : > { %3926 = vrot.lane.b32.xlu0 %v3745_v26, %s6380_s28  ;;  %v3033_v26 = vor.u32 %v3032_v48, %v3029_v9  ;;  %v2025_v20 = vor.u32 %v2024_v52, %v2021_v11  ;;  %v2033_v57 = vor.u32 %v2032_v37, %v2029_v39  ;;  %v2157_v38 = vrot.slane %v2155_v34, 1 }
 0x1ad   : > { %1720 = vrot.lane.b32.xlu1 %v1599_v30, %s6370_s8  ;;  %v5408_v30 = vld [vmem:[%s6464_s30 + $0xcc] sm:$0xf]  ;;  %v2160_v58 = vrot.slane %v2158_v60, 2  ;;  %v2165_v9 = vrot.slane %v2163_v3, 1  ;;  %v2168_v48 = vrot.slane %v2166_v56, 2  ;;  %v8602_v50 = vcombine.low %v5434_v40, %v8544_v10 }
 0x1ae   : > { %v8552_v22 = vpop.permute.xlu0 %3170  ;;  %v8591_v23 = vcombine.low %v5408_v30, %v8581_v27  ;;  %v3034_v53 = vsel %vm1051_vm2, %v3025_v32, %v3033_v26  ;;  %v3326_v4 = vrot.slane %v3324_v24, 1  ;;  %vm9374_vm6 = vcmask 392192   ;;  %v5328_v26 = vld [vmem:[%s6464_s30 + $0xc0] sm:$0xf] }
 0x1af   : > { %v8558_v41 = vpop.permute.xlu1 %2210  ;;  %vm9377_vm1 = vmmov %vm9374_vm6  ;;  %v8614_v10 = vcombine.low %v5312_v29, %v8485_v5  ;;  %v3420_v32 = vshll.u32 %v8597_v17, 16  ;;  %v2034_v30 = vsel %vm1051_vm2, %v2025_v20, %v2033_v57  ;;  %v2161_v11 = vor.u32 %v2160_v58, %v2157_v38  ;;  %v6188_v57 = vld [vmem:[%s6464_s30 + $0x74] ss:$0 sps:$4 sm:$0x33]  }
 0x1b0   : > { %1464 = vrot.lane.b32.xlu0 %v8493_v31, %s6369_s7  ;;  %v3319_v31 = vshll.u32 %v8556_v14, 16  ;;  %v3415_v12 = vshll.u32 %v8591_v23, 16  ;;  %v2169_v52 = vor.u32 %v2168_v48, %v2165_v9  ;;  %v3413_v39 = vshrl.u32 %v8591_v23, 16  ;;  %v5442_v48 = vld [vmem:[%s6464_s30 + $0xcc] sm:$0xe] }
 0x1b1   : > { %2712 = vrot.lane.b32.xlu1 %v2672_v6, %s6371_s9  ;;  %v1830_v6 = vrot.slane %v5570_v33, 1  ;;  %v3534_v5 = vrot.slane %v8602_v50, 1  ;;  %v3535_v3 = vrot.slane %v8571_v49, 1  ;;  %v3422_v49 = vrot.slane %v3420_v32, 1 }
 0x1b2   : > { %v8566_v19 = vpop.permute.xlu0 %2194  ;;  %v3321_v63 = vrot.slane %v3319_v31, 1  ;;  %v9376_v31 = vld [vmem:[#allocation25_spill] sm:$0xff]  ;;  %vm9378_vm4 = vcmask 523264  }
 0x1b3   : > { %v8575_v62 = vpop.permute.xlu1 %3458  ;;  %v4071_v33 = vsel %vm9377_vm1, %v9376_v31, %v9375_v15  ;;  %v8683_v15 = vld [vmem:[%s6464_s30 + $0xc4] sm:$0xf]  ;;  %vm9380_vm1 = vmmov %vm9378_vm4 }
 0x1b4   : > { %1736 = vrot.lane.b32.xlu0 %v1695_v47, %s6370_s8  ;;  %v3322_v43 = vor.u32 %v3321_v63, %v3317_v35  ;;  %v9372_v47 = vld [vmem:[#allocation31_spill] sm:$0xff]  ;;  %v4104_v37 = vsel %vm4080_vm7, %v4071_v33, %v8450_v25  ;;  %v8630_v35 = vcombine.low %v5328_v26, %v8509_v16  ;;  %v2453_v63 = vshrl.u32 %v8614_v10, 16 }
 0x1b5   : > { %3064 = vrot.lane.b32.xlu1 %v2898_v54, %s6372_s10  ;;  %v4055_v0 = vsel %vm9374_vm6, %v9373_v2, %v9372_v47  ;;  %v4137_v56 = vsel %vm4113_vm8, %v4104_v37, %v8519_v44  ;;  %v4318_v25 = vsel %vm4294_vm9, %v8477_v7, %v8500_v46  ;;  %v2455_v44 = vshll.u32 %v8614_v10, 16  ;;  %v6191_v26 = vld [vmem:[%s6464_s30 + $0xd4] ss:$0 sps:$4 sm:$0x33]  }
 0x1b6   : > { %v8584_v28 = vpop.permute.xlu0 %3442  ;;  %v3327_v60 = vsel %vm649_vm0, %v3322_v43, %v3326_v4  ;;  %v4170_v24 = vsel %vm4146_vm10, %v4137_v56, %v8558_v41  ;;  %v4088_v40 = vsel %vm4080_vm7, %v4055_v0, %v8464_v59  ;;  %v4351_v16 = vsel %vm4327_vm11, %v4318_v25, %v8539_v18  ;;  %v9383_v37 = vld [vmem:[#allocation11_spill] sm:$0xff]  ;;  %v5363_v25 = vld [vmem:[%s6464_s30 + $0xcc] sm:$0xe] }
 0x1b7   : > { %v2323_v51 = vpop.permute.xlu1 %2322  ;;  %v2170_v46 = vsel %vm1051_vm2, %v2161_v11, %v2169_v52  ;;  %v4121_v41 = vsel %vm4113_vm8, %v4088_v40, %v8536_v42  ;;  %v2460_v59 = vshll.u32 %v8503_v55, 16  ;;  %v4302_v18 = vsel %vm4294_vm9, %v8495_v13, %v8517_v45 }
 0x1b8   : > { %2728 = vrot.lane.b32.xlu0 %v2696_v1, %s6371_s9  ;;  %v1832_v1 = vsel %vm9370_vm3, %v1830_v6, %v1831_v8  ;;  %v4203_v6 = vsel %vm4179_vm13, %v4170_v24, %v2323_v51  ;;  %v4154_v51 = vsel %vm4146_vm10, %v4121_v41, %v8566_v19  ;;  %v2457_v29 = vrot.slane %v2455_v44, 1  ;;  %v8717_v41 = vld [vmem:[%s6464_s30 + $0xc8] ss:$0 sps:$4 sm:$0x11]  }
 0x1b9   : > { %1848 = vrot.lane.b32.xlu1 %v1808_v21, %s6373_s11  ;;  %v3417_v21 = vrot.slane %v3415_v12, 1  ;;  %vm9379_vm6 = vcmask 982016   ;;  %v3750_v4 = vshll.u32 %v8602_v50, 16  ;;  %v3755_v47 = vshrl.u32 %v6188_v57, 16  ;;  %v5250_v12 = vld [vmem:[%s6464_s30 + $0xc0] sm:$0xf] }
 0x1ba   : > { %v2307_v61 = vpop.permute.xlu0 %2306  ;;  %v5698_v2 = vcombine.low %v5442_v48, %v8581_v27  ;;  %vm9381_vm3 = vmmov %vm9379_vm6  ;;  %v2551_v31 = vshll.u32 %v8630_v35, 16  ;;  %v2458_v33 = vor.u32 %v2457_v29, %v2453_v63  ;;  %v3559_v56 = vrot.slane %v8597_v17, 1 }
 0x1bb   : > { %v3587_v54 = vpop.permute.xlu1 %3586  ;;  %v3418_v42 = vor.u32 %v3417_v21, %v3413_v39  ;;  %v4187_v9 = vsel %vm4179_vm13, %v4154_v51, %v2307_v61  ;;  %v3747_v61 = vshrl.u32 %v8602_v50, 16  ;;  %v3752_v11 = vrot.slane %v3750_v4, 2 }
 0x1bc   : > { %3080 = vrot.lane.b32.xlu0 %v3034_v53, %s6372_s10  ;;  %v4384_v53 = vsel %vm4360_vm12, %v4351_v16, %v8575_v62  ;;  %v4335_v62 = vsel %vm4327_vm11, %v4302_v18, %v8552_v22  ;;  %v8698_v39 = vcombine.low %v5250_v12, %v8683_v15  ;;  %v2553_v21 = vrot.slane %v2551_v31, 1  ;;  %v8755_v31 = vld [vmem:[%s6464_s30 + $0xd4] ss:$0 sps:$4 sm:$0x11]  }
 0x1bd   : > { %3176 = vrot.lane.b32.xlu1 %v8556_v14, %s6374_s18  ;;  %v4417_v38 = vsel %vm4393_vm14, %v4384_v53, %v3587_v54  ;;  %v4368_v45 = vsel %vm4360_vm12, %v4335_v62, %v8584_v28  ;;  %v3758_v28 = vshll.u32 %v6188_v57, 16  ;;  %v3423_v27 = vsel %vm649_vm0, %v3418_v42, %v3422_v49  ;;  %v5355_v42 = vld [vmem:[%s6464_s30 + $0x6c] sm:$0xe] }
 0x1be   : > { %v3571_v34 = vpop.permute.xlu0 %3570  ;;  %v3749_v32 = vrot.slane %v3747_v61, 1  ;;  %v2556_v63 = vshll.u32 %v8534_v36, 16  ;;  %v3883_v24 = vshrl.u32 %v5698_v2, 16  ;;  %v3886_v49 = vshll.u32 %v5698_v2, 16 }
 0x1bf   : > { %v2595_v14 = vpop.permute.xlu1 %2594  ;;  %v3760_v52 = vrot.slane %v3758_v28, 2  ;;  %v3891_v44 = vshrl.u32 %v6191_v26, 16  ;;  %v3894_v40 = vshll.u32 %v6191_v26, 16  ;;  %v1699_v36 = vshll.u32 %v8698_v39, 16 }
 0x1c0   : > { %1864 = vrot.lane.b32.xlu0 %v1832_v1, %s6373_s11  ;;  %v4236_v8 = vsel %vm4212_vm15, %v4203_v6, %v2595_v14  ;;  %v2462_v1 = vrot.slane %v2460_v59, 1  ;;  %v2549_v14 = vshrl.u32 %v8630_v35, 16  ;;  %v3753_v6 = vor.u32 %v3752_v11, %v3749_v32  ;;  %v6198_v59 = vld [vmem:[%s6464_s30 + $0xd4] ss:$0 sps:$4 sm:$0x33]  }
 0x1c1   : > { %2200 = vrot.lane.b32.xlu1 %v2034_v30, %s6375_s19  ;;  %v4280_v22 = vsel %vm9379_vm6, %v4236_v8, %v8477_v7  ;;  %v8723_v8 = vld [vmem:[%s6464_s30 + $0x68] ss:$0 sps:$4 sm:$0x11]   ;;  %v3885_v62 = vrot.slane %v3883_v24, 1  ;;  %v3893_v48 = vrot.slane %v3891_v44, 1  ;;  %v3047_v28 = vshll.u32 %v6198_v59, 16 }
 0x1c2   : > { %v2579_v20 = vpop.permute.xlu0 %2578  ;;  %v2463_v17 = vsel %vm649_vm0, %v2458_v33, %v2462_v1  ;;  %v2554_v51 = vor.u32 %v2553_v21, %v2549_v14  ;;  %v8760_v26 = vld [vmem:[%s6464_s30 + $0x74] ss:$0 sps:$4 sm:$0x11]  }
 0x1c3   : > { %v3939_v58 = vpop.permute.xlu1 %3938  ;;  %v4220_v19 = vsel %vm4212_vm15, %v4187_v9, %v2579_v20  ;;  %v3888_v9 = vrot.slane %v3886_v49, 2  ;;  %v2698_v49 = vrot.slane %v8755_v31, 1 }
 0x1c4   : > { %3192 = vrot.lane.b32.xlu0 %v8591_v23, %s6374_s18  ;;  %v4450_v55 = vsel %vm4426_vm5, %v4417_v38, %v3939_v58  ;;  %v4401_v23 = vsel %vm4393_vm14, %v4368_v45, %v3571_v34  ;;  %v4256_v7 = vsel %vm9381_vm3, %v4220_v19, %v8495_v13  ;;  %v3757_v13 = vrot.slane %v3755_v47, 1  ;;  %v8733_v58 = vld [vmem:[%s6464_s30 + $0x70] sm:$0xf] }
 0x1c5   : > { %3448 = vrot.lane.b32.xlu1 %v3327_v60, %s6376_s21  ;;  %5740 = vmatprep.mubr.msk.bf16.mxu1 %vm9378_vm4, %v4450_v55  ;;  %vm9382_vm4 = vcmask 1046528   ;;  %v1601_v34 = vshrl.u32 %v9383_v37, 16  ;;  %v1603_v60 = vshll.u32 %v9383_v37, 16  ;;  %v2558_v38 = vrot.slane %v2556_v63, 1 }
 0x1c6   : > { %v3923_v43 = vpop.permute.xlu0 %3922  ;;  %4716 = vmatmul.mubr.bf16.gmra.mrb[12].mxu1 %v4280_v22  ;;  %v3536_v50 = vsel %vm9382_vm4, %v3534_v5, %v3535_v3  ;;  %v3558_v5 = vrot.slane %v5698_v2, 1  ;;  %v8705_v3 = vld [vmem:[%s6464_s30 + $0xd0] sm:$0xf]  ;;  %vm9384_vm6 = vmmov %vm9382_vm4  ;;  %v3896_v55 = vrot.slane %v3894_v40, 2  ;;  %v1701_v19 = vrot.slane %v1699_v36, 1 }
 0x1c7   : > { %v4434_v0 = vsel %vm4426_vm5, %v4401_v23, %v3923_v43  ;;  %v8679_v54 = vpop.permute.xlu1 %1732  ;;  %v8726_v20 = vcombine.low %v5363_v25, %v8705_v3  ;;  %v1605_v57 = vrot.slane %v1603_v60, 1  ;;  %v1704_v22 = vshll.u32 %v8717_v41, 16  ;;  %v6199_v2 = vld [vmem:[%s6464_s30 + $0x74] ss:$0 sps:$4 sm:$0x33]  }
 0x1c8   : > { %2216 = vrot.lane.b32.xlu0 %v2170_v46, %s6375_s19  ;;  %5732 = vmatprep.mubr.msk.bf16.mxu0 %vm9380_vm1, %v4434_v0  ;;  %v3761_v46 = vor.u32 %v3760_v52, %v3757_v13  ;;  %v3560_v18 = vsel %vm9384_vm6, %v3558_v5, %v3559_v56  ;;  %v8745_v23 = vcombine.low %v5355_v42, %v8733_v58  ;;  %v3044_v47 = vshrl.u32 %v6198_v59, 16  ;;  %v5283_v13 = vld [vmem:[%s6464_s30 + $0xc0] sm:$0xe]  ;;  %v6205_v42 = vld [vmem:[%s6464_s30 + $0x68] ss:$0 sps:$4 sm:$0x33]   ;;  %vm9385_vm1 = vmmov %vm9382_vm4 }
 0x1c9   : > { %4652 = vmatmul.mubr.bf16.gmra.mrb[12].mxu0 %v4256_v7  ;;  %2312 = vrot.lane.b32.xlu1 %v8614_v10, %s6377_s23  ;;  %v3036_v43 = vshrl.u32 %v8726_v20, 16  ;;  %v3039_v4 = vshll.u32 %v8726_v20, 16  ;;  %v2559_v0 = vsel %vm649_vm0, %v2554_v51, %v2558_v38  ;;  %v3889_v12 = vor.u32 %v3888_v9, %v3885_v62  ;;  %vm9386_vm3 = vmmov %vm9385_vm1 }
 0x1ca   : > { %v8695_v30 = vpop.permute.xlu0 %1716  ;;  %v3762_v45 = vsel %vm1051_vm2, %v3753_v6, %v3761_v46  ;;  %v3897_v7 = vor.u32 %v3896_v55, %v3893_v48  ;;  %v1706_v1 = vrot.slane %v1704_v22, 1  ;;  %v1606_v32 = vor.u32 %v1605_v57, %v1601_v34  ;;  %v6204_v6 = vld [vmem:[%s6464_s30 + $0xc8] ss:$0 sps:$4 sm:$0x33]   ;;  %v5275_v46 = vld [vmem:[%s6464_s30 + $0x60] sm:$0xe]  ;;  %vm9387_vm4 = vmmov %vm9385_vm1 }
 0x1cb   : > { %v8702_v10 = vpop.permute.xlu1 %2724  ;;  %v3038_v52 = vrot.slane %v3036_v43, 1  ;;  %v3041_v37 = vrot.slane %v3039_v4, 2  ;;  %v3046_v60 = vrot.slane %v3044_v47, 1  ;;  %v2900_v5 = vshrl.u32 %v8745_v23, 16  ;;  %v5410_v48 = vld [vmem:[%s6464_s30 + $0xd8] sm:$0xf] }
 0x1cc   : > { %3464 = vrot.lane.b32.xlu0 %v3423_v27, %s6376_s21  ;;  %v3049_v56 = vrot.slane %v3047_v28, 2  ;;  %v2903_v14 = vshll.u32 %v8745_v23, 16  ;;  %v2908_v21 = vshrl.u32 %v6199_v2, 16  ;;  %v2911_v63 = vshll.u32 %v6199_v2, 16  ;;  %v5411_v55 = vld [vmem:[%s6464_s30 + $0xdc] sm:$0xf] }
 0x1cd   : > { %3576 = vrot.lane.b32.xlu1 %v3536_v50, %s6378_s26  ;;  %v1608_v50 = vshll.u32 %v8723_v8, 16  ;;  %v3898_v34 = vsel %vm1051_vm2, %v3889_v12, %v3897_v7  ;;  %v2697_v24 = vrot.slane %v8726_v20, 1  ;;  %v8776_v40 = vcombine.low %v5283_v13, %v8683_v15  ;;  %v6285_v43 = vld [vmem:[%s6464_s30 + $0x64] sm:$0xf] }
 0x1ce   : > { %v8713_v16 = vpop.permute.xlu0 %2708  ;;  %v2673_v36 = vrot.slane %v8745_v23, 1  ;;  %v2674_v20 = vrot.slane %v8760_v26, 1  ;;  %v3042_v59 = vor.u32 %v3041_v37, %v3038_v52  ;;  %v2902_v57 = vrot.slane %v2900_v5, 1 }
 0x1cf   : > { %v8720_v53 = vpop.permute.xlu1 %3076  ;;  %v1610_v25 = vrot.slane %v1608_v50, 1  ;;  %v2905_v15 = vrot.slane %v2903_v14, 2  ;;  %v2910_v51 = vrot.slane %v2908_v21, 1  ;;  %v2913_v38 = vrot.slane %v2911_v63, 2 }
 0x1d0   : > { %2328 = vrot.lane.b32.xlu0 %v8630_v35, %s6377_s23  ;;  %v1697_v35 = vshrl.u32 %v8698_v39, 16  ;;  %v2699_v9 = vsel %vm9385_vm1, %v2697_v24, %v2698_v49  ;;  %v2180_v22 = vshrl.u32 %v6204_v6, 16  ;;  %v2183_v23 = vshll.u32 %v6204_v6, 16 }
 0x1d1   : > { %2584 = vrot.lane.b32.xlu1 %v2463_v17, %s6379_s27  ;;  %v1611_v62 = vsel %vm649_vm0, %v1606_v32, %v1610_v25  ;;  %v5563_v4 = vcombine.low %v5275_v46, %v6285_v43  ;;  %v2675_v28 = vsel %vm9386_vm3, %v2673_v36, %v2674_v20  ;;  %v1833_v2 = vrot.slane %v8776_v40, 1  ;;  %v8808_v32 = vld [vmem:[%s6464_s30 + $0x7c] sm:$0xf] }
 0x1d2   : > { %v8737_v29 = vpop.permute.xlu0 %3060  ;;  %v1702_v33 = vor.u32 %v1701_v19, %v1697_v35  ;;  %v2172_v35 = vshrl.u32 %v8776_v40, 16  ;;  %v2175_v19 = vshll.u32 %v8776_v40, 16  ;;  %v2906_v7 = vor.u32 %v2905_v15, %v2902_v57  ;;  %v8820_v40 = vld [vmem:[%s6464_s30 + $0xe0] ss:$0 sps:$4 sm:$0x11]  }
 0x1d3   : > { %v8742_v61 = vpop.permute.xlu1 %1860  ;;  %v2914_v50 = vor.u32 %v2913_v38, %v2910_v51  ;;  %v2036_v13 = vshrl.u32 %v5563_v4, 16  ;;  %v2039_v52 = vshll.u32 %v5563_v4, 16  ;;  %v2044_v37 = vshrl.u32 %v6205_v42, 16 }
 0x1d4   : > { %3592 = vrot.lane.b32.xlu0 %v3560_v18, %s6378_s26  ;;  %v1707_v17 = vsel %vm649_vm0, %v1702_v33, %v1706_v1  ;;  %v3050_v18 = vor.u32 %v3049_v56, %v3046_v60  ;;  %v8804_v33 = vcombine.low %v5410_v48, %v5411_v55  ;;  %v5394_v1 = vld [vmem:[%s6464_s30 + $0x78] sm:$0xf]  ;;  %v2047_v60 = vshll.u32 %v6205_v42, 16 }
 0x1d5   : > { %3928 = vrot.lane.b32.xlu1 %v3762_v45, %s6380_s28  ;;  %v2174_v5 = vrot.slane %v2172_v35, 1  ;;  %v2177_v56 = vrot.slane %v2175_v19, 2  ;;  %v2182_v14 = vrot.slane %v2180_v22, 1  ;;  %v2185_v21 = vrot.slane %v2183_v23, 2  ;;  %v9391_v35 = vld [vmem:[#allocation40_spill] sm:$0xff] }
 0x1d6   : > { %v8757_v27 = vpop.permute.xlu0 %1844  ;;  %v3051_v12 = vsel %vm1051_vm2, %v3042_v59, %v3050_v18  ;;  %v2915_v25 = vsel %vm1051_vm2, %v2906_v7, %v2914_v50  ;;  %v1809_v24 = vrot.slane %v5563_v4, 1  ;;  %v1810_v49 = vrot.slane %v8723_v8, 1  ;;  %v8827_v8 = vld [vmem:[%s6464_s30 + $0x80] ss:$0 sps:$4 sm:$0x11]   ;;  %v9392_v19 = vld [vmem:[#allocation28_spill] sm:$0xff] }
 0x1d7   : > { %v8762_v11 = vpop.permute.xlu1 %3188  ;;  %v2038_v6 = vrot.slane %v2036_v13, 1  ;;  %v2041_v46 = vrot.slane %v2039_v52, 2  ;;  %v2046_v36 = vrot.slane %v2044_v37, 1  ;;  %v2049_v20 = vrot.slane %v2047_v60, 2  ;;  %v5330_v4 = vld [vmem:[%s6464_s30 + $0xcc] sm:$0xf] }
 0x1d8   : > { %2600 = vrot.lane.b32.xlu0 %v2559_v0, %s6379_s27  ;;  %v1834_v0 = vrot.slane %v8717_v41, 1  ;;  %v2178_v18 = vor.u32 %v2177_v56, %v2174_v5  ;;  %v2186_v15 = vor.u32 %v2185_v21, %v2182_v14  ;;  %v3427_v51 = vshll.u32 %v8804_v33, 16  ;;  %v5314_v7 = vld [vmem:[%s6464_s30 + $0x6c] sm:$0xf] }
 0x1d9   : > { %1466 = vrot.lane.b32.xlu1 %v8698_v39, %s6369_s7  ;;  %vm9390_vm6 = vcmask 392192   ;;  %v3432_v43 = vshll.u32 %v8820_v40, 16  ;;  %v3336_v56 = vshll.u32 %v8827_v8, 16  ;;  %v8853_v14 = vcombine.low %v5330_v4, %v8705_v3 }
 0x1da   : > { %v8773_v44 = vpop.permute.xlu0 %3172  ;;  %v1835_v57 = vsel %vm9387_vm4, %v1833_v2, %v1834_v0  ;;  %vm9393_vm1 = vmmov %vm9390_vm6  ;;  %v2042_v2 = vor.u32 %v2041_v46, %v2038_v6  ;;  %v2050_v0 = vor.u32 %v2049_v20, %v2046_v36  ;;  %v2187_v13 = vsel %vm1051_vm2, %v2178_v18, %v2186_v15  ;;  %v5435_v46 = vld [vmem:[%s6464_s30 + $0x78] sm:$0xe] }
 0x1db   : > { %v8781_v39 = vpop.permute.xlu1 %2212  ;;  %v4073_v22 = vsel %vm9393_vm1, %v9392_v19, %v9391_v35  ;;  %vm9394_vm4 = vcmask 523264   ;;  %v2568_v19 = vshll.u32 %v8755_v31, 16 }
 0x1dc   : > { %3944 = vrot.lane.b32.xlu0 %v3898_v34, %s6380_s28  ;;  %v8814_v34 = vcombine.low %v5394_v1, %v8808_v32  ;;  %v4106_v50 = vsel %vm4080_vm7, %v4073_v22, %v8679_v54  ;;  %v4320_v54 = vsel %vm4294_vm9, %v8702_v10, %v8720_v53  ;;  %v2051_v53 = vsel %vm1051_vm2, %v2042_v2, %v2050_v0  ;;  %vm9396_vm1 = vmmov %vm9394_vm4 }
 0x1dd   : > { %1738 = vrot.lane.b32.xlu1 %v1707_v17, %s6370_s8  ;;  %v5443_v17 = vld [vmem:[%s6464_s30 + $0xd8] sm:$0xe]  ;;  %v4139_v37 = vsel %vm4113_vm8, %v4106_v50, %v8742_v61  ;;  %v8862_v61 = vcombine.low %v5314_v7, %v8733_v58  ;;  %v4353_v3 = vsel %vm4327_vm11, %v4320_v54, %v8762_v11  ;;  %v4304_v11 = vsel %vm4294_vm9, %v8713_v16, %v8737_v29 }
 0x1de   : > { %v8792_v45 = vpop.permute.xlu0 %2196  ;;  %v3331_v42 = vshll.u32 %v8814_v34, 16  ;;  %v8837_v23 = vcombine.low %v5443_v17, %v5411_v55  ;;  %v3429_v55 = vrot.slane %v3427_v51, 1  ;;  %v3329_v52 = vshrl.u32 %v8814_v34, 16 }
 0x1df   : > { %v8797_v47 = vpop.permute.xlu1 %3460  ;;  %v4172_v21 = vsel %vm4146_vm10, %v4139_v37, %v8781_v39  ;;  %v2563_v29 = vshll.u32 %v8853_v14, 16  ;;  %v2467_v22 = vshll.u32 %v8862_v61, 16  ;;  %v3538_v50 = vrot.slane %v8827_v8, 1 }
 0x1e0   : > { %1722 = vrot.lane.b32.xlu0 %v1611_v62, %s6370_s8  ;;  %v9388_v62 = vld [vmem:[#allocation34_spill] sm:$0xff]  ;;  %v3333_v5 = vrot.slane %v3331_v42, 1  ;;  %v4386_v58 = vsel %vm4360_vm12, %v4353_v3, %v8797_v47  ;;  %v3903_v2 = vshll.u32 %v8837_v23, 16  ;;  %v2472_v37 = vshll.u32 %v8760_v26, 16  ;;  %s175_s8 = sand.u32 1, %s6348_s13  }
 0x1e1   : > { %2730 = vrot.lane.b32.xlu1 %v2699_v9, %s6371_s9  ;;  %v9389_v9 = vld [vmem:[#allocation22_spill] sm:$0xff]  ;;  %v2565_v35 = vrot.slane %v2563_v29, 1 }
 0x1e2   : > { %v8811_v41 = vpop.permute.xlu0 %3444  ;;  %v4057_v48 = vsel %vm9390_vm6, %v9389_v9, %v9388_v62  ;;  %v3334_v20 = vor.u32 %v3333_v5, %v3329_v52  ;;  %vm9395_vm6 = vcmask 982016   ;;  %v3561_v9 = vrot.slane %v8837_v23, 1 }
 0x1e3   : > { %v2325_v63 = vpop.permute.xlu1 %2324  ;;  %v2469_v52 = vrot.slane %v2467_v22, 1  ;;  %v3905_v8 = vrot.slane %v3903_v2, 2 }
 0x1e4   : > { %2714 = vrot.lane.b32.xlu0 %v2675_v28, %s6371_s9  ;;  %v1811_v28 = vsel %vm9386_vm3, %v1809_v24, %v1810_v49  ;;  %v4090_v24 = vsel %vm4080_vm7, %v4057_v48, %v8695_v30  ;;  %v4205_v49 = vsel %vm4179_vm13, %v4172_v21, %v2325_v63  ;;  %v3562_v48 = vrot.slane %v8820_v40, 1  ;;  %vm9397_vm3 = vmmov %vm9395_vm6  ;;  %v6211_v40 = vld [vmem:[%s6464_s30 + $0x80] ss:$0 sps:$4 sm:$0x33]   ;;  %s5218_s9 = sshll.u32 %s175_s8, 7 }
 0x1e5   : > { %3082 = vrot.lane.b32.xlu1 %v3051_v12, %s6372_s10  ;;  %v3425_v12 = vshrl.u32 %v8804_v33, 16  ;;  %v4123_v39 = vsel %vm4113_vm8, %v4090_v24, %v8757_v27  ;;  %v4337_v27 = vsel %vm4327_vm11, %v4304_v11, %v8773_v44  ;;  %v3772_v5 = vshrl.u32 %v6211_v40, 16 }
 0x1e6   : > { %v2309_v59 = vpop.permute.xlu0 %2308  ;;  %v4156_v63 = vsel %vm4146_vm10, %v4123_v39, %v8792_v45  ;;  %v4370_v45 = vsel %vm4360_vm12, %v4337_v27, %v8811_v41  ;;  %v6210_v41 = vld [vmem:[%s6464_s30 + $0xe0] ss:$0 sps:$4 sm:$0x33]  }
 0x1e7   : > { %v3589_v38 = vpop.permute.xlu1 %3588  ;;  %v3430_v30 = vor.u32 %v3429_v55, %v3425_v12  ;;  %v4189_v47 = vsel %vm4179_vm13, %v4156_v63, %v2309_v59  ;;  %v3338_v59 = vrot.slane %v3336_v56, 1  ;;  %v3908_v0 = vshrl.u32 %v6210_v41, 16 }
 0x1e8   : > { %3066 = vrot.lane.b32.xlu0 %v2915_v25, %s6372_s10  ;;  %v3434_v25 = vrot.slane %v3432_v43, 1  ;;  %v3911_v12 = vshll.u32 %v6210_v41, 16  ;;  %v2570_v55 = vrot.slane %v2568_v19, 1  ;;  %v3775_v56 = vshll.u32 %v6211_v40, 16  ;;  %v9400_v41 = vld [vmem:[#allocation33_spill] sm:$0xff] }
 0x1e9   : > { %1866 = vrot.lane.b32.xlu1 %v1835_v57, %s6373_s11  ;;  %v3339_v43 = vsel %vm649_vm0, %v3334_v20, %v3338_v59 }
 0x1ea   : > { %v3573_v1 = vpop.permute.xlu0 %3572  ;;  %v3913_v24 = vrot.slane %v3911_v12, 2 }
 0x1eb   : > { %v2597_v60 = vpop.permute.xlu1 %2596  ;;  %v4403_v15 = vsel %vm4393_vm14, %v4370_v45, %v3573_v1  ;;  %v2465_v1 = vshrl.u32 %v8862_v61, 16 }
 0x1ec   : > { %1850 = vrot.lane.b32.xlu0 %v1811_v28, %s6373_s11  ;;  %v4238_v17 = vsel %vm4212_vm15, %v4205_v49, %v2597_v60  ;;  %v3900_v28 = vshrl.u32 %v8837_v23, 16  ;;  %s9006_s11 = scalar_lea.vmem [#allocation2], %s5218_s9 }
 0x1ed   : > { %3194 = vrot.lane.b32.xlu1 %v8804_v33, %s6374_s18  ;;  %v4419_v33 = vsel %vm4393_vm14, %v4386_v58, %v3589_v38  ;;  %v4283_v44 = vsel %vm9395_vm6, %v4238_v17, %v8702_v10  ;;  %v3435_v38 = vsel %vm649_vm0, %v3430_v30, %v3434_v25  ;;  %v2561_v10 = vshrl.u32 %v8853_v14, 16 }
 0x1ee   : > { %v2581_v6 = vpop.permute.xlu0 %2580  ;;  %v3902_v21 = vrot.slane %v3900_v28, 1  ;;  %v3910_v25 = vrot.slane %v3908_v0, 1  ;;  %v2470_v26 = vor.u32 %v2469_v52, %v2465_v1  ;;  %v3774_v58 = vrot.slane %v3772_v5, 1 }
 0x1ef   : > { %v3941_v36 = vpop.permute.xlu1 %3940  ;;  %v4222_v18 = vsel %vm4212_vm15, %v4189_v47, %v2581_v6  ;;  %v3777_v17 = vrot.slane %v3775_v56, 2 }
 0x1f0   : > { %3178 = vrot.lane.b32.xlu0 %v8814_v34, %s6374_s18  ;;  %v4452_v57 = vsel %vm4426_vm5, %v4419_v33, %v3941_v36  ;;  %v5691_v34 = vcombine.low %v5435_v46, %v8808_v32  ;;  %v4259_v32 = vsel %vm9397_vm3, %v4222_v18, %v8713_v16  ;;  %v3906_v11 = vor.u32 %v3905_v8, %v3902_v21  ;;  %s5846_s18 = sshll.u32 %s6356_s15, 11  ;;  %s9206_s15 = scalar_lea.sflag [#allocation3], %s175_s8 }
 0x1f1   : > { %2218 = vrot.lane.b32.xlu1 %v2187_v13, %s6375_s19  ;;  %5741 = vmatprep.mubr.msk.bf16.mxu1 %vm9394_vm4, %v4452_v57  ;;  %vm9398_vm4 = vcmask 1046528   ;;  %v2566_v13 = vor.u32 %v2565_v35, %v2561_v10  ;;  %v3914_v63 = vor.u32 %v3913_v24, %v3910_v25  ;;  %v3778_v36 = vor.u32 %v3777_v17, %v3774_v58  ;;  %v9404_v10 = vld [vmem:[#allocation27_spill] sm:$0xff] }
 0x1f2   : > { %v3925_v51 = vpop.permute.xlu0 %3924  ;;  %4724 = vmatmul.mubr.bf16.gmra.mrb[16].mxu1 %v4283_v44  ;;  %v3563_v31 = vsel %vm9398_vm4, %v3561_v9, %v3562_v48  ;;  %v3537_v7 = vrot.slane %v5691_v34, 1  ;;  %v3764_v23 = vshrl.u32 %v5691_v34, 16  ;;  %v3767_v60 = vshll.u32 %v5691_v34, 16  ;;  %vm9399_vm6 = vmmov %vm9398_vm4  ;;  %v9403_v48 = vld [vmem:[#allocation39_spill] sm:$0xff] }
 0x1f3   : > { %v4436_v42 = vsel %vm4426_vm5, %v4403_v15, %v3925_v51  ;;  %v8903_v62 = vpop.permute.xlu1 %1734  ;;  %v2571_v30 = vsel %vm649_vm0, %v2566_v13, %v2570_v55  ;;  %v3915_v27 = vsel %vm1051_vm2, %v3906_v11, %v3914_v63  ;;  %vm9406_vm4 = vmmov %vm9396_vm1 }
 0x1f4   : > { %2202 = vrot.lane.b32.xlu0 %v2051_v53, %s6375_s19  ;;  %5733 = vmatprep.mubr.msk.bf16.mxu0 %vm9396_vm1, %v4436_v42  ;;  %v3539_v49 = vsel %vm9399_vm6, %v3537_v7, %v3538_v50  ;;  %v2474_v53 = vrot.slane %v2472_v37, 1  ;;  %v3769_v39 = vrot.slane %v3767_v60, 2  ;;  %v9401_v42 = vld [vmem:[#allocation21_spill] sm:$0xff]  ;;  %vm9407_vm6 = vmmov %vm9397_vm3  ;;  %s5126_s19 = sshll.u32 %s9006_s11, 4  ;;  %s9200_s19 = int_to_ptr.vmem [resolvable:$true] %s5126_s19 }
 0x1f5   : > { %4660 = vmatmul.mubr.bf16.gmra.mrb[16].mxu0 %v4259_v32  ;;  %3466 = vrot.lane.b32.xlu1 %v3435_v38, %s6376_s21  ;;  %v8948_v38 = vld [vmem:[%s9255_s2] ss:$0 sm:$0xff] }
 0x1f6   : > { %v8917_v4 = vpop.permute.xlu0 %1718 }
 0x1f7   : > { %v8921_v16 = vpop.permute.xlu1 %2726 }
 0x1f8   : > { %3450 = vrot.lane.b32.xlu0 %v3339_v43, %s6376_s21 }
 0x1f9   : > { %2330 = vrot.lane.b32.xlu1 %v8853_v14, %s6377_s23  ;;  %v3766_v14 = vrot.slane %v3764_v23, 1 }
 0x1fa   : > { %v8930_v54 = vpop.permute.xlu0 %2710 }
 0x1fb   : > { %v3079_v3 = vpop.permute.xlu1 %3078  ;;  %v3770_v46 = vor.u32 %v3769_v39, %v3766_v14 }
 0x1fc   : > { %2314 = vrot.lane.b32.xlu0 %v8862_v61, %s6377_s23  ;;  %v2475_v61 = vsel %vm649_vm0, %v2470_v26, %v2474_v53  ;;  %vm9402_vm0 = vcmask 392192   ;;  %v4322_v2 = vsel %vm4294_vm9, %v8921_v16, %v3079_v3 }
 0x1fd   : > { %3594 = vrot.lane.b32.xlu1 %v3563_v31, %s6378_s26  ;;  %v3779_v57 = vsel %vm1051_vm2, %v3770_v46, %v3778_v36  ;;  %v4059_v9 = vsel %vm9402_vm0, %v9401_v42, %v9400_v41  ;;  %vm9405_vm2 = vmmov %vm9402_vm0 }
 0x1fe   : > { %v3063_v6 = vpop.permute.xlu0 %3062  ;;  %v4075_v32 = vsel %vm9405_vm2, %v9404_v10, %v9403_v48  ;;  %v4092_v22 = vsel %vm4080_vm7, %v4059_v9, %v8917_v4  ;;  %vm5076_vm2 = vcmask 519168  }
 0x1ff   : > { %v1863_v33 = vpop.permute.xlu1 %1862  ;;  %v4108_v19 = vsel %vm4080_vm7, %v4075_v32, %v8903_v62  ;;  %v4306_v0 = vsel %vm4294_vm9, %v8930_v54, %v3063_v6 }
 0x200   : > { %3578 = vrot.lane.b32.xlu0 %v3539_v49, %s6378_s26  ;;  %v4141_v12 = vsel %vm4113_vm8, %v4108_v19, %v1863_v33  ;;  %s9196_s26 = scalar_lea.hbm %s9256_s3, %s5846_s18 }
 0x201   : > { %2602 = vrot.lane.b32.xlu1 %v2571_v30, %s6379_s27 }
 0x202   : > { %v1847_v20 = vpop.permute.xlu0 %1846 }
 0x203   : > { %v3191_v47 = vpop.permute.xlu1 %3190  ;;  %v4125_v31 = vsel %vm4113_vm8, %v4092_v22, %v1847_v20 }
 0x204   : > { %2586 = vrot.lane.b32.xlu0 %v2475_v61, %s6379_s27  ;;  %v4355_v50 = vsel %vm4327_vm11, %v4322_v2, %v3191_v47  ;;  %s6286_s27 = scalar_lea.vmem %s9200_s19, 2048 }
 0x205   : > { %3946 = vrot.lane.b32.xlu1 %v3915_v27, %s6380_s28  ;;  %p6287_p12 = scmp.ne.s32.totalorder %s9200_s19, %s6286_s27 }
 0x206   : > { %v3175_v29 = vpop.permute.xlu0 %3174 }
 0x207   : > { %v2215_v45 = vpop.permute.xlu1 %2214  ;;  %v4339_v37 = vsel %vm4327_vm11, %v4306_v0, %v3175_v29  ;;  %p6288_p13 = pnand %p6287_p12, %p6444_p4 }
 0x208   : > { %3930 = vrot.lane.b32.xlu0 %v3779_v57, %s6380_s28  ;;  %v4174_v4 = vsel %vm4146_vm10, %v4141_v12, %v2215_v45  ;;  %s6382_s28 = smov [#allocation2]  }
 0x209   : > { %p6289_p0 = pneg %p6288_p13  ;;  %s6290_s29 = sshll.u32 %s6382_s28, 4  ;;  %s6291_s29 = int_to_ptr.vmem [resolvable:$false] %s6290_s29 }
 0x20a   : > { %v2199_v18 = vpop.permute.xlu0 %2198  ;;  %s6292_s4 = scalar_lea.vmem %s6291_s29, 4096  ;;  %p6293_p1 = scmp.lt.s32.totalorder %s9200_s19, %s6291_s29 }
 0x20b   : > { %v3463_v44 = vpop.permute.xlu1 %3462  ;;  %v4158_v23 = vsel %vm4146_vm10, %v4125_v31, %v2199_v18  ;;  %p6294_p2 = scmp.lt.s32.totalorder %s6292_s4, %s6286_s27 }
 0x20c   : > { %v4388_v21 = vsel %vm4360_vm12, %v4355_v50, %v3463_v44 }
 0x20d   : > { %p6295_p3 = por %p6294_p2, %p6293_p1 }
 0x20e   : > { %v3447_v59 = vpop.permute.xlu0 %3446 }
 0x20f   : > { %v2327_v15 = vpop.permute.xlu1 %2326  ;;  %v4372_v26 = vsel %vm4360_vm12, %v4339_v37, %v3447_v59  ;;  %v9409_v37 = vld [vmem:[#allocation24_spill] sm:$0xff]  ;;  %p6296_p5 = pnand %p6295_p3, %p6289_p0 }
 0x210   : > { %v4207_v60 = vsel %vm4179_vm13, %v4174_v4, %v2327_v15 }
 0x212   : > { %v2311_v34 = vpop.permute.xlu0 %2310 }
 0x213   : > { %v3591_v51 = vpop.permute.xlu1 %3590  ;;  %v4191_v6 = vsel %vm4179_vm13, %v4158_v23, %v2311_v34 }
 0x214   : > { %v4421_v53 = vsel %vm4393_vm14, %v4388_v21, %v3591_v51 }
 0x215   : > { %v4693_v35 = vpop.f32.mrb[0].mxu1 }
 0x216   : > { %v3575_v43 = vpop.permute.xlu0 %3574  ;;  %v8961_v40 = vadd.f32 %v8948_v38, %v4693_v35  ;;  %v4695_v28 = vpop.f32.mrb[1].mxu1 }
 0x217   : > { %v2599_v7 = vpop.permute.xlu1 %2598  ;;  %v4696_v62 = vpop.f32.mrb[2].mxu1  ;;  %v4405_v36 = vsel %vm4393_vm14, %v4372_v26, %v3575_v43 }
 0x218   : > { %v4629_v1 = vpop.f32.mrb[0].mxu0  ;;  %v4804_v13 = vmin.f32 %v8961_v40, 0.0  ;;  %v4697_v55 = vadd.f32 %v8948_v38, %v4696_v62  ;;  %v4698_v52 = vpop.f32.mrb[3].mxu1  ;;  %v4240_v25 = vsel %vm4212_vm15, %v4207_v60, %v2599_v7  ;;  %vm4772_vm0 = vcmp.gt.f32.partialorder %v8961_v40, 0.0 }
 0x219   : > { %v4630_v5 = vadd.f32 %v8948_v38, %v4629_v1  ;;  %v4631_v56 = vpop.f32.mrb[1].mxu0  ;;  %v4286_v46 = vsel %vm9397_vm3, %v4240_v25, %v8921_v16  ;;  %v9408_v52 = vld [vmem:[#allocation36_spill] sm:$0xff] }
 0x21a   : > { %v4852_v8 = vmul.f32 1.442695, %v4804_v13  ;;  %v4632_v24 = vpop.f32.mrb[2].mxu0  ;;  %v4805_v3 = vmin.f32 %v4697_v55, 0.0  ;;  %v2583_v49 = vpop.permute.xlu0 %2582 }
 0x21b   : > { %v4788_v14 = vmin.f32 %v4630_v5, 0.0  ;;  %v4633_v39 = vadd.f32 %v8948_v38, %v4632_v24  ;;  %v4634_v58 = vpop.f32.mrb[3].mxu0  ;;  %v3943_v17 = vpop.permute.xlu1 %3942  ;;  %v4224_v61 = vsel %vm4212_vm15, %v4191_v6, %v2583_v49  ;;  %vm4756_vm3 = vcmp.gt.f32.partialorder %v4630_v5, 0.0 }
 0x21c   : > { %6212 = vpow2.f32 %v4852_v8  ;;  %v4854_v30 = vmul.f32 1.442695, %v4805_v3  ;;  %v4454_v11 = vsel %vm4426_vm5, %v4421_v53, %v3943_v17  ;;  %v4262_v29 = vsel %vm9407_vm6, %v4224_v61, %v8930_v54 }
 0x21d   : > { %v4820_v63 = vmul.f32 1.442695, %v4788_v14  ;;  %v4789_v33 = vmin.f32 %v4633_v39, 0.0  ;;  %5742 = vmatprep.mubr.msk.bf16.mxu1 %vm9396_vm1, %v4454_v11  ;;  %vm4773_vm1 = vcmp.gt.f32.partialorder %v4697_v55, 0.0  ;;  %vm9410_vm6 = vcmask 392192  }
 0x21e   : > { %6214 = vpow2.f32 %v4854_v30  ;;  %v3927_v20 = vpop.permute.xlu0 %3926  ;;  %4732 = vmatmul.mubr.bf16.gmra.mrb[20].mxu1 %v4286_v46  ;;  %v4061_v23 = vsel %vm9410_vm6, %v9409_v37, %v9408_v52 }
 0x21f   : > { %6216 = vpow2.f32 %v4820_v63  ;;  %v4822_v27 = vmul.f32 1.442695, %v4789_v33  ;;  %v4438_v47 = vsel %vm4426_vm5, %v4405_v36, %v3927_v20  ;;  %v1721_v57 = vpop.permute.xlu1 %1720 }
 0x220   : > { %5734 = vmatprep.mubr.msk.bf16.mxu0 %vm9406_vm4, %v4438_v47  ;;  %vm4757_vm4 = vcmp.gt.f32.partialorder %v4633_v39, 0.0 }
 0x221   : > { %6218 = vpow2.f32 %v4822_v27  ;;  %4668 = vmatmul.mubr.bf16.gmra.mrb[20].mxu0 %v4262_v29 }
 0x222   : > { %v8993_v45 = vpop.permute.xlu0 %1464 }
 0x223   : > { %v8996_v16 = vpop.permute.xlu1 %2712 }
 0x226   : > { %v6213_v18 = vpop.eup %6212  ;;  %v9000_v44 = vpop.permute.xlu0 %1736 }
 0x227   : > { %v5761_v59 = vadd.f32 -1.0, %v6213_v18  ;;  %v3065_v15 = vpop.permute.xlu1 %3064 }
 0x228   : > { %v6215_v34 = vpop.eup %6214  ;;  %v4308_v49 = vsel %vm4294_vm9, %v8996_v16, %v3065_v15 }
 0x229   : > { %v6217_v51 = vpop.eup %6216  ;;  %v4932_v54 = vsel %vm4772_vm0, %v8961_v40, %v5761_v59  ;;  %v5762_v41 = vadd.f32 -1.0, %v6215_v34  ;;  %v9411_v59 = vld [vmem:[#allocation30_spill] sm:$0xff]  ;;  %vm9412_vm0 = vmmov %vm9410_vm6 }
 0x22a   : > { %v5745_v42 = vadd.f32 -1.0, %v6217_v51  ;;  %v5830_v9 = vpack.c.bf16 %v4932_v54, %v4932_v54  ;;  %v9004_v48 = vpop.permute.xlu0 %2728  ;;  %v4077_v15 = vsel %vm9412_vm0, %v9411_v59, %v8993_v45  ;;  %v9417_v59 = vld [vmem:[#allocation35_spill] sm:$0xff] }
 0x22b   : > { %v6219_v10 = vpop.eup %6218  ;;  %v4933_v32 = vsel %vm4773_vm1, %v4697_v55, %v5762_v41  ;;  %v1849_v35 = vpop.permute.xlu1 %1848  ;;  %v4110_v54 = vsel %vm4080_vm7, %v4077_v15, %v9000_v44  ;;  %vm9413_vm1 = vcmask 523264   ;;  %v9418_v15 = vld [vmem:[#allocation23_spill] sm:$0xff] }
 0x22c   : > { %v4916_v19 = vsel %vm4756_vm3, %v4630_v5, %v5745_v42  ;;  %5093 = vst.msk [vmem:[%s9006_s11 + $0x40] sm:$0xf] %vm5076_vm2, %v5830_v9  ;;  %v5746_v22 = vadd.f32 -1.0, %v6219_v10  ;;  %v5831_v43 = vpack.c.bf16 %v4933_v32, %v4933_v32  ;;  %v4094_v5 = vsel %vm4080_vm7, %v4061_v23, %v1721_v57 }
 0x22d   : > { %v5814_v40 = vpack.c.bf16 %v4916_v19, %v4916_v19  ;;  %v4127_v25 = vsel %vm4113_vm8, %v4094_v5, %v1849_v35  ;;  %vm9414_vm3 = vcmask 982016  }
 0x22e   : > { %v4917_v28 = vsel %vm4757_vm4, %v4633_v39, %v5746_v22  ;;  %5094 = vst.msk [vmem:[%s9006_s11 + $0x44] sm:$0xf] %vm5076_vm2, %v5831_v43  ;;  %v3081_v2 = vpop.permute.xlu0 %3080  ;;  %vm9415_vm4 = vmmov %vm9413_vm1 }
 0x22f   : > { %5077 = vst.msk [vmem:[%s9006_s11] sm:$0xf] %vm5076_vm2, %v5814_v40  ;;  %v5815_v0 = vpack.c.bf16 %v4917_v28, %v4917_v28  ;;  %v3177_v12 = vpop.permute.xlu1 %3176  ;;  %v4324_v45 = vsel %vm4294_vm9, %v9004_v48, %v3081_v2  ;;  %vm9416_vm6 = vmmov %vm9414_vm3 }
 0x230   : > { %v4341_v17 = vsel %vm4327_vm11, %v4308_v49, %v3177_v12 }
 0x231   : > { %5078 = vst.msk [vmem:[%s9006_s11 + $0x4] sm:$0xf] %vm5076_vm2, %v5815_v0 }
 0x232   : > { %v1865_v31 = vpop.permute.xlu0 %1864 }
 0x233   : > { %v2201_v7 = vpop.permute.xlu1 %2200  ;;  %v4143_v10 = vsel %vm4113_vm8, %v4110_v54, %v1865_v31 }
 0x234   : > { %v4160_v26 = vsel %vm4146_vm10, %v4127_v25, %v2201_v7 }
 0x236   : > { %v3193_v62 = vpop.permute.xlu0 %3192 }
 0x237   : > { %v3449_v50 = vpop.permute.xlu1 %3448  ;;  %v4357_v22 = vsel %vm4327_vm11, %v4324_v45, %v3193_v62 }
 0x238   : > { %v4374_v63 = vsel %vm4360_vm12, %v4341_v17, %v3449_v50 }
 0x23a   : > { %v2217_v4 = vpop.permute.xlu0 %2216 }
 0x23b   : > { %v2313_v1 = vpop.permute.xlu1 %2312  ;;  %v4176_v35 = vsel %vm4146_vm10, %v4143_v10, %v2217_v4 }
 0x23c   : > { %v4193_v6 = vsel %vm4179_vm13, %v4160_v26, %v2313_v1 }
 0x23e   : > { %v3465_v13 = vpop.permute.xlu0 %3464 }
 0x23f   : > { %v3577_v55 = vpop.permute.xlu1 %3576 }
 0x240   : > { %v4407_v27 = vsel %vm4393_vm14, %v4374_v63, %v3577_v55 }
 0x241   : > { %v4701_v60 = vpop.f32.mrb[4].mxu1 }
 0x242   : > { %v2329_v56 = vpop.permute.xlu0 %2328  ;;  %v9021_v21 = vadd.f32 %v8948_v38, %v4701_v60  ;;  %v4703_v8 = vpop.f32.mrb[5].mxu1 }
 0x243   : > { %v2585_v24 = vpop.permute.xlu1 %2584  ;;  %v4704_v3 = vpop.f32.mrb[6].mxu1  ;;  %v4209_v43 = vsel %vm4179_vm13, %v4176_v35, %v2329_v56 }
 0x244   : > { %v4637_v53 = vpop.f32.mrb[4].mxu0  ;;  %v4806_v14 = vmin.f32 %v9021_v21, 0.0  ;;  %v9029_v39 = vadd.f32 %v8948_v38, %v4704_v3  ;;  %v4706_v58 = vpop.f32.mrb[7].mxu1  ;;  %v4226_v61 = vsel %vm4212_vm15, %v4193_v6, %v2585_v24  ;;  %vm4774_vm0 = vcmp.gt.f32.partialorder %v9021_v21, 0.0 }
 0x245   : > { %v4638_v30 = vadd.f32 %v8948_v38, %v4637_v53  ;;  %v4639_v11 = vpop.f32.mrb[5].mxu0  ;;  %v4265_v9 = vsel %vm9414_vm3, %v4226_v61, %v8996_v16  ;;  %v4390_v16 = vsel %vm4360_vm12, %v4357_v22, %v3465_v13 }
 0x246   : > { %v4856_v33 = vmul.f32 1.442695, %v4806_v14  ;;  %v4640_v46 = vpop.f32.mrb[6].mxu0  ;;  %v4807_v36 = vmin.f32 %v9029_v39, 0.0  ;;  %v3593_v20 = vpop.permute.xlu0 %3592 }
 0x247   : > { %v4790_v47 = vmin.f32 %v4638_v30, 0.0  ;;  %v4641_v57 = vadd.f32 %v8948_v38, %v4640_v46  ;;  %v4642_v29 = vpop.f32.mrb[7].mxu0  ;;  %v3929_v18 = vpop.permute.xlu1 %3928  ;;  %v4423_v28 = vsel %vm4393_vm14, %v4390_v16, %v3593_v20  ;;  %vm4758_vm3 = vcmp.gt.f32.partialorder %v4638_v30, 0.0 }
 0x248   : > { %6220 = vpow2.f32 %v4856_v33  ;;  %v4858_v34 = vmul.f32 1.442695, %v4807_v36  ;;  %v4440_v51 = vsel %vm4426_vm5, %v4407_v27, %v3929_v18 }
 0x249   : > { %v4824_v41 = vmul.f32 1.442695, %v4790_v47  ;;  %v4791_v42 = vmin.f32 %v4641_v57, 0.0  ;;  %5735 = vmatprep.mubr.msk.bf16.mxu0 %vm9413_vm1, %v4440_v51  ;;  %vm4775_vm1 = vcmp.gt.f32.partialorder %v9029_v39, 0.0  ;;  %v9420_v51 = vld [vmem:[#allocation29_spill] sm:$0xff] }
 0x24a   : > { %6222 = vpow2.f32 %v4858_v34  ;;  %v2601_v32 = vpop.permute.xlu0 %2600  ;;  %4676 = vmatmul.mubr.bf16.gmra.mrb[24].mxu0 %v4265_v9 }
 0x24b   : > { %6224 = vpow2.f32 %v4824_v41  ;;  %v4826_v19 = vmul.f32 1.442695, %v4791_v42  ;;  %v9052_v44 = vpop.permute.xlu1 %1466  ;;  %v4242_v40 = vsel %vm4212_vm15, %v4209_v43, %v2601_v32 }
 0x24c   : > { %v4289_v31 = vsel %vm9416_vm6, %v4242_v40, %v9004_v48  ;;  %vm9419_vm6 = vcmask 392192  }
 0x24d   : > { %6226 = vpow2.f32 %v4826_v19  ;;  %v4063_v34 = vsel %vm9419_vm6, %v9418_v15, %v9417_v59 }
 0x24e   : > { %v3945_v0 = vpop.permute.xlu0 %3944 }
 0x24f   : > { %v4456_v2 = vsel %vm4426_vm5, %v4423_v28, %v3945_v0  ;;  %v1739_v12 = vpop.permute.xlu1 %1738 }
 0x250   : > { %5743 = vmatprep.mubr.msk.bf16.mxu1 %vm9415_vm4, %v4456_v2  ;;  %vm4759_vm4 = vcmp.gt.f32.partialorder %v4641_v57, 0.0 }
 0x251   : > { %4740 = vmatmul.mubr.bf16.gmra.mrb[24].mxu1 %v4289_v31 }
 0x252   : > { %v6221_v7 = vpop.eup %6220  ;;  %v1723_v62 = vpop.permute.xlu0 %1722 }
 0x253   : > { %v5763_v50 = vadd.f32 -1.0, %v6221_v7  ;;  %v9063_v4 = vpop.permute.xlu1 %2730  ;;  %v4096_v10 = vsel %vm4080_vm7, %v4063_v34, %v1723_v62 }
 0x254   : > { %v6223_v1 = vpop.eup %6222 }
 0x255   : > { %v6225_v13 = vpop.eup %6224  ;;  %v4934_v55 = vsel %vm4774_vm0, %v9021_v21, %v5763_v50  ;;  %v5764_v52 = vadd.f32 -1.0, %v6223_v1  ;;  %vm9421_vm0 = vmmov %vm9419_vm6 }
 0x256   : > { %v5747_v37 = vadd.f32 -1.0, %v6225_v13  ;;  %v5832_v23 = vpack.c.bf16 %v4934_v55, %v4934_v55  ;;  %v9068_v48 = vpop.permute.xlu0 %2714  ;;  %v4079_v54 = vsel %vm9421_vm0, %v9420_v51, %v9052_v44 }
 0x257   : > { %v6227_v60 = vpop.eup %6226  ;;  %v4935_v5 = vsel %vm4775_vm1, %v9029_v39, %v5764_v52  ;;  %v3083_v56 = vpop.permute.xlu1 %3082  ;;  %v4112_v9 = vsel %vm4080_vm7, %v4079_v54, %v1739_v12  ;;  %vm9422_vm7 = vcmask 523264  }
 0x258   : > { %v4918_v8 = vsel %vm4758_vm3, %v4638_v30, %v5747_v37  ;;  %5095 = vst.msk [vmem:[%s9006_s11 + $0x48] sm:$0xf] %vm5076_vm2, %v5832_v23  ;;  %v5748_v25 = vadd.f32 -1.0, %v6227_v60  ;;  %v5833_v21 = vpack.c.bf16 %v4935_v5, %v4935_v5  ;;  %v4326_v22 = vsel %vm4294_vm9, %v9063_v4, %v3083_v56 }
 0x259   : > { %v5816_v24 = vpack.c.bf16 %v4918_v8, %v4918_v8 }
 0x25a   : > { %v4919_v3 = vsel %vm4759_vm4, %v4641_v57, %v5748_v25  ;;  %5096 = vst.msk [vmem:[%s9006_s11 + $0x4c] sm:$0xf] %vm5076_vm2, %v5833_v21  ;;  %v3067_v49 = vpop.permute.xlu0 %3066 }
 0x25b   : > { %5079 = vst.msk [vmem:[%s9006_s11 + $0x8] sm:$0xf] %vm5076_vm2, %v5816_v24  ;;  %v5817_v26 = vpack.c.bf16 %v4919_v3, %v4919_v3  ;;  %v1867_v53 = vpop.permute.xlu1 %1866  ;;  %v4310_v0 = vsel %vm4294_vm9, %v9068_v48, %v3067_v49  ;;  %vm9424_vm9 = vmmov %vm9422_vm7 }
 0x25c   : > { %v4145_v43 = vsel %vm4113_vm8, %v4112_v9, %v1867_v53 }
 0x25d   : > { %5080 = vst.msk [vmem:[%s9006_s11 + $0xc] sm:$0xf] %vm5076_vm2, %v5817_v26 }
 0x25e   : > { %v1851_v14 = vpop.permute.xlu0 %1850 }
 0x25f   : > { %v3195_v39 = vpop.permute.xlu1 %3194  ;;  %v4129_v1 = vsel %vm4113_vm8, %v4096_v10, %v1851_v14  ;;  %vm9423_vm8 = vcmask 982016  }
 0x260   : > { %v4359_v31 = vsel %vm4327_vm11, %v4326_v22, %v3195_v39 }
 0x262   : > { %v3179_v58 = vpop.permute.xlu0 %3178 }
 0x263   : > { %v2219_v17 = vpop.permute.xlu1 %2218  ;;  %v4343_v56 = vsel %vm4327_vm11, %v4310_v0, %v3179_v58 }
 0x264   : > { %v4178_v2 = vsel %vm4146_vm10, %v4145_v43, %v2219_v17 }
 0x266   : > { %v2203_v6 = vpop.permute.xlu0 %2202 }
 0x267   : > { %v3467_v30 = vpop.permute.xlu1 %3466  ;;  %v4162_v37 = vsel %vm4146_vm10, %v4129_v1, %v2203_v6  ;;  %vm9425_vm10 = vmmov %vm9423_vm8 }
 0x268   : > { %v4392_v13 = vsel %vm4360_vm12, %v4359_v31, %v3467_v30 }
 0x26a   : > { %v3451_v11 = vpop.permute.xlu0 %3450 }
 0x26b   : > { %v2331_v63 = vpop.permute.xlu1 %2330  ;;  %v4376_v21 = vsel %vm4360_vm12, %v4343_v56, %v3451_v11 }
 0x26c   : > { %v4211_v7 = vsel %vm4179_vm13, %v4178_v2, %v2331_v63 }
 0x26d   : > { %v4709_v33 = vpop.f32.mrb[8].mxu1 }
 0x26e   : > { %v2315_v61 = vpop.permute.xlu0 %2314  ;;  %v9080_v46 = vadd.f32 %v8948_v38, %v4709_v33  ;;  %v4711_v36 = vpop.f32.mrb[9].mxu1 }
 0x26f   : > { %v3595_v20 = vpop.permute.xlu1 %3594  ;;  %v4712_v27 = vpop.f32.mrb[10].mxu1  ;;  %v4195_v8 = vsel %vm4179_vm13, %v4162_v37, %v2315_v61 }
 0x270   : > { %v4645_v47 = vpop.f32.mrb[8].mxu0  ;;  %v4808_v57 = vmin.f32 %v9080_v46, 0.0  ;;  %v9084_v29 = vadd.f32 %v8948_v38, %v4712_v27  ;;  %v4714_v18 = vpop.f32.mrb[11].mxu1  ;;  %v4425_v23 = vsel %vm4393_vm14, %v4392_v13, %v3595_v20  ;;  %vm4776_vm11 = vcmp.gt.f32.partialorder %v9080_v46, 0.0 }
 0x271   : > { %v4646_v41 = vadd.f32 %v8948_v38, %v4645_v47  ;;  %v4647_v42 = vpop.f32.mrb[9].mxu0 }
 0x272   : > { %v4860_v32 = vmul.f32 1.442695, %v4808_v57  ;;  %v4648_v45 = vpop.f32.mrb[10].mxu0  ;;  %v4809_v35 = vmin.f32 %v9084_v29, 0.0  ;;  %v3579_v19 = vpop.permute.xlu0 %3578 }
 0x273   : > { %v4792_v16 = vmin.f32 %v4646_v41, 0.0  ;;  %v4649_v44 = vadd.f32 %v8948_v38, %v4648_v45  ;;  %v4650_v40 = vpop.f32.mrb[11].mxu0  ;;  %v2603_v28 = vpop.permute.xlu1 %2602  ;;  %v4409_v49 = vsel %vm4393_vm14, %v4376_v21, %v3579_v19  ;;  %vm4760_vm12 = vcmp.gt.f32.partialorder %v4646_v41, 0.0 }
 0x274   : > { %6228 = vpow2.f32 %v4860_v32  ;;  %v4862_v12 = vmul.f32 1.442695, %v4809_v35  ;;  %v4244_v55 = vsel %vm4212_vm15, %v4211_v7, %v2603_v28 }
 0x275   : > { %v4828_v62 = vmul.f32 1.442695, %v4792_v16  ;;  %v4793_v50 = vmin.f32 %v4649_v44, 0.0  ;;  %v4292_v3 = vsel %vm9423_vm8, %v4244_v55, %v9063_v4  ;;  %vm4761_vm13 = vcmp.gt.f32.partialorder %v4649_v44, 0.0 }
 0x276   : > { %6230 = vpow2.f32 %v4862_v12  ;;  %v2587_v52 = vpop.permute.xlu0 %2586 }
 0x277   : > { %6232 = vpow2.f32 %v4828_v62  ;;  %v4830_v60 = vmul.f32 1.442695, %v4793_v50  ;;  %v3947_v5 = vpop.permute.xlu1 %3946  ;;  %v4228_v24 = vsel %vm4212_vm15, %v4195_v8, %v2587_v52 }
 0x278   : > { %v4458_v25 = vsel %vm4426_vm5, %v4425_v23, %v3947_v5  ;;  %v4268_v14 = vsel %vm9425_vm10, %v4228_v24, %v9068_v48 }
 0x279   : > { %6234 = vpow2.f32 %v4830_v60  ;;  %5744 = vmatprep.mubr.msk.bf16.mxu1 %vm9422_vm7, %v4458_v25 }
 0x27a   : > { %v3931_v26 = vpop.permute.xlu0 %3930  ;;  %4748 = vmatmul.mubr.bf16.gmra.mrb[28].mxu1 %v4292_v3 }
 0x27b   : > { %v4442_v53 = vsel %vm4426_vm5, %v4409_v49, %v3931_v26  ;;  %vm4777_vm5 = vcmp.gt.f32.partialorder %v9084_v29, 0.0 }
 0x27c   : > { %5736 = vmatprep.mubr.msk.bf16.mxu0 %vm9424_vm9, %v4442_v53 }
 0x27d   : > { %4684 = vmatmul.mubr.bf16.gmra.mrb[28].mxu0 %v4268_v14 }
 0x27e   : > { %v6229_v39 = vpop.eup %6228 }
 0x27f   : > { %v5765_v58 = vadd.f32 -1.0, %v6229_v39 }
 0x280   : > { %v6231_v17 = vpop.eup %6230 }
 0x281   : > { %v6233_v6 = vpop.eup %6232  ;;  %v4936_v4 = vsel %vm4776_vm11, %v9080_v46, %v5765_v58  ;;  %v5766_v30 = vadd.f32 -1.0, %v6231_v17 }
 0x282   : > { %v5749_v11 = vadd.f32 -1.0, %v6233_v6  ;;  %v5834_v63 = vpack.c.bf16 %v4936_v4, %v4936_v4 }
 0x283   : > { %v6235_v33 = vpop.eup %6234  ;;  %v4937_v48 = vsel %vm4777_vm5, %v9084_v29, %v5766_v30 }
 0x284   : > { %v4920_v61 = vsel %vm4760_vm12, %v4646_v41, %v5749_v11  ;;  %5097 = vst.msk [vmem:[%s9006_s11 + $0x50] sm:$0xf] %vm5076_vm2, %v5834_v63  ;;  %v5750_v36 = vadd.f32 -1.0, %v6235_v33  ;;  %v5835_v20 = vpack.c.bf16 %v4937_v48, %v4937_v48 }
 0x285   : > { %v5818_v27 = vpack.c.bf16 %v4920_v61, %v4920_v61 }
 0x286   : > { %v4921_v47 = vsel %vm4761_vm13, %v4649_v44, %v5750_v36  ;;  %5098 = vst.msk [vmem:[%s9006_s11 + $0x54] sm:$0xf] %vm5076_vm2, %v5835_v20 }
 0x287   : > { %5081 = vst.msk [vmem:[%s9006_s11 + $0x10] sm:$0xf] %vm5076_vm2, %v5818_v27  ;;  %v5819_v46 = vpack.c.bf16 %v4921_v47, %v4921_v47 }
 0x289   : > { %5082 = vst.msk [vmem:[%s9006_s11 + $0x14] sm:$0xf] %vm5076_vm2, %v5819_v46 }
 0x299   : > { %v4717_v57 = vpop.f32.mrb[12].mxu1 }
 0x29a   : > { %v4718_v18 = vadd.f32 %v8948_v38, %v4717_v57  ;;  %v4719_v59 = vpop.f32.mrb[13].mxu1 }
 0x29b   : > { %v4720_v29 = vpop.f32.mrb[14].mxu1 }
 0x29c   : > { %v4653_v15 = vpop.f32.mrb[12].mxu0  ;;  %v4810_v34 = vmin.f32 %v4718_v18, 0.0  ;;  %v4721_v51 = vadd.f32 %v8948_v38, %v4720_v29  ;;  %v4722_v54 = vpop.f32.mrb[15].mxu1  ;;  %vm4778_vm14 = vcmp.gt.f32.partialorder %v4718_v18, 0.0 }
 0x29d   : > { %v4654_v41 = vadd.f32 %v8948_v38, %v4653_v15  ;;  %v4655_v42 = vpop.f32.mrb[13].mxu0 }
 0x29e   : > { %v4864_v9 = vmul.f32 1.442695, %v4810_v34  ;;  %v4656_v10 = vpop.f32.mrb[14].mxu0  ;;  %v4811_v32 = vmin.f32 %v4721_v51, 0.0  ;;  %vm4779_vm15 = vcmp.gt.f32.partialorder %v4721_v51, 0.0 }
 0x29f   : > { %v4794_v45 = vmin.f32 %v4654_v41, 0.0  ;;  %v4657_v35 = vadd.f32 %v8948_v38, %v4656_v10  ;;  %v4658_v19 = vpop.f32.mrb[15].mxu0  ;;  %vm4762_vm1 = vcmp.gt.f32.partialorder %v4654_v41, 0.0 }
 0x2a0   : > { %6236 = vpow2.f32 %v4864_v9  ;;  %v4866_v22 = vmul.f32 1.442695, %v4811_v32 }
 0x2a1   : > { %v4832_v43 = vmul.f32 1.442695, %v4794_v45  ;;  %v4795_v16 = vmin.f32 %v4657_v35, 0.0  ;;  %vm4763_vm3 = vcmp.gt.f32.partialorder %v4657_v35, 0.0 }
 0x2a2   : > { %6238 = vpow2.f32 %v4866_v22 }
 0x2a3   : > { %6240 = vpow2.f32 %v4832_v43  ;;  %v4834_v44 = vmul.f32 1.442695, %v4795_v16 }
 0x2a5   : > { %6242 = vpow2.f32 %v4834_v44 }
 0x2aa   : > { %v6237_v40 = vpop.eup %6236 }
 0x2ab   : > { %v5767_v28 = vadd.f32 -1.0, %v6237_v40 }
 0x2ac   : > { %v6239_v0 = vpop.eup %6238 }
 0x2ad   : > { %v6241_v2 = vpop.eup %6240  ;;  %v4938_v12 = vsel %vm4778_vm14, %v4718_v18, %v5767_v28  ;;  %v5768_v31 = vadd.f32 -1.0, %v6239_v0 }
 0x2ae   : > { %v5751_v7 = vadd.f32 -1.0, %v6241_v2  ;;  %v5836_v62 = vpack.c.bf16 %v4938_v12, %v4938_v12 }
 0x2af   : > { %v6243_v50 = vpop.eup %6242  ;;  %v4939_v1 = vsel %vm4779_vm15, %v4721_v51, %v5768_v31 }
 0x2b0   : > { %v4922_v13 = vsel %vm4762_vm1, %v4654_v41, %v5751_v7  ;;  %5099 = vst.msk [vmem:[%s9006_s11 + $0x58] sm:$0xf] %vm5076_vm2, %v5836_v62  ;;  %v5752_v55 = vadd.f32 -1.0, %v6243_v50  ;;  %v5837_v52 = vpack.c.bf16 %v4939_v1, %v4939_v1 }
 0x2b1   : > { %v5820_v37 = vpack.c.bf16 %v4922_v13, %v4922_v13 }
 0x2b2   : > { %v4923_v23 = vsel %vm4763_vm3, %v4657_v35, %v5752_v55  ;;  %5100 = vst.msk [vmem:[%s9006_s11 + $0x5c] sm:$0xf] %vm5076_vm2, %v5837_v52 }
 0x2b3   : > { %5083 = vst.msk [vmem:[%s9006_s11 + $0x18] sm:$0xf] %vm5076_vm2, %v5820_v37  ;;  %v5821_v60 = vpack.c.bf16 %v4923_v23, %v4923_v23 }
 0x2b5   : > { %5084 = vst.msk [vmem:[%s9006_s11 + $0x1c] sm:$0xf] %vm5076_vm2, %v5821_v60 }
 0x2c5   : > { %v4725_v5 = vpop.f32.mrb[16].mxu1 }
 0x2c6   : > { %v4726_v56 = vadd.f32 %v8948_v38, %v4725_v5  ;;  %v4727_v8 = vpop.f32.mrb[17].mxu1 }
 0x2c7   : > { %v4728_v25 = vpop.f32.mrb[18].mxu1 }
 0x2c8   : > { %v4661_v21 = vpop.f32.mrb[16].mxu0  ;;  %v4812_v24 = vmin.f32 %v4726_v56, 0.0  ;;  %v4729_v3 = vadd.f32 %v8948_v38, %v4728_v25  ;;  %v4730_v49 = vpop.f32.mrb[19].mxu1  ;;  %vm4780_vm4 = vcmp.gt.f32.partialorder %v4726_v56, 0.0 }
 0x2c9   : > { %v4662_v26 = vadd.f32 %v8948_v38, %v4661_v21  ;;  %v4663_v53 = vpop.f32.mrb[17].mxu0 }
 0x2ca   : > { %v4868_v14 = vmul.f32 1.442695, %v4812_v24  ;;  %v4664_v39 = vpop.f32.mrb[18].mxu0  ;;  %v4813_v58 = vmin.f32 %v4729_v3, 0.0  ;;  %vm4781_vm6 = vcmp.gt.f32.partialorder %v4729_v3, 0.0 }
 0x2cb   : > { %v4796_v17 = vmin.f32 %v4662_v26, 0.0  ;;  %v4665_v6 = vadd.f32 %v8948_v38, %v4664_v39  ;;  %v4666_v4 = vpop.f32.mrb[19].mxu0  ;;  %vm4764_vm0 = vcmp.gt.f32.partialorder %v4662_v26, 0.0 }
 0x2cc   : > { %6244 = vpow2.f32 %v4868_v14  ;;  %v4870_v30 = vmul.f32 1.442695, %v4813_v58 }
 0x2cd   : > { %v4836_v11 = vmul.f32 1.442695, %v4796_v17  ;;  %v4797_v63 = vmin.f32 %v4665_v6, 0.0  ;;  %vm4765_vm7 = vcmp.gt.f32.partialorder %v4665_v6, 0.0 }
 0x2ce   : > { %6246 = vpow2.f32 %v4870_v30 }
 0x2cf   : > { %6248 = vpow2.f32 %v4836_v11  ;;  %v4838_v33 = vmul.f32 1.442695, %v4797_v63 }
 0x2d1   : > { %6250 = vpow2.f32 %v4838_v33 }
 0x2d6   : > { %v6245_v48 = vpop.eup %6244 }
 0x2d7   : > { %v5769_v61 = vadd.f32 -1.0, %v6245_v48 }
 0x2d8   : > { %v6247_v36 = vpop.eup %6246 }
 0x2d9   : > { %v6249_v20 = vpop.eup %6248  ;;  %v4940_v27 = vsel %vm4780_vm4, %v4726_v56, %v5769_v61  ;;  %v5770_v47 = vadd.f32 -1.0, %v6247_v36 }
 0x2da   : > { %v5753_v46 = vadd.f32 -1.0, %v6249_v20  ;;  %v5838_v57 = vpack.c.bf16 %v4940_v27, %v4940_v27 }
 0x2db   : > { %v6251_v18 = vpop.eup %6250  ;;  %v4941_v59 = vsel %vm4781_vm6, %v4729_v3, %v5770_v47 }
 0x2dc   : > { %v4924_v29 = vsel %vm4764_vm0, %v4662_v26, %v5753_v46  ;;  %5101 = vst.msk [vmem:[%s9006_s11 + $0x60] sm:$0xf] %vm5076_vm2, %v5838_v57  ;;  %v5754_v15 = vadd.f32 -1.0, %v6251_v18  ;;  %v5839_v34 = vpack.c.bf16 %v4941_v59, %v4941_v59 }
 0x2dd   : > { %v5822_v51 = vpack.c.bf16 %v4924_v29, %v4924_v29 }
 0x2de   : > { %v4925_v54 = vsel %vm4765_vm7, %v4665_v6, %v5754_v15  ;;  %5102 = vst.msk [vmem:[%s9006_s11 + $0x64] sm:$0xf] %vm5076_vm2, %v5839_v34 }
 0x2df   : > { %5085 = vst.msk [vmem:[%s9006_s11 + $0x20] sm:$0xf] %vm5076_vm2, %v5822_v51  ;;  %v5823_v41 = vpack.c.bf16 %v4925_v54, %v4925_v54 }
 0x2e1   : > { %5086 = vst.msk [vmem:[%s9006_s11 + $0x24] sm:$0xf] %vm5076_vm2, %v5823_v41 }
 0x2f1   : > { %v4733_v42 = vpop.f32.mrb[20].mxu1 }
 0x2f2   : > { %v4734_v9 = vadd.f32 %v8948_v38, %v4733_v42  ;;  %v4735_v10 = vpop.f32.mrb[21].mxu1 }
 0x2f3   : > { %v4736_v32 = vpop.f32.mrb[22].mxu1 }
 0x2f4   : > { %v4669_v45 = vpop.f32.mrb[20].mxu0  ;;  %v4814_v35 = vmin.f32 %v4734_v9, 0.0  ;;  %v4737_v19 = vadd.f32 %v8948_v38, %v4736_v32  ;;  %v4738_v22 = vpop.f32.mrb[23].mxu1  ;;  %vm4782_vm8 = vcmp.gt.f32.partialorder %v4734_v9, 0.0 }
 0x2f5   : > { %v4670_v43 = vadd.f32 %v8948_v38, %v4669_v45  ;;  %v4671_v16 = vpop.f32.mrb[21].mxu0 }
 0x2f6   : > { %v4872_v44 = vmul.f32 1.442695, %v4814_v35  ;;  %v4672_v40 = vpop.f32.mrb[22].mxu0  ;;  %v4815_v28 = vmin.f32 %v4737_v19, 0.0  ;;  %vm4783_vm9 = vcmp.gt.f32.partialorder %v4737_v19, 0.0 }
 0x2f7   : > { %v4798_v0 = vmin.f32 %v4670_v43, 0.0  ;;  %v4673_v2 = vadd.f32 %v8948_v38, %v4672_v40  ;;  %v4674_v12 = vpop.f32.mrb[23].mxu0  ;;  %vm4766_vm10 = vcmp.gt.f32.partialorder %v4670_v43, 0.0 }
 0x2f8   : > { %6252 = vpow2.f32 %v4872_v44  ;;  %v4874_v31 = vmul.f32 1.442695, %v4815_v28 }
 0x2f9   : > { %v4840_v7 = vmul.f32 1.442695, %v4798_v0  ;;  %v4799_v62 = vmin.f32 %v4673_v2, 0.0  ;;  %vm4767_vm11 = vcmp.gt.f32.partialorder %v4673_v2, 0.0 }
 0x2fa   : > { %6254 = vpow2.f32 %v4874_v31 }
 0x2fb   : > { %6256 = vpow2.f32 %v4840_v7  ;;  %v4842_v50 = vmul.f32 1.442695, %v4799_v62 }
 0x2fd   : > { %6258 = vpow2.f32 %v4842_v50 }
 0x302   : > { %v6253_v1 = vpop.eup %6252 }
 0x303   : > { %v5771_v13 = vadd.f32 -1.0, %v6253_v1 }
 0x304   : > { %v6255_v55 = vpop.eup %6254 }
 0x305   : > { %v6257_v52 = vpop.eup %6256  ;;  %v4942_v37 = vsel %vm4782_vm8, %v4734_v9, %v5771_v13  ;;  %v5772_v23 = vadd.f32 -1.0, %v6255_v55 }
 0x306   : > { %v5755_v60 = vadd.f32 -1.0, %v6257_v52  ;;  %v5840_v5 = vpack.c.bf16 %v4942_v37, %v4942_v37 }
 0x307   : > { %v6259_v56 = vpop.eup %6258  ;;  %v4943_v8 = vsel %vm4783_vm9, %v4737_v19, %v5772_v23 }
 0x308   : > { %v4926_v25 = vsel %vm4766_vm10, %v4670_v43, %v5755_v60  ;;  %5103 = vst.msk [vmem:[%s9006_s11 + $0x68] sm:$0xf] %vm5076_vm2, %v5840_v5  ;;  %v5756_v21 = vadd.f32 -1.0, %v6259_v56  ;;  %v5841_v24 = vpack.c.bf16 %v4943_v8, %v4943_v8 }
 0x309   : > { %v5824_v3 = vpack.c.bf16 %v4926_v25, %v4926_v25 }
 0x30a   : > { %v4927_v49 = vsel %vm4767_vm11, %v4673_v2, %v5756_v21  ;;  %5104 = vst.msk [vmem:[%s9006_s11 + $0x6c] sm:$0xf] %vm5076_vm2, %v5841_v24 }
 0x30b   : > { %5087 = vst.msk [vmem:[%s9006_s11 + $0x28] sm:$0xf] %vm5076_vm2, %v5824_v3  ;;  %v5825_v26 = vpack.c.bf16 %v4927_v49, %v4927_v49 }
 0x30d   : > { %5088 = vst.msk [vmem:[%s9006_s11 + $0x2c] sm:$0xf] %vm5076_vm2, %v5825_v26 }
 0x31d   : > { %v4677_v53 = vpop.f32.mrb[24].mxu0 }
 0x31e   : > { %v4678_v14 = vadd.f32 %v8948_v38, %v4677_v53  ;;  %v4679_v39 = vpop.f32.mrb[25].mxu0 }
 0x31f   : > { %v4680_v58 = vpop.f32.mrb[26].mxu0 }
 0x320   : > { %v4800_v17 = vmin.f32 %v4678_v14, 0.0  ;;  %v4681_v6 = vadd.f32 %v8948_v38, %v4680_v58  ;;  %v4682_v4 = vpop.f32.mrb[27].mxu0  ;;  %vm4768_vm5 = vcmp.gt.f32.partialorder %v4678_v14, 0.0 }
 0x322   : > { %v4844_v30 = vmul.f32 1.442695, %v4800_v17  ;;  %v4801_v11 = vmin.f32 %v4681_v6, 0.0  ;;  %vm4769_vm12 = vcmp.gt.f32.partialorder %v4681_v6, 0.0 }
 0x324   : > { %6260 = vpow2.f32 %v4844_v30  ;;  %v4846_v63 = vmul.f32 1.442695, %v4801_v11  ;;  %v4741_v33 = vpop.f32.mrb[24].mxu1 }
 0x325   : > { %v4742_v48 = vadd.f32 %v8948_v38, %v4741_v33  ;;  %v4743_v61 = vpop.f32.mrb[25].mxu1 }
 0x326   : > { %6262 = vpow2.f32 %v4846_v63  ;;  %v4744_v36 = vpop.f32.mrb[26].mxu1 }
 0x327   : > { %v4816_v20 = vmin.f32 %v4742_v48, 0.0  ;;  %v4745_v27 = vadd.f32 %v8948_v38, %v4744_v36  ;;  %v4746_v47 = vpop.f32.mrb[27].mxu1  ;;  %vm4784_vm13 = vcmp.gt.f32.partialorder %v4742_v48, 0.0 }
 0x329   : > { %v4876_v46 = vmul.f32 1.442695, %v4816_v20  ;;  %v4817_v57 = vmin.f32 %v4745_v27, 0.0  ;;  %vm4785_vm14 = vcmp.gt.f32.partialorder %v4745_v27, 0.0 }
 0x32b   : > { %6264 = vpow2.f32 %v4876_v46  ;;  %v4878_v18 = vmul.f32 1.442695, %v4817_v57 }
 0x32d   : > { %6266 = vpow2.f32 %v4878_v18 }
 0x32e   : > { %v6261_v59 = vpop.eup %6260 }
 0x32f   : > { %v5757_v29 = vadd.f32 -1.0, %v6261_v59 }
 0x330   : > { %v6263_v15 = vpop.eup %6262 }
 0x331   : > { %v4928_v34 = vsel %vm4768_vm5, %v4678_v14, %v5757_v29  ;;  %v5758_v51 = vadd.f32 -1.0, %v6263_v15 }
 0x332   : > { %v5826_v54 = vpack.c.bf16 %v4928_v34, %v4928_v34 }
 0x333   : > { %v4929_v41 = vsel %vm4769_vm12, %v4681_v6, %v5758_v51 }
 0x334   : > { %5089 = vst.msk [vmem:[%s9006_s11 + $0x30] sm:$0xf] %vm5076_vm2, %v5826_v54  ;;  %v5827_v42 = vpack.c.bf16 %v4929_v41, %v4929_v41 }
 0x335   : > { %v6265_v9 = vpop.eup %6264 }
 0x336   : > { %5090 = vst.msk [vmem:[%s9006_s11 + $0x34] sm:$0xf] %vm5076_vm2, %v5827_v42  ;;  %v5773_v10 = vadd.f32 -1.0, %v6265_v9 }
 0x337   : > { %v6267_v32 = vpop.eup %6266 }
 0x338   : > { %v4944_v45 = vsel %vm4784_vm13, %v4742_v48, %v5773_v10  ;;  %v5774_v35 = vadd.f32 -1.0, %v6267_v32 }
 0x339   : > { %v5842_v19 = vpack.c.bf16 %v4944_v45, %v4944_v45 }
 0x33a   : > { %v4945_v22 = vsel %vm4785_vm14, %v4745_v27, %v5774_v35 }
 0x33b   : > { %5105 = vst.msk [vmem:[%s9006_s11 + $0x70] sm:$0xf] %vm5076_vm2, %v5842_v19  ;;  %v5843_v43 = vpack.c.bf16 %v4945_v22, %v4945_v22 }
 0x33d   : > { %5106 = vst.msk [vmem:[%s9006_s11 + $0x74] sm:$0xf] %vm5076_vm2, %v5843_v43 }
 0x34d   : > { %v4749_v16 = vpop.f32.mrb[28].mxu1 }
 0x34e   : > { %v4750_v44 = vadd.f32 %v8948_v38, %v4749_v16  ;;  %v4751_v40 = vpop.f32.mrb[29].mxu1 }
 0x34f   : > { %v4752_v28 = vpop.f32.mrb[30].mxu1 }
 0x350   : > { %v4685_v0 = vpop.f32.mrb[28].mxu0  ;;  %v4818_v2 = vmin.f32 %v4750_v44, 0.0  ;;  %v4753_v12 = vadd.f32 %v8948_v38, %v4752_v28  ;;  %v4754_v31 = vpop.f32.mrb[31].mxu1  ;;  %vm4786_vm15 = vcmp.gt.f32.partialorder %v4750_v44, 0.0 }
 0x351   : > { %v4686_v7 = vadd.f32 %v8948_v38, %v4685_v0  ;;  %v4687_v62 = vpop.f32.mrb[29].mxu0 }
 0x352   : > { %v4880_v50 = vmul.f32 1.442695, %v4818_v2  ;;  %v4688_v1 = vpop.f32.mrb[30].mxu0  ;;  %v4819_v13 = vmin.f32 %v4753_v12, 0.0  ;;  %vm4787_vm1 = vcmp.gt.f32.partialorder %v4753_v12, 0.0 }
 0x353   : > { %v4802_v55 = vmin.f32 %v4686_v7, 0.0  ;;  %v4689_v52 = vadd.f32 %v8948_v38, %v4688_v1  ;;  %v4690_v37 = vpop.f32.mrb[31].mxu0  ;;  %vm4770_vm3 = vcmp.gt.f32.partialorder %v4686_v7, 0.0 }
 0x354   : > { %6268 = vpow2.f32 %v4880_v50  ;;  %v4882_v23 = vmul.f32 1.442695, %v4819_v13 }
 0x355   : > { %v4848_v60 = vmul.f32 1.442695, %v4802_v55  ;;  %v4803_v5 = vmin.f32 %v4689_v52, 0.0  ;;  %vm4771_vm4 = vcmp.gt.f32.partialorder %v4689_v52, 0.0 }
 0x356   : > { %6270 = vpow2.f32 %v4882_v23 }
 0x357   : > { %6272 = vpow2.f32 %v4848_v60  ;;  %v4850_v56 = vmul.f32 1.442695, %v4803_v5 }
 0x359   : > { %6274 = vpow2.f32 %v4850_v56 }
 0x35e   : > { %v6269_v8 = vpop.eup %6268 }
 0x35f   : > { %v5775_v25 = vadd.f32 -1.0, %v6269_v8 }
 0x360   : > { %v6271_v21 = vpop.eup %6270 }
 0x361   : > { %v6273_v24 = vpop.eup %6272  ;;  %v4946_v3 = vsel %vm4786_vm15, %v4750_v44, %v5775_v25  ;;  %v5776_v49 = vadd.f32 -1.0, %v6271_v21 }
 0x362   : > { %v5759_v38 = vadd.f32 -1.0, %v6273_v24  ;;  %v5844_v26 = vpack.c.bf16 %v4946_v3, %v4946_v3 }
 0x363   : > { %v6275_v53 = vpop.eup %6274  ;;  %v4947_v14 = vsel %vm4787_vm1, %v4753_v12, %v5776_v49 }
 0x364   : > { %v4930_v39 = vsel %vm4770_vm3, %v4686_v7, %v5759_v38  ;;  %5107 = vst.msk [vmem:[%s9006_s11 + $0x78] sm:$0xf] %vm5076_vm2, %v5844_v26  ;;  %v5760_v58 = vadd.f32 -1.0, %v6275_v53  ;;  %v5845_v17 = vpack.c.bf16 %v4947_v14, %v4947_v14 }
 0x365   : > { %v5828_v6 = vpack.c.bf16 %v4930_v39, %v4930_v39 }
 0x366   : > { %v4931_v4 = vsel %vm4771_vm4, %v4689_v52, %v5760_v58  ;;  %5108 = vst.msk [vmem:[%s9006_s11 + $0x7c] sm:$0xf] %vm5076_vm2, %v5845_v17 }
 0x367   : > { %5091 = vst.msk [vmem:[%s9006_s11 + $0x38] sm:$0xf] %vm5076_vm2, %v5828_v6  ;;  %v5829_v30 = vpack.c.bf16 %v4931_v4, %v4931_v4 }
 0x369   : > { %5092 = vst.msk [vmem:[%s9006_s11 + $0x3c] sm:$0xf] %vm5076_vm2, %v5829_v30 }
 0x36a   : > { %6299 = shalt.err (!%p6296_p5)
}
 0x36b   : > { %s6300_s5 = scalar_lea.hbm %s9196_s26, 2048  ;;  %s6304_s7 = scalar_lea.hbm %s9256_s3, 4096 }
 0x36c   : > { %p6301_p6 = scmp.ne.s32.totalorder %s9196_s26, %s6300_s5  ;;  %p6305_p10 = scmp.lt.u32.totalorder %s9196_s26, %s9256_s3 }
 0x36d   : > { %p6306_p11 = scmp.lt.u32.totalorder %s6304_s7, %s6300_s5  ;;  %p6308_p13 = scmp.lt.u32.totalorder %s6300_s5, %s9196_s26 }
 0x36e   : > { %p6302_p7 = pnand %p6301_p6, %p6444_p4 }
 0x36f   : > { %p6307_p12 = por %p6306_p11, %p6305_p10 }
 0x370   : > { %p6303_p9 = pneg %p6302_p7 }
 0x371   : > { %p6309_p0 = por %p6308_p13, %p6307_p12 }
 0x373   : > { %p6310_p1 = pnand %p6309_p0, %p6303_p9 }
 0x375   : > { %6313 = shalt.err (!%p6310_p1)
}
 0x376   : > { %s6383_s11 = smov 64  }
 0x377   : > { %5872 = dma.vmem_to_hbm [thread:$0]  (%p6444_p4), %s9200_s19, 2048, %s9196_s26, %s9206_s15, %s6383_s11, %s6383_s11, %s6372_s10  }
 0x378 PF: > { %p5878_p2 = scmp.ge.s32.totalorder %s6364_s17, 2  ;;  %s5141_s18 = sand.u32 1, %s6344_s12  }
 0x379   : > { %s5142_s21 = scalar_lea.sflag [#allocation3], %s5141_s18 }
 0x37a   : > { %p5875_p3 = pnand %p5878_p2, %p6451_p8 }
 0x37c   : > { %6339 = dma.done.wait (!%p5875_p3), %s5142_s21, 2048  }
 0x37d   : > { %6341 = vsyncadd (!%p5875_p3), %s5142_s21, 4294965248  ;;  %s16_s17 = sadd.s32 1, %s6364_s17   ;;  %s9426_s12 = smov %s6348_s13 }
 0x37e   : > { %p13_p5 = scmp.ge.s32.totalorder %s16_s17, 4   ;;  %s9427_s13 = smov %s6352_s14 }
 0x37f   : > { %s9428_s14 = smov %s6457_s25  ;;  %s9429_s15 = smov %s6360_s16 }
 0x380   : > { %s9430_s16 = smov %s9432_s20  ;;  %15 = sbr.rel (!%p13_p5) target bundleno = 4 (0x4), region = 71 }
 0x387   :  { %5147 = vsyncpa [#allocation3], 1 }
 0x388   :  { %5149 = vsyncpa [#allocation3 + $0x1], 1 }

</bundles_post_ra>
